<compile_context>
chip_gen: v7x
topology: tpu7x:2x2x1
jax: 0.10.0
libtpu: 0.0.40
codegen_flags: <defaults>
</compile_context>

<pallas_src>
import functools

import jax
import jax.numpy as jnp
from jax.experimental import pallas as pl
from jax.experimental.pallas import tpu as pltpu


def encoder_kernel(
    x_ref, bias_ref,
    ln1_g_ref, ln1_b_ref,
    wqkv_ref, bqkv_ref,
    wo_h_ref, bo_ref,
    ln2_g_ref, ln2_b_ref,
    w1_ref, b1_ref, w2_ref, b2_ref,
    o_ref,
    xn_scr, q_scr, kT_scr, v_scr,
    *, num_heads, tq, head_group,
):
    eps = 1e-5
    f32 = jnp.float32
    bf16 = jnp.bfloat16
    S = x_ref.shape[1]
    D = x_ref.shape[2]
    H = num_heads
    Dh = D // H
    qi = pl.program_id(1)

    def layer_norm(v, g, b):
        mu = jnp.mean(v, axis=-1, keepdims=True)
        var = jnp.mean((v - mu) ** 2, axis=-1, keepdims=True)
        return (v - mu) * jax.lax.rsqrt(var + eps) * g + b

    # ---- 1. Once per batch element (query-tile 0): LN1 + fused QKV ----------
    #   LN1 output and head-major Q / K^T / V land in VMEM scratch and stay
    #   resident across the (sequential / "arbitrary") query-tile axis.
    @pl.when(qi == 0)
    def _():
        xn_full = layer_norm(x_ref[0], ln1_g_ref[...], ln1_b_ref[...])       # (S, D) f32
        xn_scr[...] = xn_full
        qkv = jnp.dot(xn_full.astype(bf16), wqkv_ref[...],
                      preferred_element_type=f32) + bqkv_ref[...]            # (S, 3D) f32
        for h in range(H):  # static unroll; runs once per batch element only
            # Q columns already carry the 1/sqrt(Dh) scale (folded on the host).
            q_scr[h] = qkv[:, h * Dh:(h + 1) * Dh].astype(bf16)
            kT_scr[h] = qkv[:, D + h * Dh:D + (h + 1) * Dh].T.astype(bf16)   # (Dh, S)
            v_scr[h] = qkv[:, 2 * D + h * Dh:2 * D + (h + 1) * Dh].astype(bf16)

    # ---- 2. Attention for this query tile (head groups, batched over heads) --
    q_start = pl.multiple_of(qi * tq, tq)
    bias = bias_ref[0, 0, :]                              # (S,) additive mask bias

    proj = jnp.zeros((tq, D), f32)
    for g0 in range(0, H, head_group):                    # static unroll over head groups
        gsz = min(head_group, H - g0)
        qg = q_scr[pl.ds(g0, gsz), pl.ds(q_start, tq), :]   # (g, TQ, Dh) bf16 (pre-scaled)
        kg = kT_scr[pl.ds(g0, gsz), :, :]                   # (g, Dh, S)  bf16 (lane-dense S)
        vg = v_scr[pl.ds(g0, gsz), :, :]                    # (g, S,  Dh) bf16

        s = jnp.einsum("gqd,gds->gqs", qg, kg, preferred_element_type=f32)   # (g, TQ, S)
        s = s + bias[None, None, :]                        # additive mask (0 / -1e9)
        s = s - jnp.max(s, axis=-1, keepdims=True)
        p = jnp.exp(s)
        denom = jnp.sum(p, axis=-1, keepdims=True)         # (g, TQ, 1)
        ctx = jnp.einsum("gqs,gsd->gqd", p.astype(bf16), vg,
                         preferred_element_type=f32)       # (g, TQ, Dh) unnormalized
        # Deferred softmax normalization: multiply over Dh lanes, not S lanes.
        ctx = ctx * pl.reciprocal(denom, approx=True)

        wo_g = wo_h_ref[pl.ds(g0, gsz), :, :]               # (g, Dh, D) bf16
        partial = jnp.einsum("gqd,gdn->gqn", ctx.astype(bf16), wo_g,
                             preferred_element_type=f32)    # (g, TQ, D)
        proj = proj + jnp.sum(partial, axis=0)
    attn = proj + bo_ref[...]                               # (TQ, D)

    # ---- 3. Residual + LN2 + position-wise FFN + residual --------------------
    xn_tile = xn_scr[pl.ds(q_start, tq), :]                 # cached LN1 output
    x1 = xn_tile + attn                                     # dropout == identity (eval)
    x2 = layer_norm(x1, ln2_g_ref[...], ln2_b_ref[...])

    hdn = jnp.dot(x2.astype(bf16), w1_ref[...], preferred_element_type=f32) + b1_ref[...]
    hdn = jnp.maximum(hdn, 0.0)
    y = jnp.dot(hdn.astype(bf16), w2_ref[...], preferred_element_type=f32) + b2_ref[...]

    o_ref[0] = (x2 + y).astype(o_ref.dtype)


def _vmem_capacity_bytes():
    try:
        return int(pltpu.get_tpu_info().vmem_capacity_bytes)
    except Exception:
        return 64 * 1024 * 1024   # conservative default (v7x per-TensorCore VMEM)


def encoder_forward(x, mask, params, num_heads):
    B, S, D = x.shape
    inner = params["w1"].shape[1]
    assert D % num_heads == 0
    Dh = D // num_heads

    vmem_cap = _vmem_capacity_bytes()
    # Query tile: 256 on big-VMEM parts (v6e 2x256 MXU), 128 otherwise (v5e / v7x).
    if S <= 128:
        TQ = S
    elif vmem_cap >= (96 << 20) and S % 256 == 0:
        TQ = 256
    else:
        TQ = 128
    # TODO(synk): no tail-masking path; ragged sequence lengths unsupported.
    assert S % TQ == 0, "sequence length must be a multiple of the query tile"
    NQ = S // TQ

    # Head-group size: cap live f32 (g, TQ, S) score/prob temporaries at ~4 MiB.
    head_group = min(num_heads, max(1, (4 << 20) // max(1, TQ * S * 4)))

    bf16 = jnp.bfloat16
    scale = 1.0 / jnp.sqrt(jnp.float32(Dh))
    # Host-side prep: fused QKV weight with 1/sqrt(Dh) folded into the Q columns
    # (weights AND bias), per-head output-projection weight, bf16 MXU weights.
    wqkv = jnp.concatenate(
        [params["wq"] * scale, params["wk"], params["wv"]], axis=1).astype(bf16)
    bqkv = jnp.concatenate(
        [params["bq"] * scale, params["bk"], params["bv"]], axis=1)
    wo_heads = params["wo"].reshape(num_heads, Dh, D).astype(bf16)
    w1 = params["w1"].astype(bf16)
    w2 = params["w2"].astype(bf16)
    # Additive mask bias: 0 where attend, -1e9 where ignored.
    bias = jnp.where(mask > 0.5, 0.0, -1e9).astype(jnp.float32)

    vmem_limit = max(32 << 20, min(100 << 20, vmem_cap - (8 << 20)))

    kernel = functools.partial(encoder_kernel, num_heads=num_heads, tq=TQ,
                               head_group=head_group)

    def run(single_buffer_weights):
        def const(shp):
            idx = lambda b, qi, _s=shp: tuple(0 for _ in _s)
            if single_buffer_weights:
                # Constant-index-map weights never change across the grid:
                # single-buffering halves their VMEM footprint (matters on v7x).
                return pl.BlockSpec(shp, idx, pipeline_mode=pl.Buffered(1))
            return pl.BlockSpec(shp, idx)

        in_specs = [
            pl.BlockSpec((1, S, D), lambda b, qi: (b, 0, 0)),    # x (full seq, resident per b)
            pl.BlockSpec((1, 1, S), lambda b, qi: (b, 0, 0)),    # additive mask bias
            const((1, D)), const((1, D)),                        # ln1 gamma / beta
            const((D, 3 * D)), const((1, 3 * D)),                # Wqkv (bf16), bqkv
            const((num_heads, Dh, D)), const((1, D)),            # Wo per head (bf16), bo
            const((1, D)), const((1, D)),                        # ln2 gamma / beta
            const((D, inner)), const((1, inner)),                # W1 (bf16), b1
            const((inner, D)), const((1, D)),                    # W2 (bf16), b2
        ]

        return pl.pallas_call(
            kernel,
            out_shape=jax.ShapeDtypeStruct((B, S, D), x.dtype),
            grid_spec=pltpu.PrefetchScalarGridSpec(
                num_scalar_prefetch=0,
                grid=(B, NQ),
                in_specs=in_specs,
                out_specs=pl.BlockSpec((1, TQ, D), lambda b, qi: (b, qi, 0)),
                scratch_shapes=[
                    pltpu.VMEM((S, D), jnp.float32),              # LN1 output cache
                    pltpu.VMEM((num_heads, S, Dh), bf16),         # Q (pre-scaled by 1/sqrt(Dh))
                    pltpu.VMEM((num_heads, Dh, S), bf16),         # K^T (lane-dense in S)
                    pltpu.VMEM((num_heads, S, Dh), bf16),         # V
                ],
            ),
            compiler_params=pltpu.CompilerParams(
                # TODO(synk): on v7x with B==1 (or odd B) one TensorCore idles;
                # a parallel head/query-tile-split leading axis would fix it.
                dimension_semantics=("parallel", "arbitrary"),
                vmem_limit_bytes=vmem_limit,
            ),
        )(
            x, bias,
            params["ln1_g"], params["ln1_b"],
            wqkv, bqkv, wo_heads, params["bo"],
            params["ln2_g"], params["ln2_b"],
            w1, params["b1"], w2, params["b2"],
        )

    try:
        return run(True)
    except Exception:
        # pipeline_mode=pl.Buffered(1) unsupported on this jax version/backend:
        # fall back to default double-buffered constant inputs.
        return run(False)


def encoder_reference(x, mask, params, num_heads):
    """Pure-JAX f32 reference for correctness checking."""
    eps = 1e-5

    def ln(v, g, b):
        mu = jnp.mean(v, axis=-1, keepdims=True)
        var = jnp.mean((v - mu) ** 2, axis=-1, keepdims=True)
        return (v - mu) / jnp.sqrt(var + eps) * g + b

    B, S, D = x.shape
    Dh = D // num_heads
    xn = ln(x, params["ln1_g"], params["ln1_b"])
    q = xn @ params["wq"] + params["bq"]
    k = xn @ params["wk"] + params["bk"]
    v = xn @ params["wv"] + params["bv"]
    qh = q.reshape(B, S, num_heads, Dh).transpose(0, 2, 1, 3)
    kh = k.reshape(B, S, num_heads, Dh).transpose(0, 2, 1, 3)
    vh = v.reshape(B, S, num_heads, Dh).transpose(0, 2, 1, 3)
    s = jnp.einsum("bhqd,bhkd->bhqk", qh, kh) / jnp.sqrt(jnp.float32(Dh))
    s = jnp.where(mask[:, None, :, :] > 0.5, s, -1e9)
    p = jax.nn.softmax(s, axis=-1)
    ctx = jnp.einsum("bhqk,bhkd->bhqd", p, vh).transpose(0, 2, 1, 3).reshape(B, S, D)
    attn = ctx @ params["wo"] + params["bo"]
    x1 = xn + attn
    x2 = ln(x1, params["ln2_g"], params["ln2_b"])
    y = jnp.maximum(x2 @ params["w1"] + params["b1"], 0.0) @ params["w2"] + params["b2"]
    return x2 + y


def init_params(key, dim, inner_dim):
    ks = jax.random.split(key, 6)
    sc = 1.0 / jnp.sqrt(jnp.float32(dim))
    sci = 1.0 / jnp.sqrt(jnp.float32(inner_dim))
    return {
        "ln1_g": jnp.ones((1, dim), jnp.float32),
        "ln1_b": jnp.zeros((1, dim), jnp.float32),
        "wq": jax.random.normal(ks[0], (dim, dim), jnp.float32) * sc,
        "bq": jnp.zeros((1, dim), jnp.float32),
        "wk": jax.random.normal(ks[1], (dim, dim), jnp.float32) * sc,
        "bk": jnp.zeros((1, dim), jnp.float32),
        "wv": jax.random.normal(ks[2], (dim, dim), jnp.float32) * sc,
        "bv": jnp.zeros((1, dim), jnp.float32),
        "wo": jax.random.normal(ks[3], (dim, dim), jnp.float32) * sc,
        "bo": jnp.zeros((1, dim), jnp.float32),
        "ln2_g": jnp.ones((1, dim), jnp.float32),
        "ln2_b": jnp.zeros((1, dim), jnp.float32),
        "w1": jax.random.normal(ks[4], (dim, inner_dim), jnp.float32) * sc,
        "b1": jnp.zeros((1, inner_dim), jnp.float32),
        "w2": jax.random.normal(ks[5], (inner_dim, dim), jnp.float32) * sci,
        "b2": jnp.zeros((1, dim), jnp.float32),
    }


if __name__ == "__main__":
    B, S, D = 2, 8, 32
    num_heads, inner_dim = 4, 64

    key = jax.random.PRNGKey(0)
    kx, kp = jax.random.split(key)
    x = jax.random.normal(kx, (B, S, D), jnp.float32)

    # mask: 1.0 = attend, 0.0 = ignore (pad the last 2 positions of batch 1)
    mask = jnp.ones((B, 1, S), jnp.float32)
    mask = mask.at[1, 0, S - 2:].set(0.0)

    params = init_params(kp, D, inner_dim)

    out = encoder_forward(x, mask, params, num_heads)
    out = jax.block_until_ready(out)

    # f32 reference using bf16-rounded matmul weights (what the kernel feeds the
    # MXU), so the comparison isolates activation-rounding / approx-recip error.
    ref_params = dict(params)
    for name in ("wq", "wk", "wv", "wo", "w1", "w2"):
        ref_params[name] = params[name].astype(jnp.bfloat16).astype(jnp.float32)
    ref = encoder_reference(x, mask, ref_params, num_heads)

    assert out.shape == (B, S, D)
    err = jnp.max(jnp.abs(out - ref))
    assert jnp.allclose(out, ref, rtol=5e-2, atol=5e-2), f"max abs err = {err}"

    print("KERNEL_OK")
</pallas_src>

<mosaic_0001>
module attributes {stable_mosaic.version = 11 : i64} {
  func.func @encoder_kernel(%arg0: i32, %arg1: i32, %arg2: memref<1x8x32xf32, #tpu.memory_space<vmem>>, %arg3: memref<1x1x8xf32, #tpu.memory_space<vmem>>, %arg4: memref<1x32xf32, #tpu.memory_space<vmem>>, %arg5: memref<1x32xf32, #tpu.memory_space<vmem>>, %arg6: memref<32x96xbf16, #tpu.memory_space<vmem>>, %arg7: memref<1x96xf32, #tpu.memory_space<vmem>>, %arg8: memref<4x8x32xbf16, #tpu.memory_space<vmem>>, %arg9: memref<1x32xf32, #tpu.memory_space<vmem>>, %arg10: memref<1x32xf32, #tpu.memory_space<vmem>>, %arg11: memref<1x32xf32, #tpu.memory_space<vmem>>, %arg12: memref<32x64xbf16, #tpu.memory_space<vmem>>, %arg13: memref<1x64xf32, #tpu.memory_space<vmem>>, %arg14: memref<64x32xbf16, #tpu.memory_space<vmem>>, %arg15: memref<1x32xf32, #tpu.memory_space<vmem>>, %arg16: memref<1x8x32xf32, #tpu.memory_space<vmem>>, %arg17: memref<8x32xf32, #tpu.memory_space<vmem>>, %arg18: memref<4x8x8xbf16, #tpu.memory_space<vmem>>, %arg19: memref<4x8x8xbf16, #tpu.memory_space<vmem>>, %arg20: memref<4x8x8xbf16, #tpu.memory_space<vmem>>) attributes {dimension_semantics = [#tpu.dimension_semantics<parallel>, #tpu.dimension_semantics<arbitrary>], iteration_bounds = array<i64: 2, 1>, scalar_prefetch = 0 : i64, scratch_operands = 4 : i64, tpu.core_type = #tpu.core_type<tc>, window_params = [{transform_indices = @transform_0, window_bounds = array<i64: 1, 8, 32>}, {transform_indices = @transform_1, window_bounds = array<i64: 1, 1, 8>}, {pipeline_mode = #tpu.pipeline_mode<synchronous>, transform_indices = @transform_2, window_bounds = array<i64: 1, 32>}, {pipeline_mode = #tpu.pipeline_mode<synchronous>, transform_indices = @transform_3, window_bounds = array<i64: 1, 32>}, {pipeline_mode = #tpu.pipeline_mode<synchronous>, transform_indices = @transform_4, window_bounds = array<i64: 32, 96>}, {pipeline_mode = #tpu.pipeline_mode<synchronous>, transform_indices = @transform_5, window_bounds = array<i64: 1, 96>}, {pipeline_mode = #tpu.pipeline_mode<synchronous>, transform_indices = @transform_6, window_bounds = array<i64: 4, 8, 32>}, {pipeline_mode = #tpu.pipeline_mode<synchronous>, transform_indices = @transform_7, window_bounds = array<i64: 1, 32>}, {pipeline_mode = #tpu.pipeline_mode<synchronous>, transform_indices = @transform_8, window_bounds = array<i64: 1, 32>}, {pipeline_mode = #tpu.pipeline_mode<synchronous>, transform_indices = @transform_9, window_bounds = array<i64: 1, 32>}, {pipeline_mode = #tpu.pipeline_mode<synchronous>, transform_indices = @transform_10, window_bounds = array<i64: 32, 64>}, {pipeline_mode = #tpu.pipeline_mode<synchronous>, transform_indices = @transform_11, window_bounds = array<i64: 1, 64>}, {pipeline_mode = #tpu.pipeline_mode<synchronous>, transform_indices = @transform_12, window_bounds = array<i64: 64, 32>}, {pipeline_mode = #tpu.pipeline_mode<synchronous>, transform_indices = @transform_13, window_bounds = array<i64: 1, 32>}, {transform_indices = @transform_14, window_bounds = array<i64: 1, 8, 32>}]} {
    %c0_i32 = arith.constant 0 : i32
    %0 = arith.cmpi eq, %arg1, %c0_i32 : i32
    %1 = arith.extui %0 : i1 to i32
    %c0_i32_0 = arith.constant 0 : i32
    %2 = arith.cmpi ne, %1, %c0_i32_0 : i32
    scf.if %2 {
      %c0_46 = arith.constant 0 : index
      %c0_47 = arith.constant 0 : index
      %c0_48 = arith.constant 0 : index
      %81 = vector.load %arg2[%c0_46, %c0_47, %c0_48] : memref<1x8x32xf32, #tpu.memory_space<vmem>>, vector<1x8x32xf32>
      %82 = vector.shape_cast %81 : vector<1x8x32xf32> to vector<8x32xf32>
      %c0_49 = arith.constant 0 : index
      %c0_50 = arith.constant 0 : index
      %83 = vector.load %arg4[%c0_49, %c0_50] : memref<1x32xf32, #tpu.memory_space<vmem>>, vector<1x32xf32>
      %c0_51 = arith.constant 0 : index
      %c0_52 = arith.constant 0 : index
      %84 = vector.load %arg5[%c0_51, %c0_52] : memref<1x32xf32, #tpu.memory_space<vmem>>, vector<1x32xf32>
      %cst_53 = arith.constant dense<0.000000e+00> : vector<8xf32>
      %85 = vector.multi_reduction <add>, %82, %cst_53 [1] : vector<8x32xf32> to vector<8xf32>
      %86 = vector.shape_cast %85 : vector<8xf32> to vector<8x1xf32>
      %cst_54 = arith.constant 3.200000e+01 : f32
      %87 = vector.broadcast %cst_54 : f32 to vector<8x1xf32>
      %88 = arith.divf %86, %87 : vector<8x1xf32>
      %89 = vector.broadcast %88 : vector<8x1xf32> to vector<8x32xf32>
      %90 = arith.subf %82, %89 : vector<8x32xf32>
      %91 = arith.mulf %90, %90 : vector<8x32xf32>
      %cst_55 = arith.constant dense<0.000000e+00> : vector<8xf32>
      %92 = vector.multi_reduction <add>, %91, %cst_55 [1] : vector<8x32xf32> to vector<8xf32>
      %93 = vector.shape_cast %92 : vector<8xf32> to vector<8x1xf32>
      %cst_56 = arith.constant 3.200000e+01 : f32
      %94 = vector.broadcast %cst_56 : f32 to vector<8x1xf32>
      %95 = arith.divf %93, %94 : vector<8x1xf32>
      %96 = vector.broadcast %88 : vector<8x1xf32> to vector<8x32xf32>
      %97 = arith.subf %82, %96 : vector<8x32xf32>
      %cst_57 = arith.constant 9.99999974E-6 : f32
      %98 = vector.broadcast %cst_57 : f32 to vector<8x1xf32>
      %99 = arith.addf %95, %98 : vector<8x1xf32>
      %100 = math.rsqrt %99 : vector<8x1xf32>
      %101 = vector.broadcast %100 : vector<8x1xf32> to vector<8x32xf32>
      %102 = arith.mulf %97, %101 : vector<8x32xf32>
      %103 = vector.broadcast %83 : vector<1x32xf32> to vector<8x32xf32>
      %104 = arith.mulf %102, %103 : vector<8x32xf32>
      %105 = vector.broadcast %84 : vector<1x32xf32> to vector<8x32xf32>
      %106 = arith.addf %104, %105 : vector<8x32xf32>
      %c0_58 = arith.constant 0 : index
      %c0_59 = arith.constant 0 : index
      %107 = vector.load %arg17[%c0_58, %c0_59] : memref<8x32xf32, #tpu.memory_space<vmem>>, vector<8x32xf32>
      tpu.vector_store %arg17[%c0_58, %c0_59], %106 {strides = array<i32>} : memref<8x32xf32, #tpu.memory_space<vmem>>, vector<8x32xf32>,
      %108 = arith.truncf %106 : vector<8x32xf32> to vector<8x32xbf16>
      %c0_60 = arith.constant 0 : index
      %c0_61 = arith.constant 0 : index
      %109 = vector.load %arg6[%c0_60, %c0_61] : memref<32x96xbf16, #tpu.memory_space<vmem>>, vector<32x96xbf16>
      %cst_62 = arith.constant dense<0.000000e+00> : vector<8x96xf32>
      %110 = tpu.matmul %108, %109, %cst_62 {dimension_numbers = #tpu.dot_dimension_numbers<[1], [0], [0], [1], [0, 0, 1, 1], [], []>} : vector<8x32xbf16>, vector<32x96xbf16>, vector<8x96xf32> -> vector<8x96xf32>
      %c0_63 = arith.constant 0 : index
      %c0_64 = arith.constant 0 : index
      %111 = vector.load %arg7[%c0_63, %c0_64] : memref<1x96xf32, #tpu.memory_space<vmem>>, vector<1x96xf32>
      %112 = vector.broadcast %111 : vector<1x96xf32> to vector<8x96xf32>
      %113 = arith.addf %110, %112 : vector<8x96xf32>
      %114 = vector.extract_strided_slice %113 {offsets = [0, 0], sizes = [8, 8], strides = [1, 1]} : vector<8x96xf32> to vector<8x8xf32>
      %115 = arith.truncf %114 : vector<8x8xf32> to vector<8x8xbf16>
      %c0_65 = arith.constant 0 : index
      %c0_66 = arith.constant 0 : index
      %c0_67 = arith.constant 0 : index
      %116 = vector.load %arg18[%c0_65, %c0_66, %c0_67] : memref<4x8x8xbf16, #tpu.memory_space<vmem>>, vector<1x8x8xbf16>
      %117 = vector.shape_cast %116 : vector<1x8x8xbf16> to vector<8x8xbf16>
      %118 = vector.shape_cast %115 : vector<8x8xbf16> to vector<1x8x8xbf16>
      tpu.vector_store %arg18[%c0_65, %c0_66, %c0_67], %118 {strides = array<i32>} : memref<4x8x8xbf16, #tpu.memory_space<vmem>>, vector<1x8x8xbf16>,
      %119 = vector.extract_strided_slice %113 {offsets = [0, 32], sizes = [8, 8], strides = [1, 1]} : vector<8x96xf32> to vector<8x8xf32>
      %120 = tpu.transpose %119, [1, 0] : vector<8x8xf32> -> vector<8x8xf32>
      %121 = arith.truncf %120 : vector<8x8xf32> to vector<8x8xbf16>
      %c0_68 = arith.constant 0 : index
      %c0_69 = arith.constant 0 : index
      %c0_70 = arith.constant 0 : index
      %122 = vector.load %arg19[%c0_68, %c0_69, %c0_70] : memref<4x8x8xbf16, #tpu.memory_space<vmem>>, vector<1x8x8xbf16>
      %123 = vector.shape_cast %122 : vector<1x8x8xbf16> to vector<8x8xbf16>
      %124 = vector.shape_cast %121 : vector<8x8xbf16> to vector<1x8x8xbf16>
      tpu.vector_store %arg19[%c0_68, %c0_69, %c0_70], %124 {strides = array<i32>} : memref<4x8x8xbf16, #tpu.memory_space<vmem>>, vector<1x8x8xbf16>,
      %125 = vector.extract_strided_slice %113 {offsets = [0, 64], sizes = [8, 8], strides = [1, 1]} : vector<8x96xf32> to vector<8x8xf32>
      %126 = arith.truncf %125 : vector<8x8xf32> to vector<8x8xbf16>
      %c0_71 = arith.constant 0 : index
      %c0_72 = arith.constant 0 : index
      %c0_73 = arith.constant 0 : index
      %127 = vector.load %arg20[%c0_71, %c0_72, %c0_73] : memref<4x8x8xbf16, #tpu.memory_space<vmem>>, vector<1x8x8xbf16>
      %128 = vector.shape_cast %127 : vector<1x8x8xbf16> to vector<8x8xbf16>
      %129 = vector.shape_cast %126 : vector<8x8xbf16> to vector<1x8x8xbf16>
      tpu.vector_store %arg20[%c0_71, %c0_72, %c0_73], %129 {strides = array<i32>} : memref<4x8x8xbf16, #tpu.memory_space<vmem>>, vector<1x8x8xbf16>,
      %130 = vector.extract_strided_slice %113 {offsets = [0, 8], sizes = [8, 8], strides = [1, 1]} : vector<8x96xf32> to vector<8x8xf32>
      %131 = arith.truncf %130 : vector<8x8xf32> to vector<8x8xbf16>
      %c1 = arith.constant 1 : index
      %c0_74 = arith.constant 0 : index
      %c0_75 = arith.constant 0 : index
      %132 = vector.load %arg18[%c1, %c0_74, %c0_75] : memref<4x8x8xbf16, #tpu.memory_space<vmem>>, vector<1x8x8xbf16>
      %133 = vector.shape_cast %132 : vector<1x8x8xbf16> to vector<8x8xbf16>
      %134 = vector.shape_cast %131 : vector<8x8xbf16> to vector<1x8x8xbf16>
      tpu.vector_store %arg18[%c1, %c0_74, %c0_75], %134 {strides = array<i32>} : memref<4x8x8xbf16, #tpu.memory_space<vmem>>, vector<1x8x8xbf16>,
      %135 = vector.extract_strided_slice %113 {offsets = [0, 40], sizes = [8, 8], strides = [1, 1]} : vector<8x96xf32> to vector<8x8xf32>
      %136 = tpu.transpose %135, [1, 0] : vector<8x8xf32> -> vector<8x8xf32>
      %137 = arith.truncf %136 : vector<8x8xf32> to vector<8x8xbf16>
      %c1_76 = arith.constant 1 : index
      %c0_77 = arith.constant 0 : index
      %c0_78 = arith.constant 0 : index
      %138 = vector.load %arg19[%c1_76, %c0_77, %c0_78] : memref<4x8x8xbf16, #tpu.memory_space<vmem>>, vector<1x8x8xbf16>
      %139 = vector.shape_cast %138 : vector<1x8x8xbf16> to vector<8x8xbf16>
      %140 = vector.shape_cast %137 : vector<8x8xbf16> to vector<1x8x8xbf16>
      tpu.vector_store %arg19[%c1_76, %c0_77, %c0_78], %140 {strides = array<i32>} : memref<4x8x8xbf16, #tpu.memory_space<vmem>>, vector<1x8x8xbf16>,
      %141 = vector.extract_strided_slice %113 {offsets = [0, 72], sizes = [8, 8], strides = [1, 1]} : vector<8x96xf32> to vector<8x8xf32>
      %142 = arith.truncf %141 : vector<8x8xf32> to vector<8x8xbf16>
      %c1_79 = arith.constant 1 : index
      %c0_80 = arith.constant 0 : index
      %c0_81 = arith.constant 0 : index
      %143 = vector.load %arg20[%c1_79, %c0_80, %c0_81] : memref<4x8x8xbf16, #tpu.memory_space<vmem>>, vector<1x8x8xbf16>
      %144 = vector.shape_cast %143 : vector<1x8x8xbf16> to vector<8x8xbf16>
      %145 = vector.shape_cast %142 : vector<8x8xbf16> to vector<1x8x8xbf16>
      tpu.vector_store %arg20[%c1_79, %c0_80, %c0_81], %145 {strides = array<i32>} : memref<4x8x8xbf16, #tpu.memory_space<vmem>>, vector<1x8x8xbf16>,
      %146 = vector.extract_strided_slice %113 {offsets = [0, 16], sizes = [8, 8], strides = [1, 1]} : vector<8x96xf32> to vector<8x8xf32>
      %147 = arith.truncf %146 : vector<8x8xf32> to vector<8x8xbf16>
      %c2 = arith.constant 2 : index
      %c0_82 = arith.constant 0 : index
      %c0_83 = arith.constant 0 : index
      %148 = vector.load %arg18[%c2, %c0_82, %c0_83] : memref<4x8x8xbf16, #tpu.memory_space<vmem>>, vector<1x8x8xbf16>
      %149 = vector.shape_cast %148 : vector<1x8x8xbf16> to vector<8x8xbf16>
      %150 = vector.shape_cast %147 : vector<8x8xbf16> to vector<1x8x8xbf16>
      tpu.vector_store %arg18[%c2, %c0_82, %c0_83], %150 {strides = array<i32>} : memref<4x8x8xbf16, #tpu.memory_space<vmem>>, vector<1x8x8xbf16>,
      %151 = vector.extract_strided_slice %113 {offsets = [0, 48], sizes = [8, 8], strides = [1, 1]} : vector<8x96xf32> to vector<8x8xf32>
      %152 = tpu.transpose %151, [1, 0] : vector<8x8xf32> -> vector<8x8xf32>
      %153 = arith.truncf %152 : vector<8x8xf32> to vector<8x8xbf16>
      %c2_84 = arith.constant 2 : index
      %c0_85 = arith.constant 0 : index
      %c0_86 = arith.constant 0 : index
      %154 = vector.load %arg19[%c2_84, %c0_85, %c0_86] : memref<4x8x8xbf16, #tpu.memory_space<vmem>>, vector<1x8x8xbf16>
      %155 = vector.shape_cast %154 : vector<1x8x8xbf16> to vector<8x8xbf16>
      %156 = vector.shape_cast %153 : vector<8x8xbf16> to vector<1x8x8xbf16>
      tpu.vector_store %arg19[%c2_84, %c0_85, %c0_86], %156 {strides = array<i32>} : memref<4x8x8xbf16, #tpu.memory_space<vmem>>, vector<1x8x8xbf16>,
      %157 = vector.extract_strided_slice %113 {offsets = [0, 80], sizes = [8, 8], strides = [1, 1]} : vector<8x96xf32> to vector<8x8xf32>
      %158 = arith.truncf %157 : vector<8x8xf32> to vector<8x8xbf16>
      %c2_87 = arith.constant 2 : index
      %c0_88 = arith.constant 0 : index
      %c0_89 = arith.constant 0 : index
      %159 = vector.load %arg20[%c2_87, %c0_88, %c0_89] : memref<4x8x8xbf16, #tpu.memory_space<vmem>>, vector<1x8x8xbf16>
      %160 = vector.shape_cast %159 : vector<1x8x8xbf16> to vector<8x8xbf16>
      %161 = vector.shape_cast %158 : vector<8x8xbf16> to vector<1x8x8xbf16>
      tpu.vector_store %arg20[%c2_87, %c0_88, %c0_89], %161 {strides = array<i32>} : memref<4x8x8xbf16, #tpu.memory_space<vmem>>, vector<1x8x8xbf16>,
      %162 = vector.extract_strided_slice %113 {offsets = [0, 24], sizes = [8, 8], strides = [1, 1]} : vector<8x96xf32> to vector<8x8xf32>
      %163 = arith.truncf %162 : vector<8x8xf32> to vector<8x8xbf16>
      %c3 = arith.constant 3 : index
      %c0_90 = arith.constant 0 : index
      %c0_91 = arith.constant 0 : index
      %164 = vector.load %arg18[%c3, %c0_90, %c0_91] : memref<4x8x8xbf16, #tpu.memory_space<vmem>>, vector<1x8x8xbf16>
      %165 = vector.shape_cast %164 : vector<1x8x8xbf16> to vector<8x8xbf16>
      %166 = vector.shape_cast %163 : vector<8x8xbf16> to vector<1x8x8xbf16>
      tpu.vector_store %arg18[%c3, %c0_90, %c0_91], %166 {strides = array<i32>} : memref<4x8x8xbf16, #tpu.memory_space<vmem>>, vector<1x8x8xbf16>,
      %167 = vector.extract_strided_slice %113 {offsets = [0, 56], sizes = [8, 8], strides = [1, 1]} : vector<8x96xf32> to vector<8x8xf32>
      %168 = tpu.transpose %167, [1, 0] : vector<8x8xf32> -> vector<8x8xf32>
      %169 = arith.truncf %168 : vector<8x8xf32> to vector<8x8xbf16>
      %c3_92 = arith.constant 3 : index
      %c0_93 = arith.constant 0 : index
      %c0_94 = arith.constant 0 : index
      %170 = vector.load %arg19[%c3_92, %c0_93, %c0_94] : memref<4x8x8xbf16, #tpu.memory_space<vmem>>, vector<1x8x8xbf16>
      %171 = vector.shape_cast %170 : vector<1x8x8xbf16> to vector<8x8xbf16>
      %172 = vector.shape_cast %169 : vector<8x8xbf16> to vector<1x8x8xbf16>
      tpu.vector_store %arg19[%c3_92, %c0_93, %c0_94], %172 {strides = array<i32>} : memref<4x8x8xbf16, #tpu.memory_space<vmem>>, vector<1x8x8xbf16>,
      %173 = vector.extract_strided_slice %113 {offsets = [0, 88], sizes = [8, 8], strides = [1, 1]} : vector<8x96xf32> to vector<8x8xf32>
      %174 = arith.truncf %173 : vector<8x8xf32> to vector<8x8xbf16>
      %c3_95 = arith.constant 3 : index
      %c0_96 = arith.constant 0 : index
      %c0_97 = arith.constant 0 : index
      %175 = vector.load %arg20[%c3_95, %c0_96, %c0_97] : memref<4x8x8xbf16, #tpu.memory_space<vmem>>, vector<1x8x8xbf16>
      %176 = vector.shape_cast %175 : vector<1x8x8xbf16> to vector<8x8xbf16>
      %177 = vector.shape_cast %174 : vector<8x8xbf16> to vector<1x8x8xbf16>
      tpu.vector_store %arg20[%c3_95, %c0_96, %c0_97], %177 {strides = array<i32>} : memref<4x8x8xbf16, #tpu.memory_space<vmem>>, vector<1x8x8xbf16>,
    } else {
    }
    %c8_i32 = arith.constant 8 : i32
    %3 = arith.muli %arg1, %c8_i32 : i32
    %4 = tpu.assume_multiple %3, 8 : i32
    %c0 = arith.constant 0 : index
    %c0_1 = arith.constant 0 : index
    %c0_2 = arith.constant 0 : index
    %5 = vector.load %arg3[%c0, %c0_1, %c0_2] : memref<1x1x8xf32, #tpu.memory_space<vmem>>, vector<1x1x8xf32>
    %6 = vector.shape_cast %5 : vector<1x1x8xf32> to vector<8xf32>
    %cst = arith.constant 0.000000e+00 : f32
    %7 = vector.broadcast %cst : f32 to vector<8x32xf32>
    %c0_3 = arith.constant 0 : index
    %8 = arith.index_cast %4 : i32 to index
    %c0_4 = arith.constant 0 : index
    %9 = vector.load %arg18[%c0_3, %8, %c0_4] : memref<4x8x8xbf16, #tpu.memory_space<vmem>>, vector<4x8x8xbf16>
    %c0_5 = arith.constant 0 : index
    %c0_6 = arith.constant 0 : index
    %c0_7 = arith.constant 0 : index
    %10 = vector.load %arg19[%c0_5, %c0_6, %c0_7] : memref<4x8x8xbf16, #tpu.memory_space<vmem>>, vector<4x8x8xbf16>
    %c0_8 = arith.constant 0 : index
    %c0_9 = arith.constant 0 : index
    %c0_10 = arith.constant 0 : index
    %11 = vector.load %arg20[%c0_8, %c0_9, %c0_10] : memref<4x8x8xbf16, #tpu.memory_space<vmem>>, vector<4x8x8xbf16>
    "tpu.trace_start"() <{level = 10 : i32, message = "gqd,gds->gqs"}> : () -> ()
    %cst_11 = arith.constant dense<0.000000e+00> : vector<4x8x8xf32>
    %12 = tpu.matmul %9, %10, %cst_11 {dimension_numbers = #tpu.dot_dimension_numbers<[2], [1], [1], [2], [0, 0, 0, 1, 1, 2], [0], [0]>} : vector<4x8x8xbf16>, vector<4x8x8xbf16>, vector<4x8x8xf32> -> vector<4x8x8xf32>
    "tpu.trace_stop"() : () -> ()
    %13 = vector.shape_cast %6 : vector<8xf32> to vector<1x1x8xf32>
    %14 = vector.broadcast %13 : vector<1x1x8xf32> to vector<4x8x8xf32>
    %15 = arith.addf %12, %14 : vector<4x8x8xf32>
    %cst_12 = arith.constant dense<0xFF800000> : vector<4x8xf32>
    %16 = vector.multi_reduction <maximumf>, %15, %cst_12 [2] : vector<4x8x8xf32> to vector<4x8xf32>
    %17 = vector.shape_cast %16 : vector<4x8xf32> to vector<4x8x1xf32>
    %18 = vector.broadcast %17 : vector<4x8x1xf32> to vector<4x8x8xf32>
    %19 = arith.subf %15, %18 : vector<4x8x8xf32>
    %20 = math.exp %19 : vector<4x8x8xf32>
    %cst_13 = arith.constant dense<0.000000e+00> : vector<4x8xf32>
    %21 = vector.multi_reduction <add>, %20, %cst_13 [2] : vector<4x8x8xf32> to vector<4x8xf32>
    %22 = vector.shape_cast %21 : vector<4x8xf32> to vector<4x8x1xf32>
    %23 = arith.truncf %20 : vector<4x8x8xf32> to vector<4x8x8xbf16>
    "tpu.trace_start"() <{level = 10 : i32, message = "gqs,gsd->gqd"}> : () -> ()
    %cst_14 = arith.constant dense<0.000000e+00> : vector<4x8x8xf32>
    %24 = tpu.matmul %23, %11, %cst_14 {dimension_numbers = #tpu.dot_dimension_numbers<[2], [1], [1], [2], [0, 0, 0, 1, 1, 2], [0], [0]>} : vector<4x8x8xbf16>, vector<4x8x8xbf16>, vector<4x8x8xf32> -> vector<4x8x8xf32>
    "tpu.trace_stop"() : () -> ()
    %25 = tpu.reciprocal %22 {approx = true} : vector<4x8x1xf32> -> vector<4x8x1xf32>
    %26 = vector.broadcast %25 : vector<4x8x1xf32> to vector<4x8x8xf32>
    %27 = arith.mulf %24, %26 : vector<4x8x8xf32>
    %c0_15 = arith.constant 0 : index
    %c0_16 = arith.constant 0 : index
    %c0_17 = arith.constant 0 : index
    %28 = vector.load %arg8[%c0_15, %c0_16, %c0_17] : memref<4x8x32xbf16, #tpu.memory_space<vmem>>, vector<4x8x32xbf16>
    %29 = arith.truncf %27 : vector<4x8x8xf32> to vector<4x8x8xbf16>
    "tpu.trace_start"() <{level = 10 : i32, message = "gqd,gdn->gqn"}> : () -> ()
    %cst_18 = arith.constant dense<0.000000e+00> : vector<4x8x32xf32>
    %30 = tpu.matmul %29, %28, %cst_18 {dimension_numbers = #tpu.dot_dimension_numbers<[2], [1], [1], [2], [0, 0, 0, 1, 1, 2], [0], [0]>} : vector<4x8x8xbf16>, vector<4x8x32xbf16>, vector<4x8x32xf32> -> vector<4x8x32xf32>
    "tpu.trace_stop"() : () -> ()
    %cst_19 = arith.constant dense<0.000000e+00> : vector<8x32xf32>
    %31 = vector.multi_reduction <add>, %30, %cst_19 [0] : vector<4x8x32xf32> to vector<8x32xf32>
    %32 = arith.addf %7, %31 : vector<8x32xf32>
    %c0_20 = arith.constant 0 : index
    %c0_21 = arith.constant 0 : index
    %33 = vector.load %arg9[%c0_20, %c0_21] : memref<1x32xf32, #tpu.memory_space<vmem>>, vector<1x32xf32>
    %34 = vector.broadcast %33 : vector<1x32xf32> to vector<8x32xf32>
    %35 = arith.addf %32, %34 : vector<8x32xf32>
    %36 = arith.index_cast %4 : i32 to index
    %c0_22 = arith.constant 0 : index
    %37 = vector.load %arg17[%36, %c0_22] : memref<8x32xf32, #tpu.memory_space<vmem>>, vector<8x32xf32>
    %38 = arith.addf %37, %35 : vector<8x32xf32>
    %c0_23 = arith.constant 0 : index
    %c0_24 = arith.constant 0 : index
    %39 = vector.load %arg10[%c0_23, %c0_24] : memref<1x32xf32, #tpu.memory_space<vmem>>, vector<1x32xf32>
    %c0_25 = arith.constant 0 : index
    %c0_26 = arith.constant 0 : index
    %40 = vector.load %arg11[%c0_25, %c0_26] : memref<1x32xf32, #tpu.memory_space<vmem>>, vector<1x32xf32>
    %cst_27 = arith.constant dense<0.000000e+00> : vector<8xf32>
    %41 = vector.multi_reduction <add>, %38, %cst_27 [1] : vector<8x32xf32> to vector<8xf32>
    %42 = vector.shape_cast %41 : vector<8xf32> to vector<8x1xf32>
    %cst_28 = arith.constant 3.200000e+01 : f32
    %43 = vector.broadcast %cst_28 : f32 to vector<8x1xf32>
    %44 = arith.divf %42, %43 : vector<8x1xf32>
    %45 = vector.broadcast %44 : vector<8x1xf32> to vector<8x32xf32>
    %46 = arith.subf %38, %45 : vector<8x32xf32>
    %47 = arith.mulf %46, %46 : vector<8x32xf32>
    %cst_29 = arith.constant dense<0.000000e+00> : vector<8xf32>
    %48 = vector.multi_reduction <add>, %47, %cst_29 [1] : vector<8x32xf32> to vector<8xf32>
    %49 = vector.shape_cast %48 : vector<8xf32> to vector<8x1xf32>
    %cst_30 = arith.constant 3.200000e+01 : f32
    %50 = vector.broadcast %cst_30 : f32 to vector<8x1xf32>
    %51 = arith.divf %49, %50 : vector<8x1xf32>
    %52 = vector.broadcast %44 : vector<8x1xf32> to vector<8x32xf32>
    %53 = arith.subf %38, %52 : vector<8x32xf32>
    %cst_31 = arith.constant 9.99999974E-6 : f32
    %54 = vector.broadcast %cst_31 : f32 to vector<8x1xf32>
    %55 = arith.addf %51, %54 : vector<8x1xf32>
    %56 = math.rsqrt %55 : vector<8x1xf32>
    %57 = vector.broadcast %56 : vector<8x1xf32> to vector<8x32xf32>
    %58 = arith.mulf %53, %57 : vector<8x32xf32>
    %59 = vector.broadcast %39 : vector<1x32xf32> to vector<8x32xf32>
    %60 = arith.mulf %58, %59 : vector<8x32xf32>
    %61 = vector.broadcast %40 : vector<1x32xf32> to vector<8x32xf32>
    %62 = arith.addf %60, %61 : vector<8x32xf32>
    %63 = arith.truncf %62 : vector<8x32xf32> to vector<8x32xbf16>
    %c0_32 = arith.constant 0 : index
    %c0_33 = arith.constant 0 : index
    %64 = vector.load %arg12[%c0_32, %c0_33] : memref<32x64xbf16, #tpu.memory_space<vmem>>, vector<32x64xbf16>
    %cst_34 = arith.constant dense<0.000000e+00> : vector<8x64xf32>
    %65 = tpu.matmul %63, %64, %cst_34 {dimension_numbers = #tpu.dot_dimension_numbers<[1], [0], [0], [1], [0, 0, 1, 1], [], []>} : vector<8x32xbf16>, vector<32x64xbf16>, vector<8x64xf32> -> vector<8x64xf32>
    %c0_35 = arith.constant 0 : index
    %c0_36 = arith.constant 0 : index
    %66 = vector.load %arg13[%c0_35, %c0_36] : memref<1x64xf32, #tpu.memory_space<vmem>>, vector<1x64xf32>
    %67 = vector.broadcast %66 : vector<1x64xf32> to vector<8x64xf32>
    %68 = arith.addf %65, %67 : vector<8x64xf32>
    %cst_37 = arith.constant 0.000000e+00 : f32
    %69 = vector.broadcast %cst_37 : f32 to vector<8x64xf32>
    %70 = arith.maximumf %68, %69 : vector<8x64xf32>
    %71 = arith.truncf %70 : vector<8x64xf32> to vector<8x64xbf16>
    %c0_38 = arith.constant 0 : index
    %c0_39 = arith.constant 0 : index
    %72 = vector.load %arg14[%c0_38, %c0_39] : memref<64x32xbf16, #tpu.memory_space<vmem>>, vector<64x32xbf16>
    %cst_40 = arith.constant dense<0.000000e+00> : vector<8x32xf32>
    %73 = tpu.matmul %71, %72, %cst_40 {dimension_numbers = #tpu.dot_dimension_numbers<[1], [0], [0], [1], [0, 0, 1, 1], [], []>} : vector<8x64xbf16>, vector<64x32xbf16>, vector<8x32xf32> -> vector<8x32xf32>
    %c0_41 = arith.constant 0 : index
    %c0_42 = arith.constant 0 : index
    %74 = vector.load %arg15[%c0_41, %c0_42] : memref<1x32xf32, #tpu.memory_space<vmem>>, vector<1x32xf32>
    %75 = vector.broadcast %74 : vector<1x32xf32> to vector<8x32xf32>
    %76 = arith.addf %73, %75 : vector<8x32xf32>
    %77 = arith.addf %62, %76 : vector<8x32xf32>
    %c0_43 = arith.constant 0 : index
    %c0_44 = arith.constant 0 : index
    %c0_45 = arith.constant 0 : index
    %78 = vector.load %arg16[%c0_43, %c0_44, %c0_45] : memref<1x8x32xf32, #tpu.memory_space<vmem>>, vector<1x8x32xf32>
    %79 = vector.shape_cast %78 : vector<1x8x32xf32> to vector<8x32xf32>
    %80 = vector.shape_cast %77 : vector<8x32xf32> to vector<1x8x32xf32>
    tpu.vector_store %arg16[%c0_43, %c0_44, %c0_45], %80 {strides = array<i32>} : memref<1x8x32xf32, #tpu.memory_space<vmem>>, vector<1x8x32xf32>,
    return
  }
  func.func @transform_0(%arg0: i32, %arg1: i32) -> (i32, i32, i32) {
    %c0_i32 = arith.constant 0 : i32
    %c0_i32_0 = arith.constant 0 : i32
    %c0_i32_1 = arith.constant 0 : i32
    return %arg0, %c0_i32, %c0_i32_0 : i32, i32, i32
  }
  func.func @transform_1(%arg0: i32, %arg1: i32) -> (i32, i32, i32) {
    %c0_i32 = arith.constant 0 : i32
    %c0_i32_0 = arith.constant 0 : i32
    %c0_i32_1 = arith.constant 0 : i32
    return %arg0, %c0_i32, %c0_i32_0 : i32, i32, i32
  }
  func.func @transform_2(%arg0: i32, %arg1: i32) -> (i32, i32) {
    %c0_i32 = arith.constant 0 : i32
    %c0_i32_0 = arith.constant 0 : i32
    %c0_i32_1 = arith.constant 0 : i32
    return %c0_i32, %c0_i32_0 : i32, i32
  }
  func.func @transform_3(%arg0: i32, %arg1: i32) -> (i32, i32) {
    %c0_i32 = arith.constant 0 : i32
    %c0_i32_0 = arith.constant 0 : i32
    %c0_i32_1 = arith.constant 0 : i32
    return %c0_i32, %c0_i32_0 : i32, i32
  }
  func.func @transform_4(%arg0: i32, %arg1: i32) -> (i32, i32) {
    %c0_i32 = arith.constant 0 : i32
    %c0_i32_0 = arith.constant 0 : i32
    %c0_i32_1 = arith.constant 0 : i32
    return %c0_i32, %c0_i32_0 : i32, i32
  }
  func.func @transform_5(%arg0: i32, %arg1: i32) -> (i32, i32) {
    %c0_i32 = arith.constant 0 : i32
    %c0_i32_0 = arith.constant 0 : i32
    %c0_i32_1 = arith.constant 0 : i32
    return %c0_i32, %c0_i32_0 : i32, i32
  }
  func.func @transform_6(%arg0: i32, %arg1: i32) -> (i32, i32, i32) {
    %c0_i32 = arith.constant 0 : i32
    %c0_i32_0 = arith.constant 0 : i32
    %c0_i32_1 = arith.constant 0 : i32
    %c0_i32_2 = arith.constant 0 : i32
    return %c0_i32, %c0_i32_0, %c0_i32_1 : i32, i32, i32
  }
  func.func @transform_7(%arg0: i32, %arg1: i32) -> (i32, i32) {
    %c0_i32 = arith.constant 0 : i32
    %c0_i32_0 = arith.constant 0 : i32
    %c0_i32_1 = arith.constant 0 : i32
    return %c0_i32, %c0_i32_0 : i32, i32
  }
  func.func @transform_8(%arg0: i32, %arg1: i32) -> (i32, i32) {
    %c0_i32 = arith.constant 0 : i32
    %c0_i32_0 = arith.constant 0 : i32
    %c0_i32_1 = arith.constant 0 : i32
    return %c0_i32, %c0_i32_0 : i32, i32
  }
  func.func @transform_9(%arg0: i32, %arg1: i32) -> (i32, i32) {
    %c0_i32 = arith.constant 0 : i32
    %c0_i32_0 = arith.constant 0 : i32
    %c0_i32_1 = arith.constant 0 : i32
    return %c0_i32, %c0_i32_0 : i32, i32
  }
  func.func @transform_10(%arg0: i32, %arg1: i32) -> (i32, i32) {
    %c0_i32 = arith.constant 0 : i32
    %c0_i32_0 = arith.constant 0 : i32
    %c0_i32_1 = arith.constant 0 : i32
    return %c0_i32, %c0_i32_0 : i32, i32
  }
  func.func @transform_11(%arg0: i32, %arg1: i32) -> (i32, i32) {
    %c0_i32 = arith.constant 0 : i32
    %c0_i32_0 = arith.constant 0 : i32
    %c0_i32_1 = arith.constant 0 : i32
    return %c0_i32, %c0_i32_0 : i32, i32
  }
  func.func @transform_12(%arg0: i32, %arg1: i32) -> (i32, i32) {
    %c0_i32 = arith.constant 0 : i32
    %c0_i32_0 = arith.constant 0 : i32
    %c0_i32_1 = arith.constant 0 : i32
    return %c0_i32, %c0_i32_0 : i32, i32
  }
  func.func @transform_13(%arg0: i32, %arg1: i32) -> (i32, i32) {
    %c0_i32 = arith.constant 0 : i32
    %c0_i32_0 = arith.constant 0 : i32
    %c0_i32_1 = arith.constant 0 : i32
    return %c0_i32, %c0_i32_0 : i32, i32
  }
  func.func @transform_14(%arg0: i32, %arg1: i32) -> (i32, i32, i32) {
    %c0_i32 = arith.constant 0 : i32
    %c0_i32_0 = arith.constant 0 : i32
    return %arg0, %arg1, %c0_i32 : i32, i32, i32
  }
}

module attributes {stable_mosaic.version = 11 : i64} {
  func.func @encoder_kernel(%arg0: i32, %arg1: i32, %arg2: memref<1x8x32xf32, #tpu.memory_space<vmem>>, %arg3: memref<1x1x8xf32, #tpu.memory_space<vmem>>, %arg4: memref<1x32xf32, #tpu.memory_space<vmem>>, %arg5: memref<1x32xf32, #tpu.memory_space<vmem>>, %arg6: memref<32x96xbf16, #tpu.memory_space<vmem>>, %arg7: memref<1x96xf32, #tpu.memory_space<vmem>>, %arg8: memref<4x8x32xbf16, #tpu.memory_space<vmem>>, %arg9: memref<1x32xf32, #tpu.memory_space<vmem>>, %arg10: memref<1x32xf32, #tpu.memory_space<vmem>>, %arg11: memref<1x32xf32, #tpu.memory_space<vmem>>, %arg12: memref<32x64xbf16, #tpu.memory_space<vmem>>, %arg13: memref<1x64xf32, #tpu.memory_space<vmem>>, %arg14: memref<64x32xbf16, #tpu.memory_space<vmem>>, %arg15: memref<1x32xf32, #tpu.memory_space<vmem>>, %arg16: memref<1x8x32xf32, #tpu.memory_space<vmem>>, %arg17: memref<8x32xf32, #tpu.memory_space<vmem>>, %arg18: memref<4x8x8xbf16, #tpu.memory_space<vmem>>, %arg19: memref<4x8x8xbf16, #tpu.memory_space<vmem>>, %arg20: memref<4x8x8xbf16, #tpu.memory_space<vmem>>) attributes {dimension_semantics = [#tpu.dimension_semantics<parallel>, #tpu.dimension_semantics<arbitrary>], iteration_bounds = array<i64: 2, 1>, scalar_prefetch = 0 : i64, scratch_operands = 4 : i64, tpu.core_type = #tpu.core_type<tc>, window_params = [{transform_indices = @transform_0, window_bounds = array<i64: 1, 8, 32>}, {transform_indices = @transform_1, window_bounds = array<i64: 1, 1, 8>}, {pipeline_mode = #tpu.pipeline_mode<synchronous>, transform_indices = @transform_2, window_bounds = array<i64: 1, 32>}, {pipeline_mode = #tpu.pipeline_mode<synchronous>, transform_indices = @transform_3, window_bounds = array<i64: 1, 32>}, {pipeline_mode = #tpu.pipeline_mode<synchronous>, transform_indices = @transform_4, window_bounds = array<i64: 32, 96>}, {pipeline_mode = #tpu.pipeline_mode<synchronous>, transform_indices = @transform_5, window_bounds = array<i64: 1, 96>}, {pipeline_mode = #tpu.pipeline_mode<synchronous>, transform_indices = @transform_6, window_bounds = array<i64: 4, 8, 32>}, {pipeline_mode = #tpu.pipeline_mode<synchronous>, transform_indices = @transform_7, window_bounds = array<i64: 1, 32>}, {pipeline_mode = #tpu.pipeline_mode<synchronous>, transform_indices = @transform_8, window_bounds = array<i64: 1, 32>}, {pipeline_mode = #tpu.pipeline_mode<synchronous>, transform_indices = @transform_9, window_bounds = array<i64: 1, 32>}, {pipeline_mode = #tpu.pipeline_mode<synchronous>, transform_indices = @transform_10, window_bounds = array<i64: 32, 64>}, {pipeline_mode = #tpu.pipeline_mode<synchronous>, transform_indices = @transform_11, window_bounds = array<i64: 1, 64>}, {pipeline_mode = #tpu.pipeline_mode<synchronous>, transform_indices = @transform_12, window_bounds = array<i64: 64, 32>}, {pipeline_mode = #tpu.pipeline_mode<synchronous>, transform_indices = @transform_13, window_bounds = array<i64: 1, 32>}, {transform_indices = @transform_14, window_bounds = array<i64: 1, 8, 32>}]} {
    %c0_i32 = arith.constant 0 : i32
    %0 = arith.cmpi eq, %arg1, %c0_i32 : i32
    %1 = arith.extui %0 : i1 to i32
    %c0_i32_0 = arith.constant 0 : i32
    %2 = arith.cmpi ne, %1, %c0_i32_0 : i32
    scf.if %2 {
      %c0_46 = arith.constant 0 : index
      %c0_47 = arith.constant 0 : index
      %c0_48 = arith.constant 0 : index
      %81 = vector.load %arg2[%c0_46, %c0_47, %c0_48] : memref<1x8x32xf32, #tpu.memory_space<vmem>>, vector<1x8x32xf32>
      %82 = vector.shape_cast %81 : vector<1x8x32xf32> to vector<8x32xf32>
      %c0_49 = arith.constant 0 : index
      %c0_50 = arith.constant 0 : index
      %83 = vector.load %arg4[%c0_49, %c0_50] : memref<1x32xf32, #tpu.memory_space<vmem>>, vector<1x32xf32>
      %c0_51 = arith.constant 0 : index
      %c0_52 = arith.constant 0 : index
      %84 = vector.load %arg5[%c0_51, %c0_52] : memref<1x32xf32, #tpu.memory_space<vmem>>, vector<1x32xf32>
      %cst_53 = arith.constant dense<0.000000e+00> : vector<8xf32>
      %85 = vector.multi_reduction <add>, %82, %cst_53 [1] : vector<8x32xf32> to vector<8xf32>
      %86 = vector.shape_cast %85 : vector<8xf32> to vector<8x1xf32>
      %cst_54 = arith.constant 3.200000e+01 : f32
      %87 = vector.broadcast %cst_54 : f32 to vector<8x1xf32>
      %88 = arith.divf %86, %87 : vector<8x1xf32>
      %89 = vector.broadcast %88 : vector<8x1xf32> to vector<8x32xf32>
      %90 = arith.subf %82, %89 : vector<8x32xf32>
      %91 = arith.mulf %90, %90 : vector<8x32xf32>
      %cst_55 = arith.constant dense<0.000000e+00> : vector<8xf32>
      %92 = vector.multi_reduction <add>, %91, %cst_55 [1] : vector<8x32xf32> to vector<8xf32>
      %93 = vector.shape_cast %92 : vector<8xf32> to vector<8x1xf32>
      %cst_56 = arith.constant 3.200000e+01 : f32
      %94 = vector.broadcast %cst_56 : f32 to vector<8x1xf32>
      %95 = arith.divf %93, %94 : vector<8x1xf32>
      %96 = vector.broadcast %88 : vector<8x1xf32> to vector<8x32xf32>
      %97 = arith.subf %82, %96 : vector<8x32xf32>
      %cst_57 = arith.constant 9.99999974E-6 : f32
      %98 = vector.broadcast %cst_57 : f32 to vector<8x1xf32>
      %99 = arith.addf %95, %98 : vector<8x1xf32>
      %100 = math.rsqrt %99 : vector<8x1xf32>
      %101 = vector.broadcast %100 : vector<8x1xf32> to vector<8x32xf32>
      %102 = arith.mulf %97, %101 : vector<8x32xf32>
      %103 = vector.broadcast %83 : vector<1x32xf32> to vector<8x32xf32>
      %104 = arith.mulf %102, %103 : vector<8x32xf32>
      %105 = vector.broadcast %84 : vector<1x32xf32> to vector<8x32xf32>
      %106 = arith.addf %104, %105 : vector<8x32xf32>
      %c0_58 = arith.constant 0 : index
      %c0_59 = arith.constant 0 : index
      %107 = vector.load %arg17[%c0_58, %c0_59] : memref<8x32xf32, #tpu.memory_space<vmem>>, vector<8x32xf32>
      tpu.vector_store %arg17[%c0_58, %c0_59], %106 {strides = array<i32>} : memref<8x32xf32, #tpu.memory_space<vmem>>, vector<8x32xf32>,
      %108 = arith.truncf %106 : vector<8x32xf32> to vector<8x32xbf16>
      %c0_60 = arith.constant 0 : index
      %c0_61 = arith.constant 0 : index
      %109 = vector.load %arg6[%c0_60, %c0_61] : memref<32x96xbf16, #tpu.memory_space<vmem>>, vector<32x96xbf16>
      %cst_62 = arith.constant dense<0.000000e+00> : vector<8x96xf32>
      %110 = tpu.matmul %108, %109, %cst_62 {dimension_numbers = #tpu.dot_dimension_numbers<[1], [0], [0], [1], [0, 0, 1, 1], [], []>} : vector<8x32xbf16>, vector<32x96xbf16>, vector<8x96xf32> -> vector<8x96xf32>
      %c0_63 = arith.constant 0 : index
      %c0_64 = arith.constant 0 : index
      %111 = vector.load %arg7[%c0_63, %c0_64] : memref<1x96xf32, #tpu.memory_space<vmem>>, vector<1x96xf32>
      %112 = vector.broadcast %111 : vector<1x96xf32> to vector<8x96xf32>
      %113 = arith.addf %110, %112 : vector<8x96xf32>
      %114 = vector.extract_strided_slice %113 {offsets = [0, 0], sizes = [8, 8], strides = [1, 1]} : vector<8x96xf32> to vector<8x8xf32>
      %115 = arith.truncf %114 : vector<8x8xf32> to vector<8x8xbf16>
      %c0_65 = arith.constant 0 : index
      %c0_66 = arith.constant 0 : index
      %c0_67 = arith.constant 0 : index
      %116 = vector.load %arg18[%c0_65, %c0_66, %c0_67] : memref<4x8x8xbf16, #tpu.memory_space<vmem>>, vector<1x8x8xbf16>
      %117 = vector.shape_cast %116 : vector<1x8x8xbf16> to vector<8x8xbf16>
      %118 = vector.shape_cast %115 : vector<8x8xbf16> to vector<1x8x8xbf16>
      tpu.vector_store %arg18[%c0_65, %c0_66, %c0_67], %118 {strides = array<i32>} : memref<4x8x8xbf16, #tpu.memory_space<vmem>>, vector<1x8x8xbf16>,
      %119 = vector.extract_strided_slice %113 {offsets = [0, 32], sizes = [8, 8], strides = [1, 1]} : vector<8x96xf32> to vector<8x8xf32>
      %120 = tpu.transpose %119, [1, 0] : vector<8x8xf32> -> vector<8x8xf32>
      %121 = arith.truncf %120 : vector<8x8xf32> to vector<8x8xbf16>
      %c0_68 = arith.constant 0 : index
      %c0_69 = arith.constant 0 : index
      %c0_70 = arith.constant 0 : index
      %122 = vector.load %arg19[%c0_68, %c0_69, %c0_70] : memref<4x8x8xbf16, #tpu.memory_space<vmem>>, vector<1x8x8xbf16>
      %123 = vector.shape_cast %122 : vector<1x8x8xbf16> to vector<8x8xbf16>
      %124 = vector.shape_cast %121 : vector<8x8xbf16> to vector<1x8x8xbf16>
      tpu.vector_store %arg19[%c0_68, %c0_69, %c0_70], %124 {strides = array<i32>} : memref<4x8x8xbf16, #tpu.memory_space<vmem>>, vector<1x8x8xbf16>,
      %125 = vector.extract_strided_slice %113 {offsets = [0, 64], sizes = [8, 8], strides = [1, 1]} : vector<8x96xf32> to vector<8x8xf32>
      %126 = arith.truncf %125 : vector<8x8xf32> to vector<8x8xbf16>
      %c0_71 = arith.constant 0 : index
      %c0_72 = arith.constant 0 : index
      %c0_73 = arith.constant 0 : index
      %127 = vector.load %arg20[%c0_71, %c0_72, %c0_73] : memref<4x8x8xbf16, #tpu.memory_space<vmem>>, vector<1x8x8xbf16>
      %128 = vector.shape_cast %127 : vector<1x8x8xbf16> to vector<8x8xbf16>
      %129 = vector.shape_cast %126 : vector<8x8xbf16> to vector<1x8x8xbf16>
      tpu.vector_store %arg20[%c0_71, %c0_72, %c0_73], %129 {strides = array<i32>} : memref<4x8x8xbf16, #tpu.memory_space<vmem>>, vector<1x8x8xbf16>,
      %130 = vector.extract_strided_slice %113 {offsets = [0, 8], sizes = [8, 8], strides = [1, 1]} : vector<8x96xf32> to vector<8x8xf32>
      %131 = arith.truncf %130 : vector<8x8xf32> to vector<8x8xbf16>
      %c1 = arith.constant 1 : index
      %c0_74 = arith.constant 0 : index
      %c0_75 = arith.constant 0 : index
      %132 = vector.load %arg18[%c1, %c0_74, %c0_75] : memref<4x8x8xbf16, #tpu.memory_space<vmem>>, vector<1x8x8xbf16>
      %133 = vector.shape_cast %132 : vector<1x8x8xbf16> to vector<8x8xbf16>
      %134 = vector.shape_cast %131 : vector<8x8xbf16> to vector<1x8x8xbf16>
      tpu.vector_store %arg18[%c1, %c0_74, %c0_75], %134 {strides = array<i32>} : memref<4x8x8xbf16, #tpu.memory_space<vmem>>, vector<1x8x8xbf16>,
      %135 = vector.extract_strided_slice %113 {offsets = [0, 40], sizes = [8, 8], strides = [1, 1]} : vector<8x96xf32> to vector<8x8xf32>
      %136 = tpu.transpose %135, [1, 0] : vector<8x8xf32> -> vector<8x8xf32>
      %137 = arith.truncf %136 : vector<8x8xf32> to vector<8x8xbf16>
      %c1_76 = arith.constant 1 : index
      %c0_77 = arith.constant 0 : index
      %c0_78 = arith.constant 0 : index
      %138 = vector.load %arg19[%c1_76, %c0_77, %c0_78] : memref<4x8x8xbf16, #tpu.memory_space<vmem>>, vector<1x8x8xbf16>
      %139 = vector.shape_cast %138 : vector<1x8x8xbf16> to vector<8x8xbf16>
      %140 = vector.shape_cast %137 : vector<8x8xbf16> to vector<1x8x8xbf16>
      tpu.vector_store %arg19[%c1_76, %c0_77, %c0_78], %140 {strides = array<i32>} : memref<4x8x8xbf16, #tpu.memory_space<vmem>>, vector<1x8x8xbf16>,
      %141 = vector.extract_strided_slice %113 {offsets = [0, 72], sizes = [8, 8], strides = [1, 1]} : vector<8x96xf32> to vector<8x8xf32>
      %142 = arith.truncf %141 : vector<8x8xf32> to vector<8x8xbf16>
      %c1_79 = arith.constant 1 : index
      %c0_80 = arith.constant 0 : index
      %c0_81 = arith.constant 0 : index
      %143 = vector.load %arg20[%c1_79, %c0_80, %c0_81] : memref<4x8x8xbf16, #tpu.memory_space<vmem>>, vector<1x8x8xbf16>
      %144 = vector.shape_cast %143 : vector<1x8x8xbf16> to vector<8x8xbf16>
      %145 = vector.shape_cast %142 : vector<8x8xbf16> to vector<1x8x8xbf16>
      tpu.vector_store %arg20[%c1_79, %c0_80, %c0_81], %145 {strides = array<i32>} : memref<4x8x8xbf16, #tpu.memory_space<vmem>>, vector<1x8x8xbf16>,
      %146 = vector.extract_strided_slice %113 {offsets = [0, 16], sizes = [8, 8], strides = [1, 1]} : vector<8x96xf32> to vector<8x8xf32>
      %147 = arith.truncf %146 : vector<8x8xf32> to vector<8x8xbf16>
      %c2 = arith.constant 2 : index
      %c0_82 = arith.constant 0 : index
      %c0_83 = arith.constant 0 : index
      %148 = vector.load %arg18[%c2, %c0_82, %c0_83] : memref<4x8x8xbf16, #tpu.memory_space<vmem>>, vector<1x8x8xbf16>
      %149 = vector.shape_cast %148 : vector<1x8x8xbf16> to vector<8x8xbf16>
      %150 = vector.shape_cast %147 : vector<8x8xbf16> to vector<1x8x8xbf16>
      tpu.vector_store %arg18[%c2, %c0_82, %c0_83], %150 {strides = array<i32>} : memref<4x8x8xbf16, #tpu.memory_space<vmem>>, vector<1x8x8xbf16>,
      %151 = vector.extract_strided_slice %113 {offsets = [0, 48], sizes = [8, 8], strides = [1, 1]} : vector<8x96xf32> to vector<8x8xf32>
      %152 = tpu.transpose %151, [1, 0] : vector<8x8xf32> -> vector<8x8xf32>
      %153 = arith.truncf %152 : vector<8x8xf32> to vector<8x8xbf16>
      %c2_84 = arith.constant 2 : index
      %c0_85 = arith.constant 0 : index
      %c0_86 = arith.constant 0 : index
      %154 = vector.load %arg19[%c2_84, %c0_85, %c0_86] : memref<4x8x8xbf16, #tpu.memory_space<vmem>>, vector<1x8x8xbf16>
      %155 = vector.shape_cast %154 : vector<1x8x8xbf16> to vector<8x8xbf16>
      %156 = vector.shape_cast %153 : vector<8x8xbf16> to vector<1x8x8xbf16>
      tpu.vector_store %arg19[%c2_84, %c0_85, %c0_86], %156 {strides = array<i32>} : memref<4x8x8xbf16, #tpu.memory_space<vmem>>, vector<1x8x8xbf16>,
      %157 = vector.extract_strided_slice %113 {offsets = [0, 80], sizes = [8, 8], strides = [1, 1]} : vector<8x96xf32> to vector<8x8xf32>
      %158 = arith.truncf %157 : vector<8x8xf32> to vector<8x8xbf16>
      %c2_87 = arith.constant 2 : index
      %c0_88 = arith.constant 0 : index
      %c0_89 = arith.constant 0 : index
      %159 = vector.load %arg20[%c2_87, %c0_88, %c0_89] : memref<4x8x8xbf16, #tpu.memory_space<vmem>>, vector<1x8x8xbf16>
      %160 = vector.shape_cast %159 : vector<1x8x8xbf16> to vector<8x8xbf16>
      %161 = vector.shape_cast %158 : vector<8x8xbf16> to vector<1x8x8xbf16>
      tpu.vector_store %arg20[%c2_87, %c0_88, %c0_89], %161 {strides = array<i32>} : memref<4x8x8xbf16, #tpu.memory_space<vmem>>, vector<1x8x8xbf16>,
      %162 = vector.extract_strided_slice %113 {offsets = [0, 24], sizes = [8, 8], strides = [1, 1]} : vector<8x96xf32> to vector<8x8xf32>
      %163 = arith.truncf %162 : vector<8x8xf32> to vector<8x8xbf16>
      %c3 = arith.constant 3 : index
      %c0_90 = arith.constant 0 : index
      %c0_91 = arith.constant 0 : index
      %164 = vector.load %arg18[%c3, %c0_90, %c0_91] : memref<4x8x8xbf16, #tpu.memory_space<vmem>>, vector<1x8x8xbf16>
      %165 = vector.shape_cast %164 : vector<1x8x8xbf16> to vector<8x8xbf16>
      %166 = vector.shape_cast %163 : vector<8x8xbf16> to vector<1x8x8xbf16>
      tpu.vector_store %arg18[%c3, %c0_90, %c0_91], %166 {strides = array<i32>} : memref<4x8x8xbf16, #tpu.memory_space<vmem>>, vector<1x8x8xbf16>,
      %167 = vector.extract_strided_slice %113 {offsets = [0, 56], sizes = [8, 8], strides = [1, 1]} : vector<8x96xf32> to vector<8x8xf32>
      %168 = tpu.transpose %167, [1, 0] : vector<8x8xf32> -> vector<8x8xf32>
      %169 = arith.truncf %168 : vector<8x8xf32> to vector<8x8xbf16>
      %c3_92 = arith.constant 3 : index
      %c0_93 = arith.constant 0 : index
      %c0_94 = arith.constant 0 : index
      %170 = vector.load %arg19[%c3_92, %c0_93, %c0_94] : memref<4x8x8xbf16, #tpu.memory_space<vmem>>, vector<1x8x8xbf16>
      %171 = vector.shape_cast %170 : vector<1x8x8xbf16> to vector<8x8xbf16>
      %172 = vector.shape_cast %169 : vector<8x8xbf16> to vector<1x8x8xbf16>
      tpu.vector_store %arg19[%c3_92, %c0_93, %c0_94], %172 {strides = array<i32>} : memref<4x8x8xbf16, #tpu.memory_space<vmem>>, vector<1x8x8xbf16>,
      %173 = vector.extract_strided_slice %113 {offsets = [0, 88], sizes = [8, 8], strides = [1, 1]} : vector<8x96xf32> to vector<8x8xf32>
      %174 = arith.truncf %173 : vector<8x8xf32> to vector<8x8xbf16>
      %c3_95 = arith.constant 3 : index
      %c0_96 = arith.constant 0 : index
      %c0_97 = arith.constant 0 : index
      %175 = vector.load %arg20[%c3_95, %c0_96, %c0_97] : memref<4x8x8xbf16, #tpu.memory_space<vmem>>, vector<1x8x8xbf16>
      %176 = vector.shape_cast %175 : vector<1x8x8xbf16> to vector<8x8xbf16>
      %177 = vector.shape_cast %174 : vector<8x8xbf16> to vector<1x8x8xbf16>
      tpu.vector_store %arg20[%c3_95, %c0_96, %c0_97], %177 {strides = array<i32>} : memref<4x8x8xbf16, #tpu.memory_space<vmem>>, vector<1x8x8xbf16>,
    } else {
    }
    %c8_i32 = arith.constant 8 : i32
    %3 = arith.muli %arg1, %c8_i32 : i32
    %4 = tpu.assume_multiple %3, 8 : i32
    %c0 = arith.constant 0 : index
    %c0_1 = arith.constant 0 : index
    %c0_2 = arith.constant 0 : index
    %5 = vector.load %arg3[%c0, %c0_1, %c0_2] : memref<1x1x8xf32, #tpu.memory_space<vmem>>, vector<1x1x8xf32>
    %6 = vector.shape_cast %5 : vector<1x1x8xf32> to vector<8xf32>
    %cst = arith.constant 0.000000e+00 : f32
    %7 = vector.broadcast %cst : f32 to vector<8x32xf32>
    %c0_3 = arith.constant 0 : index
    %8 = arith.index_cast %4 : i32 to index
    %c0_4 = arith.constant 0 : index
    %9 = vector.load %arg18[%c0_3, %8, %c0_4] : memref<4x8x8xbf16, #tpu.memory_space<vmem>>, vector<4x8x8xbf16>
    %c0_5 = arith.constant 0 : index
    %c0_6 = arith.constant 0 : index
    %c0_7 = arith.constant 0 : index
    %10 = vector.load %arg19[%c0_5, %c0_6, %c0_7] : memref<4x8x8xbf16, #tpu.memory_space<vmem>>, vector<4x8x8xbf16>
    %c0_8 = arith.constant 0 : index
    %c0_9 = arith.constant 0 : index
    %c0_10 = arith.constant 0 : index
    %11 = vector.load %arg20[%c0_8, %c0_9, %c0_10] : memref<4x8x8xbf16, #tpu.memory_space<vmem>>, vector<4x8x8xbf16>
    "tpu.trace_start"() <{level = 10 : i32, message = "gqd,gds->gqs"}> : () -> ()
    %cst_11 = arith.constant dense<0.000000e+00> : vector<4x8x8xf32>
    %12 = tpu.matmul %9, %10, %cst_11 {dimension_numbers = #tpu.dot_dimension_numbers<[2], [1], [1], [2], [0, 0, 0, 1, 1, 2], [0], [0]>} : vector<4x8x8xbf16>, vector<4x8x8xbf16>, vector<4x8x8xf32> -> vector<4x8x8xf32>
    "tpu.trace_stop"() : () -> ()
    %13 = vector.shape_cast %6 : vector<8xf32> to vector<1x1x8xf32>
    %14 = vector.broadcast %13 : vector<1x1x8xf32> to vector<4x8x8xf32>
    %15 = arith.addf %12, %14 : vector<4x8x8xf32>
    %cst_12 = arith.constant dense<0xFF800000> : vector<4x8xf32>
    %16 = vector.multi_reduction <maximumf>, %15, %cst_12 [2] : vector<4x8x8xf32> to vector<4x8xf32>
    %17 = vector.shape_cast %16 : vector<4x8xf32> to vector<4x8x1xf32>
    %18 = vector.broadcast %17 : vector<4x8x1xf32> to vector<4x8x8xf32>
    %19 = arith.subf %15, %18 : vector<4x8x8xf32>
    %20 = math.exp %19 : vector<4x8x8xf32>
    %cst_13 = arith.constant dense<0.000000e+00> : vector<4x8xf32>
    %21 = vector.multi_reduction <add>, %20, %cst_13 [2] : vector<4x8x8xf32> to vector<4x8xf32>
    %22 = vector.shape_cast %21 : vector<4x8xf32> to vector<4x8x1xf32>
    %23 = arith.truncf %20 : vector<4x8x8xf32> to vector<4x8x8xbf16>
    "tpu.trace_start"() <{level = 10 : i32, message = "gqs,gsd->gqd"}> : () -> ()
    %cst_14 = arith.constant dense<0.000000e+00> : vector<4x8x8xf32>
    %24 = tpu.matmul %23, %11, %cst_14 {dimension_numbers = #tpu.dot_dimension_numbers<[2], [1], [1], [2], [0, 0, 0, 1, 1, 2], [0], [0]>} : vector<4x8x8xbf16>, vector<4x8x8xbf16>, vector<4x8x8xf32> -> vector<4x8x8xf32>
    "tpu.trace_stop"() : () -> ()
    %25 = tpu.reciprocal %22 {approx = true} : vector<4x8x1xf32> -> vector<4x8x1xf32>
    %26 = vector.broadcast %25 : vector<4x8x1xf32> to vector<4x8x8xf32>
    %27 = arith.mulf %24, %26 : vector<4x8x8xf32>
    %c0_15 = arith.constant 0 : index
    %c0_16 = arith.constant 0 : index
    %c0_17 = arith.constant 0 : index
    %28 = vector.load %arg8[%c0_15, %c0_16, %c0_17] : memref<4x8x32xbf16, #tpu.memory_space<vmem>>, vector<4x8x32xbf16>
    %29 = arith.truncf %27 : vector<4x8x8xf32> to vector<4x8x8xbf16>
    "tpu.trace_start"() <{level = 10 : i32, message = "gqd,gdn->gqn"}> : () -> ()
    %cst_18 = arith.constant dense<0.000000e+00> : vector<4x8x32xf32>
    %30 = tpu.matmul %29, %28, %cst_18 {dimension_numbers = #tpu.dot_dimension_numbers<[2], [1], [1], [2], [0, 0, 0, 1, 1, 2], [0], [0]>} : vector<4x8x8xbf16>, vector<4x8x32xbf16>, vector<4x8x32xf32> -> vector<4x8x32xf32>
    "tpu.trace_stop"() : () -> ()
    %cst_19 = arith.constant dense<0.000000e+00> : vector<8x32xf32>
    %31 = vector.multi_reduction <add>, %30, %cst_19 [0] : vector<4x8x32xf32> to vector<8x32xf32>
    %32 = arith.addf %7, %31 : vector<8x32xf32>
    %c0_20 = arith.constant 0 : index
    %c0_21 = arith.constant 0 : index
    %33 = vector.load %arg9[%c0_20, %c0_21] : memref<1x32xf32, #tpu.memory_space<vmem>>, vector<1x32xf32>
    %34 = vector.broadcast %33 : vector<1x32xf32> to vector<8x32xf32>
    %35 = arith.addf %32, %34 : vector<8x32xf32>
    %36 = arith.index_cast %4 : i32 to index
    %c0_22 = arith.constant 0 : index
    %37 = vector.load %arg17[%36, %c0_22] : memref<8x32xf32, #tpu.memory_space<vmem>>, vector<8x32xf32>
    %38 = arith.addf %37, %35 : vector<8x32xf32>
    %c0_23 = arith.constant 0 : index
    %c0_24 = arith.constant 0 : index
    %39 = vector.load %arg10[%c0_23, %c0_24] : memref<1x32xf32, #tpu.memory_space<vmem>>, vector<1x32xf32>
    %c0_25 = arith.constant 0 : index
    %c0_26 = arith.constant 0 : index
    %40 = vector.load %arg11[%c0_25, %c0_26] : memref<1x32xf32, #tpu.memory_space<vmem>>, vector<1x32xf32>
    %cst_27 = arith.constant dense<0.000000e+00> : vector<8xf32>
    %41 = vector.multi_reduction <add>, %38, %cst_27 [1] : vector<8x32xf32> to vector<8xf32>
    %42 = vector.shape_cast %41 : vector<8xf32> to vector<8x1xf32>
    %cst_28 = arith.constant 3.200000e+01 : f32
    %43 = vector.broadcast %cst_28 : f32 to vector<8x1xf32>
    %44 = arith.divf %42, %43 : vector<8x1xf32>
    %45 = vector.broadcast %44 : vector<8x1xf32> to vector<8x32xf32>
    %46 = arith.subf %38, %45 : vector<8x32xf32>
    %47 = arith.mulf %46, %46 : vector<8x32xf32>
    %cst_29 = arith.constant dense<0.000000e+00> : vector<8xf32>
    %48 = vector.multi_reduction <add>, %47, %cst_29 [1] : vector<8x32xf32> to vector<8xf32>
    %49 = vector.shape_cast %48 : vector<8xf32> to vector<8x1xf32>
    %cst_30 = arith.constant 3.200000e+01 : f32
    %50 = vector.broadcast %cst_30 : f32 to vector<8x1xf32>
    %51 = arith.divf %49, %50 : vector<8x1xf32>
    %52 = vector.broadcast %44 : vector<8x1xf32> to vector<8x32xf32>
    %53 = arith.subf %38, %52 : vector<8x32xf32>
    %cst_31 = arith.constant 9.99999974E-6 : f32
    %54 = vector.broadcast %cst_31 : f32 to vector<8x1xf32>
    %55 = arith.addf %51, %54 : vector<8x1xf32>
    %56 = math.rsqrt %55 : vector<8x1xf32>
    %57 = vector.broadcast %56 : vector<8x1xf32> to vector<8x32xf32>
    %58 = arith.mulf %53, %57 : vector<8x32xf32>
    %59 = vector.broadcast %39 : vector<1x32xf32> to vector<8x32xf32>
    %60 = arith.mulf %58, %59 : vector<8x32xf32>
    %61 = vector.broadcast %40 : vector<1x32xf32> to vector<8x32xf32>
    %62 = arith.addf %60, %61 : vector<8x32xf32>
    %63 = arith.truncf %62 : vector<8x32xf32> to vector<8x32xbf16>
    %c0_32 = arith.constant 0 : index
    %c0_33 = arith.constant 0 : index
    %64 = vector.load %arg12[%c0_32, %c0_33] : memref<32x64xbf16, #tpu.memory_space<vmem>>, vector<32x64xbf16>
    %cst_34 = arith.constant dense<0.000000e+00> : vector<8x64xf32>
    %65 = tpu.matmul %63, %64, %cst_34 {dimension_numbers = #tpu.dot_dimension_numbers<[1], [0], [0], [1], [0, 0, 1, 1], [], []>} : vector<8x32xbf16>, vector<32x64xbf16>, vector<8x64xf32> -> vector<8x64xf32>
    %c0_35 = arith.constant 0 : index
    %c0_36 = arith.constant 0 : index
    %66 = vector.load %arg13[%c0_35, %c0_36] : memref<1x64xf32, #tpu.memory_space<vmem>>, vector<1x64xf32>
    %67 = vector.broadcast %66 : vector<1x64xf32> to vector<8x64xf32>
    %68 = arith.addf %65, %67 : vector<8x64xf32>
    %cst_37 = arith.constant 0.000000e+00 : f32
    %69 = vector.broadcast %cst_37 : f32 to vector<8x64xf32>
    %70 = arith.maximumf %68, %69 : vector<8x64xf32>
    %71 = arith.truncf %70 : vector<8x64xf32> to vector<8x64xbf16>
    %c0_38 = arith.constant 0 : index
    %c0_39 = arith.constant 0 : index
    %72 = vector.load %arg14[%c0_38, %c0_39] : memref<64x32xbf16, #tpu.memory_space<vmem>>, vector<64x32xbf16>
    %cst_40 = arith.constant dense<0.000000e+00> : vector<8x32xf32>
    %73 = tpu.matmul %71, %72, %cst_40 {dimension_numbers = #tpu.dot_dimension_numbers<[1], [0], [0], [1], [0, 0, 1, 1], [], []>} : vector<8x64xbf16>, vector<64x32xbf16>, vector<8x32xf32> -> vector<8x32xf32>
    %c0_41 = arith.constant 0 : index
    %c0_42 = arith.constant 0 : index
    %74 = vector.load %arg15[%c0_41, %c0_42] : memref<1x32xf32, #tpu.memory_space<vmem>>, vector<1x32xf32>
    %75 = vector.broadcast %74 : vector<1x32xf32> to vector<8x32xf32>
    %76 = arith.addf %73, %75 : vector<8x32xf32>
    %77 = arith.addf %62, %76 : vector<8x32xf32>
    %c0_43 = arith.constant 0 : index
    %c0_44 = arith.constant 0 : index
    %c0_45 = arith.constant 0 : index
    %78 = vector.load %arg16[%c0_43, %c0_44, %c0_45] : memref<1x8x32xf32, #tpu.memory_space<vmem>>, vector<1x8x32xf32>
    %79 = vector.shape_cast %78 : vector<1x8x32xf32> to vector<8x32xf32>
    %80 = vector.shape_cast %77 : vector<8x32xf32> to vector<1x8x32xf32>
    tpu.vector_store %arg16[%c0_43, %c0_44, %c0_45], %80 {strides = array<i32>} : memref<1x8x32xf32, #tpu.memory_space<vmem>>, vector<1x8x32xf32>,
    return
  }
  func.func @transform_0(%arg0: i32, %arg1: i32) -> (i32, i32, i32) {
    %c0_i32 = arith.constant 0 : i32
    %c0_i32_0 = arith.constant 0 : i32
    %c0_i32_1 = arith.constant 0 : i32
    return %arg0, %c0_i32, %c0_i32_0 : i32, i32, i32
  }
  func.func @transform_1(%arg0: i32, %arg1: i32) -> (i32, i32, i32) {
    %c0_i32 = arith.constant 0 : i32
    %c0_i32_0 = arith.constant 0 : i32
    %c0_i32_1 = arith.constant 0 : i32
    return %arg0, %c0_i32, %c0_i32_0 : i32, i32, i32
  }
  func.func @transform_2(%arg0: i32, %arg1: i32) -> (i32, i32) {
    %c0_i32 = arith.constant 0 : i32
    %c0_i32_0 = arith.constant 0 : i32
    %c0_i32_1 = arith.constant 0 : i32
    return %c0_i32, %c0_i32_0 : i32, i32
  }
  func.func @transform_3(%arg0: i32, %arg1: i32) -> (i32, i32) {
    %c0_i32 = arith.constant 0 : i32
    %c0_i32_0 = arith.constant 0 : i32
    %c0_i32_1 = arith.constant 0 : i32
    return %c0_i32, %c0_i32_0 : i32, i32
  }
  func.func @transform_4(%arg0: i32, %arg1: i32) -> (i32, i32) {
    %c0_i32 = arith.constant 0 : i32
    %c0_i32_0 = arith.constant 0 : i32
    %c0_i32_1 = arith.constant 0 : i32
    return %c0_i32, %c0_i32_0 : i32, i32
  }
  func.func @transform_5(%arg0: i32, %arg1: i32) -> (i32, i32) {
    %c0_i32 = arith.constant 0 : i32
    %c0_i32_0 = arith.constant 0 : i32
    %c0_i32_1 = arith.constant 0 : i32
    return %c0_i32, %c0_i32_0 : i32, i32
  }
  func.func @transform_6(%arg0: i32, %arg1: i32) -> (i32, i32, i32) {
    %c0_i32 = arith.constant 0 : i32
    %c0_i32_0 = arith.constant 0 : i32
    %c0_i32_1 = arith.constant 0 : i32
    %c0_i32_2 = arith.constant 0 : i32
    return %c0_i32, %c0_i32_0, %c0_i32_1 : i32, i32, i32
  }
  func.func @transform_7(%arg0: i32, %arg1: i32) -> (i32, i32) {
    %c0_i32 = arith.constant 0 : i32
    %c0_i32_0 = arith.constant 0 : i32
    %c0_i32_1 = arith.constant 0 : i32
    return %c0_i32, %c0_i32_0 : i32, i32
  }
  func.func @transform_8(%arg0: i32, %arg1: i32) -> (i32, i32) {
    %c0_i32 = arith.constant 0 : i32
    %c0_i32_0 = arith.constant 0 : i32
    %c0_i32_1 = arith.constant 0 : i32
    return %c0_i32, %c0_i32_0 : i32, i32
  }
  func.func @transform_9(%arg0: i32, %arg1: i32) -> (i32, i32) {
    %c0_i32 = arith.constant 0 : i32
    %c0_i32_0 = arith.constant 0 : i32
    %c0_i32_1 = arith.constant 0 : i32
    return %c0_i32, %c0_i32_0 : i32, i32
  }
  func.func @transform_10(%arg0: i32, %arg1: i32) -> (i32, i32) {
    %c0_i32 = arith.constant 0 : i32
    %c0_i32_0 = arith.constant 0 : i32
    %c0_i32_1 = arith.constant 0 : i32
    return %c0_i32, %c0_i32_0 : i32, i32
  }
  func.func @transform_11(%arg0: i32, %arg1: i32) -> (i32, i32) {
    %c0_i32 = arith.constant 0 : i32
    %c0_i32_0 = arith.constant 0 : i32
    %c0_i32_1 = arith.constant 0 : i32
    return %c0_i32, %c0_i32_0 : i32, i32
  }
  func.func @transform_12(%arg0: i32, %arg1: i32) -> (i32, i32) {
    %c0_i32 = arith.constant 0 : i32
    %c0_i32_0 = arith.constant 0 : i32
    %c0_i32_1 = arith.constant 0 : i32
    return %c0_i32, %c0_i32_0 : i32, i32
  }
  func.func @transform_13(%arg0: i32, %arg1: i32) -> (i32, i32) {
    %c0_i32 = arith.constant 0 : i32
    %c0_i32_0 = arith.constant 0 : i32
    %c0_i32_1 = arith.constant 0 : i32
    return %c0_i32, %c0_i32_0 : i32, i32
  }
  func.func @transform_14(%arg0: i32, %arg1: i32) -> (i32, i32, i32) {
    %c0_i32 = arith.constant 0 : i32
    %c0_i32_0 = arith.constant 0 : i32
    return %arg0, %arg1, %c0_i32 : i32, i32, i32
  }
}

</mosaic_0001>

<bundles_post_ra>
// kernel: tpu_custom_call.1
= control target key start
LH: loop header
LB: loop body
LE: loop exit
PB: predicated region body
PF: predicated region fallthrough
CT: control target
= control target key end

     0   :  { %s2999_s0 = inlined_call_operand.vmem [shape: f32[2,8,32], index: 0, kind: input, shape index: {}]   ;;  %s3000_s1 = inlined_call_operand.vmem [shape: f32[2,1,8], index: 1, kind: input, shape index: {}]   ;;  %s3001_s2 = inlined_call_operand.hbm [shape: f32[1,32], index: 2, kind: input, shape index: {}]   ;;  %s3002_s3 = inlined_call_operand.hbm [shape: f32[1,32], index: 3, kind: input, shape index: {}]   ;;  %s3003_s4 = inlined_call_operand.vmem [shape: bf16[32,96], index: 4, kind: input, shape index: {}]   ;;  %s3004_s5 = inlined_call_operand.hbm [shape: f32[1,96], index: 5, kind: input, shape index: {}]   ;;  %s3005_s6 = inlined_call_operand.vmem [shape: bf16[4,8,32], index: 6, kind: input, shape index: {}]   ;;  %s3006_s7 = inlined_call_operand.hbm [shape: f32[1,32], index: 7, kind: input, shape index: {}]   ;;  %s3007_s8 = inlined_call_operand.hbm [shape: f32[1,32], index: 8, kind: input, shape index: {}]   ;;  %s3008_s9 = inlined_call_operand.hbm [shape: f32[1,32], index: 9, kind: input, shape index: {}]   ;;  %s3009_s10 = inlined_call_operand.vmem [shape: bf16[32,64], index: 10, kind: input, shape index: {}]   ;;  %s3010_s11 = inlined_call_operand.vmem [shape: f32[1,64], index: 11, kind: input, shape index: {}]   ;;  %s3011_s12 = inlined_call_operand.vmem [shape: bf16[64,32], index: 12, kind: input, shape index: {}]   ;;  %s3012_s13 = inlined_call_operand.vmem [shape: f32[1,32], index: 13, kind: input, shape index: {}]   ;;  %s3013_s14 = inlined_call_operand.hbm [shape: f32[2,8,32], index: 14, kind: output, shape index: {}]  }
   0x1   :  { %3028 = sst [smem:[#allocation31_spill]] %s3002_s3 }
   0x2   :  { %3029 = sst [smem:[#allocation32_spill]] %s3012_s13 }
   0x3   :  { %3030 = sst [smem:[#allocation33_spill]] %s3013_s14 }
   0x4   :  { %19 = vsyncpa [#allocation7], 0 }
   0x5   :  { %20 = vsyncpa [#allocation10], 0 }
   0x6   :  { %21 = vsyncpa [#allocation13], 0 }
   0x7   :  { %22 = vsyncpa [#allocation16], 0 }
   0x8   :  { %23 = vsyncpa [#allocation8], 0 }
   0x9   :  { %25 = vsyncpa [#allocation8 + $0x1], 0  ;;  %s2566_s29 = smov 0   ;;  %s2568_s30 = smov 0  }
   0xa   :  { %s2570_s15 = smov 0   ;;  %s2572_s16 = smov 0  }
   0xb   :  { %s2574_s17 = smov 0   ;;  %s2576_s18 = smov 0  }
   0xc LB: > { %3031 = sst [smem:[#allocation23_spill]] %s2449_s29  ;;  %s1858_s19 = sadd.s32 4294967295, %s2469_s18   ;;  %s2469_s18 = sphi %s2576_s18, %s31_s18   ;;  %s2465_s17 = sphi %s2574_s17, %s3059_s17   ;;  %s2461_s16 = sphi %s2572_s16, %s3058_s16   ;;  %s2457_s15 = sphi %s2570_s15, %s3057_s15   ;;  %s2453_s30 = sphi %s2568_s30, %s3061_s30   ;;  %s2449_s29 = sphi %s2566_s29, %s3060_s29  }
   0xd   : > { %3032 = sst [smem:[#allocation24_spill]] %s2457_s15  ;;  %s1859_s20 = sadd.s32 4294967294, %s2469_s18  }
   0xe   : > { %3033 = sst [smem:[#allocation25_spill]] %s2465_s17  ;;  %s43_s21 = sadd.s32 1, %s2465_s17 }
   0xf   : > { %3034 = sst [smem:[#allocation26_spill]] %s2469_s18  ;;  %s356_s22 = sadd.s32 1, %s2457_s15 }
  0x10   : > { %p45_p0 = scmp.ge.s32.totalorder %s43_s21, 2  ;;  %p366_p1 = scmp.ne.s32.totalorder %s2457_s15, %s2453_s30 }
  0x11   : > { %p367_p2 = scmp.eq.s32.totalorder %s1858_s19, 1  ;;  %p372_p3 = scmp.ne.s32.totalorder %s2453_s30, %s2449_s29 }
  0x12   : > { %s3063_s21 = smov (%p45_p0, %s43_s21), 0  ;;  %p373_p5 = scmp.eq.s32.totalorder %s1859_s20, 1 }
  0x13   : > { %3035 = sst [smem:[#allocation27_spill]] %s3063_s21  ;;  %p2606_p4 = por %p367_p2, %p366_p1 }
  0x14   : > { %s351_s24 = ssub.s32 %s2465_s17, %s3063_s21  ;;  %p1860_p6 = scmp.ge.s32.totalorder %s2469_s18, 1 }
  0x15   : > { %s3036_s23 = scalar_select %p2606_p4, 1, 0 }
  0x16   : > { %p354_p7 = scmp.eq.s32.totalorder %s351_s24, 0  ;;  %p2613_p8 = por %p373_p5, %p372_p3 }
  0x17   : > { %3037 = sst [smem:[#allocation28_spill]] %s3036_s23  ;;  %p380_p9 = scmp.lt.s32.totalorder %s2469_s18, 3 }
  0x18   : > { %s3038_s25 = scalar_select %p2613_p8, 1, 0 }
  0x19   : > { %s2619_s26 = scalar_select %p354_p7, %s2457_s15, %s356_s22  }
  0x1a   : > { %3039 = sst [smem:[#allocation29_spill]] %s3038_s25  ;;  %p2621_p10 = pnand %p1860_p6, %p380_p9 }
  0x1b   : > { %3040 = sst [smem:[#allocation30_spill]] %s2619_s26  ;;  %p2625_p11 = scmp.eq.s32.totalorder %s1858_s19, 0 }
  0x1c   : > { %s3041_s27 = scalar_select %p2621_p10, 1, 0 }
  0x1d   : > { %s3042_s28 = scalar_select %p2625_p11, 1, 0 }
  0x1e   : > { %p2076_p12 = pneg %p2621_p10  ;;  %s2471_s20 = smov [#allocation9]  }
  0x1f   : > { %s404_s24 = sshll.u32 %s2471_s20, 4  ;;  %s2472_s21 = smov [#allocation12]   ;;  %s405_s24 = int_to_ptr.vmem [resolvable:$true] %s404_s24 }
  0x20   : > { %s432_s17 = sshll.u32 %s2472_s21, 4  ;;  %p2633_p13 = pnand %p2625_p11, %p2076_p12  ;;  %s2637_s17 = int_to_ptr.vmem [resolvable:$true] %s432_s17 }
  0x21   : > { %s3044_s3 = sld [smem:[#allocation31_spill]] }
  0x22   : > { %p2647_p1 = pneg %p2633_p13 }
  0x27   : > { %s2207_s15 = scalar_lea.hbm %s3044_s3, 16 }
  0x28   : > { %p2208_p0 = scmp.ne.s32.totalorder %s3044_s3, %s2207_s15  ;;  %p2214_p5 = scmp.lt.u32.totalorder %s2207_s15, %s3044_s3 }
  0x2a   : > { %p2210_p2 = pnand %p2647_p1, %p2208_p0 }
  0x2c   : > { %p2211_p3 = pneg %p2210_p2 }
  0x2e   : > { %p2216_p6 = pnand %p2214_p5, %p2211_p3 }
  0x30   : > { %2219 = shalt.err (!%p2216_p6)
}
  0x31   : > { %s2220_s26 = scalar_lea.vmem %s405_s24, 16  ;;  %s2227_s29 = scalar_lea.vmem %s405_s24, 32 }
  0x32   : > { %p2221_p7 = scmp.ne.s32.totalorder %s405_s24, %s2220_s26  ;;  %p2228_p8 = scmp.lt.s32.totalorder %s405_s24, %s405_s24 }
  0x33   : > { %p2229_p4 = scmp.lt.s32.totalorder %s2227_s29, %s2220_s26 }
  0x34   : > { %p2223_p9 = pnand %p2221_p7, %p2647_p1 }
  0x35   : > { %p2230_p11 = por %p2229_p4, %p2228_p8 }
  0x36   : > { %p2224_p12 = pneg %p2223_p9 }
  0x38   : > { %p2231_p10 = pnand %p2230_p11, %p2224_p12 }
  0x3a   : > { %2234 = shalt.err (!%p2231_p10)
}
  0x3b   : > { %2082 = dma.hbm_to_vmem [thread:$0]  (!%p2633_p13), %s3044_s3, 16, %s405_s24, [#allocation10]  }
  0x3c   : > { %s2235_s21 = scalar_lea.hbm %s3006_s7, 16 }
  0x3d   : > { %p2236_p0 = scmp.ne.s32.totalorder %s3006_s7, %s2235_s21  ;;  %p2242_p8 = scmp.lt.u32.totalorder %s2235_s21, %s3006_s7 }
  0x3f   : > { %p2238_p2 = pnand %p2236_p0, %p2647_p1 }
  0x41   : > { %p2239_p4 = pneg %p2238_p2 }
  0x43   : > { %p2244_p10 = pnand %p2242_p8, %p2239_p4 }
  0x45   : > { %2247 = shalt.err (!%p2244_p10)
}
  0x46   : > { %s2248_s24 = scalar_lea.vmem %s2637_s17, 16  ;;  %s2255_s14 = scalar_lea.vmem %s2637_s17, 32 }
  0x47   : > { %p2249_p11 = scmp.ne.s32.totalorder %s2637_s17, %s2248_s24  ;;  %p2256_p6 = scmp.lt.s32.totalorder %s2637_s17, %s2637_s17 }
  0x48   : > { %p2257_p7 = scmp.lt.s32.totalorder %s2255_s14, %s2248_s24 }
  0x49   : > { %p2251_p3 = pnand %p2249_p11, %p2647_p1 }
  0x4a   : > { %p2258_p9 = por %p2257_p7, %p2256_p6 }
  0x4b   : > { %p2252_p5 = pneg %p2251_p3 }
  0x4d   : > { %p2259_p12 = pnand %p2258_p9, %p2252_p5 }
  0x4f   : > { %2262 = shalt.err (!%p2259_p12)
}
  0x50   : > { %2088 = dma.hbm_to_vmem [thread:$0]  (!%p2633_p13), %s3006_s7, 16, %s2637_s17, [#allocation13]  }
  0x51   : > { %s2473_s19 = smov [#allocation6]   ;;  %s2474_s18 = smov [#allocation11]  }
  0x52   : > { %s393_s15 = sshll.u32 %s2473_s19, 4  ;;  %s418_s21 = sshll.u32 %s2474_s18, 4  ;;  %s394_s15 = int_to_ptr.vmem [resolvable:$true] %s393_s15  ;;  %s419_s21 = int_to_ptr.vmem [resolvable:$true] %s418_s21 }
  0x53   : > { %s2263_s24 = scalar_lea.hbm %s3001_s2, 16 }
  0x54   : > { %p2264_p0 = scmp.ne.s32.totalorder %s3001_s2, %s2263_s24  ;;  %p2270_p8 = scmp.lt.u32.totalorder %s2263_s24, %s3001_s2 }
  0x56   : > { %p2266_p2 = pnand %p2264_p0, %p2647_p1 }
  0x58   : > { %p2267_p4 = pneg %p2266_p2 }
  0x5a   : > { %p2272_p10 = pnand %p2270_p8, %p2267_p4 }
  0x5c   : > { %2275 = shalt.err (!%p2272_p10)
}
  0x5d   : > { %s2276_s17 = scalar_lea.vmem %s394_s15, 16  ;;  %s2283_s25 = scalar_lea.vmem %s394_s15, 32 }
  0x5e   : > { %p2277_p11 = scmp.ne.s32.totalorder %s394_s15, %s2276_s17  ;;  %p2284_p6 = scmp.lt.s32.totalorder %s394_s15, %s394_s15 }
  0x5f   : > { %p2285_p7 = scmp.lt.s32.totalorder %s2283_s25, %s2276_s17 }
  0x60   : > { %p2279_p3 = pnand %p2277_p11, %p2647_p1 }
  0x61   : > { %p2286_p9 = por %p2285_p7, %p2284_p6 }
  0x62   : > { %p2280_p5 = pneg %p2279_p3 }
  0x64   : > { %p2287_p12 = pnand %p2286_p9, %p2280_p5 }
  0x66   : > { %2290 = shalt.err (!%p2287_p12)
}
  0x67   : > { %2079 = dma.hbm_to_vmem [thread:$0]  (!%p2633_p13), %s3001_s2, 16, %s394_s15, [#allocation7]  }
  0x68   : > { %s2291_s26 = scalar_lea.hbm %s3004_s5, 16 }
  0x69   : > { %p2292_p0 = scmp.ne.s32.totalorder %s3004_s5, %s2291_s26  ;;  %p2298_p8 = scmp.lt.u32.totalorder %s2291_s26, %s3004_s5 }
  0x6b   : > { %p2294_p2 = pnand %p2292_p0, %p2647_p1 }
  0x6d   : > { %p2295_p4 = pneg %p2294_p2 }
  0x6f   : > { %p2300_p10 = pnand %p2298_p8, %p2295_p4 }
  0x71   : > { %2303 = shalt.err (!%p2300_p10)
}
  0x72   : > { %s2304_s17 = scalar_lea.vmem %s419_s21, 16  ;;  %s2311_s15 = scalar_lea.vmem %s419_s21, 32 }
  0x73   : > { %p2305_p11 = scmp.ne.s32.totalorder %s419_s21, %s2304_s17  ;;  %p2312_p6 = scmp.lt.s32.totalorder %s419_s21, %s419_s21 }
  0x74   : > { %p2313_p7 = scmp.lt.s32.totalorder %s2311_s15, %s2304_s17 }
  0x75   : > { %p2307_p3 = pnand %p2305_p11, %p2647_p1 }
  0x76   : > { %p2314_p9 = por %p2313_p7, %p2312_p6 }
  0x77   : > { %p2308_p5 = pneg %p2307_p3 }
  0x79   : > { %p2315_p12 = pnand %p2314_p9, %p2308_p5 }
  0x7b   : > { %2318 = shalt.err (!%p2315_p12)
}
  0x7c   : > { %2085 = dma.hbm_to_vmem [thread:$0]  (!%p2633_p13), %s3004_s5, 16, %s419_s21, [#allocation10]  }
  0x7d   : > { %s2475_s19 = smov [#allocation14]   ;;  %s2476_s18 = smov [#allocation15]  }
  0x7e   : > { %s443_s13 = sshll.u32 %s2475_s19, 4  ;;  %s454_s26 = sshll.u32 %s2476_s18, 4  ;;  %s444_s13 = int_to_ptr.vmem [resolvable:$true] %s443_s13  ;;  %s455_s26 = int_to_ptr.vmem [resolvable:$true] %s454_s26 }
  0x7f   : > { %s2319_s14 = scalar_lea.hbm %s3007_s8, 16 }
  0x80   : > { %p2320_p0 = scmp.ne.s32.totalorder %s3007_s8, %s2319_s14  ;;  %p2326_p8 = scmp.lt.u32.totalorder %s2319_s14, %s3007_s8 }
  0x82   : > { %p2322_p2 = pnand %p2320_p0, %p2647_p1 }
  0x84   : > { %p2323_p4 = pneg %p2322_p2 }
  0x86   : > { %p2328_p10 = pnand %p2326_p8, %p2323_p4 }
  0x88   : > { %2331 = shalt.err (!%p2328_p10)
}
  0x89   : > { %s2332_s21 = scalar_lea.vmem %s444_s13, 16  ;;  %s2339_s3 = scalar_lea.vmem %s444_s13, 32 }
  0x8a   : > { %p2333_p11 = scmp.ne.s32.totalorder %s444_s13, %s2332_s21  ;;  %p2340_p6 = scmp.lt.s32.totalorder %s444_s13, %s444_s13 }
  0x8b   : > { %p2341_p7 = scmp.lt.s32.totalorder %s2339_s3, %s2332_s21 }
  0x8c   : > { %p2335_p3 = pnand %p2333_p11, %p2647_p1 }
  0x8d   : > { %p2342_p9 = por %p2341_p7, %p2340_p6 }
  0x8e   : > { %p2336_p5 = pneg %p2335_p3 }
  0x90   : > { %p2343_p12 = pnand %p2342_p9, %p2336_p5 }
  0x92   : > { %2346 = shalt.err (!%p2343_p12)
}
  0x93   : > { %2091 = dma.hbm_to_vmem [thread:$0]  (!%p2633_p13), %s3007_s8, 16, %s444_s13, [#allocation13]  }
  0x94   : > { %s2347_s14 = scalar_lea.hbm %s3008_s9, 16 }
  0x95   : > { %p2348_p0 = scmp.ne.s32.totalorder %s3008_s9, %s2347_s14  ;;  %p2354_p8 = scmp.lt.u32.totalorder %s2347_s14, %s3008_s9 }
  0x97   : > { %p2350_p2 = pnand %p2348_p0, %p2647_p1 }
  0x99   : > { %p2351_p4 = pneg %p2350_p2 }
  0x9b   : > { %p2356_p10 = pnand %p2354_p8, %p2351_p4 }
  0x9d   : > { %2359 = shalt.err (!%p2356_p10)
}
  0x9e   : > { %s2360_s21 = scalar_lea.vmem %s455_s26, 16  ;;  %s2367_s13 = scalar_lea.vmem %s455_s26, 32 }
  0x9f   : > { %p2361_p11 = scmp.ne.s32.totalorder %s455_s26, %s2360_s21  ;;  %p2368_p6 = scmp.lt.s32.totalorder %s455_s26, %s455_s26 }
  0xa0   : > { %p2369_p7 = scmp.lt.s32.totalorder %s2367_s13, %s2360_s21 }
  0xa1   : > { %p2363_p3 = pnand %p2361_p11, %p2647_p1 }
  0xa2   : > { %p2370_p9 = por %p2369_p7, %p2368_p6 }
  0xa3   : > { %p2364_p5 = pneg %p2363_p3 }
  0xa5   : > { %p2371_p12 = pnand %p2370_p9, %p2364_p5 }
  0xa7   : > { %2374 = shalt.err (!%p2371_p12)
}
  0xa8   : > { %2094 = dma.hbm_to_vmem [thread:$0]  (!%p2633_p13), %s3008_s9, 16, %s455_s26, [#allocation16]  }
  0xa9   : > { %p3046_p0 = scmp.ne.s32.totalorder %s3041_s27, 0 }
  0xaa   : > { %p3047_p2 = scmp.ne.s32.totalorder (!%p3046_p0), %s3042_s28, 0 }
  0xab   : > { %492 = sbr.rel (%p3046_p0) target bundleno = 2608 (0xa30), region = 76 }
  0xb2   : > { %2428 = dma.done.wait (%p3047_p2), [#allocation7], 16  }
  0xb3   : > { %2430 = vsyncadd (%p3047_p2), [#allocation7], 4294967280 }
  0xb4   : > { %2432 = dma.done.wait (%p3047_p2), [#allocation10], 32  }
  0xb5   : > { %2434 = vsyncadd (%p3047_p2), [#allocation10], 4294967264 }
  0xb6   : > { %2436 = dma.done.wait (%p3047_p2), [#allocation13], 32  }
  0xb7   : > { %2438 = vsyncadd (%p3047_p2), [#allocation13], 4294967264 }
  0xb8   : > { %2440 = dma.done.wait (%p3047_p2), [#allocation16], 16  }
  0xb9   : > { %2442 = vsyncadd (%p3047_p2), [#allocation16], 4294967280  ;;  %p560_p13 = scmp.lt.s32.totalorder %s2461_s16, 1  ;;  %vm575_vm0 = vcmask 261120   ;;  %v2179_v7 = vld [vmem:[%s3003_s4] sm:$0xff]   ;;  %v2477_v8 = vmov 0.0  }
  0xba   : > { %1950 = vmatprep.subr.bf16.mxu0 %v2477_v8  ;;  %1964 = vmatprep.subr.bf16.mxu1 %v2477_v8  ;;  %v2180_v9 = vld [vmem:[%s3003_s4 + $0x8] sm:$0xff]   ;;  %vm2478_vm1 = vmmov 0   ;;  %v1877_v14 = vld [vmem:[#allocation6] ss:$0 sm:$0xff]  ;;  %v1878_v16 = vld [vmem:[#allocation9] ss:$0 sm:$0xff] }
  0xbb   : > { %s2779_s27 = scalar_select %p560_p13, %s2461_s16, 1  ;;  %1951 = vmatpush3.bf16.msra.mxu0 %v2179_v7  ;;  %1954 = vmatprep.mubr.msk.bf16.mxu0 %vm2478_vm1, %v2477_v8  ;;  %v1879_v20 = vld [vmem:[#allocation11] ss:$0 sm:$0xff]  ;;  %vm673_vm2 = vcmask 60416   ;;  %vm892_vm3 = vcmask 1043456   ;;  %vm888_vm4 = vcmask 64512  }
  0xbc   : > { %1952 = vmatprep.subr.bf16.mxu0 %v2477_v8  ;;  %1966 = vmatprep.mubr.msk.bf16.mxu1 %vm2478_vm1, %v2477_v8  ;;  %s2479_s23 = smov 80   ;;  %s2480_s17 = smov 96   ;;  %vm1656_vm5 = vcmask 523264  }
  0xbd   : > { %s1876_s22 = sshll.u32 %s2779_s27, 3  ;;  %s2481_s15 = smov 88  }
  0xbe   : > { %s563_s18 = scalar_lea.vmem %s2999_s0, %s1876_s22  ;;  %s2482_s25 = smov 72  }
  0xbf   : > { %v572_v0 = vld [vmem:[%s563_s18] sm:$0xff]  ;;  %1953 = vmatpush3.bf16.msra.mxu0 %v2180_v9  ;;  %s2483_s21 = smov 120   ;;  %s2484_s13 = smov 112  }
  0xc0   : > { %v576_v1 = vsel %vm575_vm0, %v572_v0, 0.0  ;;  %1958 = vmatprep.subr.bf16.mxu0 %v2477_v8  ;;  %s2485_s3 = smov 104   ;;  %s2486_s19 = smov 64  }
  0xc1   : > { %577 = vadd.xlane.f32.xlu0 %v576_v1  ;;  %s566_s26 = scalar_lea.vmem %s3000_s1, %s2779_s27  ;;  %s2487_s27 = smov 48  }
  0xc2   : > { %v1884_v57 = vld [vmem:[%s566_s26] ss:$0 sm:$0xff]  ;;  %s2488_s18 = smov 56   ;;  %s2489_s28 = smov 40  }
  0xc3   : > { %s1911_s22 = sshll.u32 %s2461_s16, 7  ;;  %s2490_s14 = smov [#allocation17]  }
 0x14e   : > { %v578_v2 = vpop.xlane.xlu0 %577 }
 0x14f   : > { %v580_v3 = vmul.f32 0.03125, %v578_v2 }
 0x151   : > { %v581_v4 = vsub.f32 %v572_v0, %v580_v3 }
 0x153   : > { %v582_v5 = vmul.f32 %v581_v4, %v581_v4 }
 0x155   : > { %v583_v6 = vsel %vm575_vm0, %v582_v5, 0.0 }
 0x156   : > { %584 = vadd.xlane.f32.xlu0 %v583_v6 }
 0x1e3   : > { %v585_v10 = vpop.xlane.xlu0 %584 }
 0x1e4   : > { %v586_v11 = vmul.f32 0.03125, %v585_v10 }
 0x1e6   : > { %v587_v12 = vadd.f32 1e-05, %v586_v11 }
 0x1e8   : > { %2187 = vrsqrt.f32 %v587_v12 }
 0x1f2   : > { %v2188_v13 = vpop.eup %2187 }
 0x1f3   : > { %v589_v15 = vmul.f32 %v2188_v13, %v581_v4 }
 0x1f5   : > { %v596_v17 = vmul.f32 %v1877_v14, %v589_v15 }
 0x1f7   : > { %v603_v18 = vadd.f32 %v1878_v16, %v596_v17 }
 0x1f9   : > { %604 = vst.msk [vmem:[#allocation2] sm:$0xff] %vm575_vm0, %v603_v18  ;;  %v605_v19 = vpack.c.bf16 %v603_v18, %v603_v18 }
 0x1fb   : > { %1955 = vmatmul.mubr.msk.bf16.vlgmr.msra.gmra.mrb[0].mxu0 %vm575_vm0, %v605_v19 }
 0x1fc   : > { %1960 = vmatprep.mubr.msk.bf16.mxu0 %vm2478_vm1, %v2477_v8 }
 0x2ce   : > { %v666_v21 = vpop.f32.mrb[0].mxu0 }
 0x2cf   : > { %v667_v22 = vadd.f32 %v1879_v20, %v666_v21  ;;  %v1956_v23 = vpop.f32.mrb[1].mxu0 }
 0x2d0   : > { %v669_v24 = vpop.f32.mrb[2].mxu0 }
 0x2d1   : > { %v2805_v25 = vpack.c.bf16 %v667_v22, %v667_v22  ;;  %773 = vrot.lane.b32.xlu0 %v667_v22, %s2479_s23  ;;  %676 = vrot.lane.b32.xlu1 %v667_v22, %s2480_s17  ;;  %v1957_v26 = vpop.f32.mrb[3].mxu0  ;;  %s2379_s23 = sshll.u32 %s2490_s14, 4  ;;  %s2380_s23 = int_to_ptr.vmem [resolvable:$false] %s2379_s23 }
 0x2d2   : > { %s2381_s17 = scalar_lea.vmem %s2380_s23, 256 }
 0x2d3   : > { %674 = vst.msk [vmem:[#allocation3] sm:$0xf] %vm673_vm2, %v2805_v25 }
 0x2d5   : > { %725 = vrot.lane.b32.xlu1 %v667_v22, %s2481_s15  ;;  %s557_s15 = sand.u32 1, %s2453_s30  }
 0x2d6   : > { %s1703_s16 = scalar_lea.sflag [#allocation8], %s557_s15 }
 0x2d9   : > { %821 = vrot.lane.b32.xlu1 %v667_v22, %s2482_s25  ;;  %s1875_s25 = sshll.u32 %s557_s15, 3 }
 0x2da   : > { %v870_v44 = vld [vmem:[#allocation3] sm:$0xf]  ;;  %s559_s20 = scalar_lea.vmem [#allocation17], %s1875_s25 }
 0x2db   : > { %s1717_s26 = sshll.u32 %s559_s20, 4  ;;  %s2953_s26 = int_to_ptr.vmem [resolvable:$true] %s1717_s26 }
 0x2dc   : > { %s2375_s24 = scalar_lea.vmem %s2953_s26, 128  ;;  %p2382_p11 = scmp.lt.s32.totalorder %s2953_s26, %s2380_s23 }
 0x2dd   : > { %720 = vrot.lane.b32.xlu1 %v2805_v25, %s2483_s21  ;;  %p2376_p1 = scmp.ne.s32.totalorder %s2953_s26, %s2375_s24  ;;  %p2383_p3 = scmp.lt.s32.totalorder %s2381_s17, %s2375_s24 }
 0x2df   : > { %p2384_p5 = por %p2383_p3, %p2382_p11 }
 0x2e1   : > { %768 = vrot.lane.b32.xlu1 %v2805_v25, %s2484_s13 }
 0x2e5   : > { %816 = vrot.lane.b32.xlu1 %v2805_v25, %s2485_s3  ;;  %s3048_s3 = sld [smem:[#allocation32_spill]] }
 0x343   : > { %v677_v27 = vpop.permute.xlu1 %676  ;;  %v774_v29 = vpop.permute.xlu0 %773 }
 0x344   : > { %679 = vxpose.xlu1.b32.start.end [1/1] (short) (narrow) %v677_v27, 8 }
 0x347   : > { %v726_v28 = vpop.permute.xlu1 %725 }
 0x348   : > { %728 = vxpose.xlu0.b32.start.end [1/1] (short) (narrow) %v726_v28, 8 }
 0x34b   : > { %v822_v30 = vpop.permute.xlu1 %821 }
 0x34c   : > { %776 = vxpose.xlu0.b32.start.end [1/1] (short) (narrow) %v774_v29, 8 }
 0x34f   : > { %v721_v31 = vpop.permute.xlu1 %720 }
 0x350   : > { %724 = vst.msk [vmem:[#allocation3 + $0x4] sm:$0xf] %vm673_vm2, %v721_v31  ;;  %824 = vxpose.xlu0.b32.start.end [1/1] (short) (narrow) %v822_v30, 8 }
 0x353   : > { %v769_v32 = vpop.permute.xlu1 %768 }
 0x354   : > { %772 = vst.msk [vmem:[#allocation3 + $0x8] sm:$0xf] %vm673_vm2, %v769_v32 }
 0x357   : > { %v817_v33 = vpop.permute.xlu1 %816  ;;  %v871_v48 = vld [vmem:[#allocation3 + $0x4] sm:$0xf] }
 0x358   : > { %820 = vst.msk [vmem:[#allocation3 + $0xc] sm:$0xf] %vm673_vm2, %v817_v33 }
 0x35b   : > { %v872_v51 = vld [vmem:[#allocation3 + $0x8] sm:$0xf] }
 0x35f   : > { %v873_v56 = vld [vmem:[#allocation3 + $0xc] sm:$0xf] }
 0x362   : > { %716 = vrot.lane.b32.xlu1 %v2805_v25, %s2486_s19  ;;  %s3049_s19 = sld [smem:[#allocation28_spill]] }
 0x368   : > { %p3051_p4 = scmp.ne.s32.totalorder %s3049_s19, 0 }
 0x36a   : > { %p2377_p8 = pnand %p2376_p1, %p3051_p4 }
 0x36c   : > { %p2378_p10 = pneg %p2377_p8 }
 0x36e   : > { %p2385_p6 = pnand %p2384_p5, %p2378_p10 }
 0x3c4   : > { %v695_v34 = vpop.trf.xlu1 }
 0x3c5   : > { %v711_v35 = vpack.c.bf16 %v695_v34, %v695_v34 }
 0x3c7   : > { %712 = vst.msk [vmem:[#allocation4] sm:$0xf] %vm673_vm2, %v711_v35 }
 0x3c8   : > { %v744_v36 = vpop.trf.xlu0 }
 0x3c9   : > { %v760_v37 = vpack.c.bf16 %v744_v36, %v744_v36 }
 0x3cb   : > { %762 = vst.msk [vmem:[#allocation4 + $0x4] sm:$0xf] %vm673_vm2, %v760_v37 }
 0x3cc   : > { %v792_v38 = vpop.trf.xlu0 }
 0x3cd   : > { %v808_v39 = vpack.c.bf16 %v792_v38, %v792_v38 }
 0x3ce   : > { %v874_v40 = vld [vmem:[#allocation4] sm:$0xf] }
 0x3cf   : > { %810 = vst.msk [vmem:[#allocation4 + $0x8] sm:$0xf] %vm673_vm2, %v808_v39  ;;  %v894_v41 = vsel %vm892_vm3, %v874_v40, 0 }
 0x3d0   : > { %v840_v42 = vpop.trf.xlu0  ;;  %1959 = vmatpush3.bf16.msra.mxu0 %v894_v41 }
 0x3d1   : > { %v856_v43 = vpack.c.bf16 %v840_v42, %v840_v42  ;;  %1970 = vmatprep.subr.bf16.mxu0 %v2477_v8 }
 0x3d2   : > { %v875_v45 = vld [vmem:[#allocation4 + $0x4] sm:$0xf] }
 0x3d3   : > { %858 = vst.msk [vmem:[#allocation4 + $0xc] sm:$0xf] %vm673_vm2, %v856_v43  ;;  %1961 = vmatmul.mubr.msk.bf16.vlgmr.msra.gmra.mrb[4].mxu0 %vm888_vm4, %v870_v44  ;;  %v940_v46 = vsel %vm892_vm3, %v875_v45, 0 }
 0x3d4   : > { %1965 = vmatpush3.bf16.msra.mxu1 %v940_v46  ;;  %v717_v47 = vpop.permute.xlu1 %716  ;;  %1972 = vmatprep.mubr.msk.bf16.mxu0 %vm2478_vm1, %v2477_v8 }
 0x3d5   : > { %719 = vst.msk [vmem:[#allocation5] sm:$0xf] %vm673_vm2, %v717_v47  ;;  %1976 = vmatprep.subr.bf16.mxu1 %v2477_v8 }
 0x3d6   : > { %v876_v49 = vld [vmem:[#allocation4 + $0x8] sm:$0xf] }
 0x3d7   : > { %1967 = vmatmul.mubr.msk.bf16.vlgmr.msra.gmra.mrb[0].mxu1 %vm888_vm4, %v871_v48  ;;  %v986_v50 = vsel %vm892_vm3, %v876_v49, 0 }
 0x3d8   : > { %1971 = vmatpush3.bf16.msra.mxu0 %v986_v50  ;;  %1978 = vmatprep.mubr.msk.bf16.mxu1 %vm2478_vm1, %v2477_v8 }
 0x3d9   : > { %1982 = vmatprep.subr.bf16.mxu0 %v2477_v8 }
 0x3da   : > { %v877_v52 = vld [vmem:[#allocation4 + $0xc] sm:$0xf] }
 0x3db   : > { %1973 = vmatmul.mubr.msk.bf16.vlgmr.msra.gmra.mrb[8].mxu0 %vm888_vm4, %v872_v51  ;;  %v1032_v53 = vsel %vm892_vm3, %v877_v52, 0  ;;  %v1306_v52 = vld [vmem:[%s3005_s6] sm:$0xf] }
 0x3dc   : > { %1977 = vmatpush3.bf16.msra.mxu1 %v1032_v53  ;;  %v878_v54 = vld [vmem:[#allocation5] sm:$0xf]  ;;  %1984 = vmatprep.mubr.msk.bf16.mxu0 %vm2478_vm1, %v2477_v8  ;;  %v1318_v53 = vsel %vm892_vm3, %v1306_v52, 0 }
 0x3dd   : > { %v1118_v55 = vsel %vm892_vm3, %v878_v54, 0  ;;  %1988 = vmatprep.subr.bf16.mxu1 %v2477_v8  ;;  %v1307_v54 = vld [vmem:[%s3005_s6 + $0x4] sm:$0xf] }
 0x3de   : > { %1983 = vmatpush3.bf16.msra.mxu0 %v1118_v55  ;;  %v1364_v55 = vsel %vm892_vm3, %v1307_v54, 0  ;;  %v1516_v54 = vld [vmem:[#allocation2] sm:$0xff] }
 0x3df   : > { %1979 = vmatmul.mubr.msk.bf16.vlgmr.msra.gmra.mrb[4].mxu1 %vm888_vm4, %v873_v56  ;;  %1994 = vmatprep.subr.bf16.mxu0 %v2477_v8 }
 0x3e0   : > { %1990 = vmatprep.mubr.msk.bf16.mxu1 %vm2478_vm1, %v2477_v8 }
 0x4a6   : > { %v930_v58 = vpop.f32.mrb[4].mxu0 }
 0x4a7   : > { %v931_v59 = vadd.f32 %v1884_v57, %v930_v58  ;;  %v1962_v60 = vpop.f32.mrb[5].mxu0 }
 0x4a8   : > { %v933_v61 = vpop.f32.mrb[6].mxu0  ;;  %v1308_v60 = vld [vmem:[%s3005_s6 + $0x8] sm:$0xf] }
 0x4a9   : > { %v1963_v62 = vpop.f32.mrb[7].mxu0  ;;  %v1074_v63 = vsel %vm888_vm4, %v931_v59, -inf }
 0x4aa   : > { %v976_v0 = vpop.f32.mrb[0].mxu1  ;;  %1075 = vmax.xlane.f32.xlu1 %v1074_v63 }
 0x4ab   : > { %v977_v1 = vadd.f32 %v1884_v57, %v976_v0  ;;  %v1968_v2 = vpop.f32.mrb[1].mxu1 }
 0x4ac   : > { %v979_v3 = vpop.f32.mrb[2].mxu1  ;;  %v1410_v2 = vsel %vm892_vm3, %v1308_v60, 0 }
 0x4ad   : > { %v1969_v4 = vpop.f32.mrb[3].mxu1  ;;  %v1077_v5 = vsel %vm888_vm4, %v977_v1, -inf }
 0x4ae   : > { %1078 = vmax.xlane.f32.xlu0 %v1077_v5  ;;  %v1022_v6 = vpop.f32.mrb[8].mxu0  ;;  %v1309_v5 = vld [vmem:[%s3005_s6 + $0xc] sm:$0xf] }
 0x4af   : > { %v1974_v7 = vpop.f32.mrb[9].mxu0  ;;  %v1023_v15 = vadd.f32 %v1884_v57, %v1022_v6 }
 0x4b0   : > { %v1025_v9 = vpop.f32.mrb[10].mxu0 }
 0x4b1   : > { %v1975_v10 = vpop.f32.mrb[11].mxu0  ;;  %v1080_v17 = vsel %vm888_vm4, %v1023_v15, -inf }
 0x4b2   : > { %v1068_v11 = vpop.f32.mrb[4].mxu1 }
 0x4b3   : > { %v1980_v12 = vpop.f32.mrb[5].mxu1  ;;  %v1069_v16 = vadd.f32 %v1884_v57, %v1068_v11 }
 0x4b4   : > { %v1071_v13 = vpop.f32.mrb[6].mxu1  ;;  %v1456_v12 = vsel %vm892_vm3, %v1309_v5, 0 }
 0x4b5   : > { %v1981_v14 = vpop.f32.mrb[7].mxu1  ;;  %v1083_v18 = vsel %vm888_vm4, %v1069_v16, -inf }
 0x4bb   : > { %811 = vrot.lane.b32.xlu1 %v2805_v25, %s2487_s27 }
 0x4c4   : > { %763 = vrot.lane.b32.xlu0 %v2805_v25, %s2488_s18 }
 0x4df   : > { %1081 = vmax.xlane.f32.xlu1 %v1080_v17 }
 0x4e3   : > { %1084 = vmax.xlane.f32.xlu1 %v1083_v18 }
 0x4f4   : > { %859 = vrot.lane.b32.xlu1 %v2805_v25, %s2489_s28  ;;  %s3050_s28 = sld [smem:[#allocation33_spill]] }
 0x4fa   : > { %s2951_s29 = scalar_lea.hbm %s3050_s28, %s1911_s22 }
 0x537   : > { %v1076_v19 = vpop.xlane.xlu1 %1075 }
 0x538   : > { %v1086_v20 = vsub.f32 %v931_v59, %v1076_v19 }
 0x53a   : > { %v1090_v21 = vmul.f32 1.442695, %v1086_v20 }
 0x53b   : > { %v1079_v22 = vpop.xlane.xlu0 %1078  ;;  %v812_v23 = vpop.permute.xlu1 %811 }
 0x53c   : > { %2189 = vpow2.f32 %v1090_v21  ;;  %v1087_v24 = vsub.f32 %v977_v1, %v1079_v22  ;;  %815 = vst.msk [vmem:[#allocation5 + $0x8] sm:$0xf] %vm673_vm2, %v812_v23 }
 0x53e   : > { %v1092_v26 = vmul.f32 1.442695, %v1087_v24 }
 0x53f   : > { %v764_v27 = vpop.permute.xlu0 %763 }
 0x540   : > { %2191 = vpow2.f32 %v1092_v26  ;;  %767 = vst.msk [vmem:[#allocation5 + $0x4] sm:$0xf] %vm673_vm2, %v764_v27 }
 0x543   : > { %v880_v29 = vld [vmem:[#allocation5 + $0x8] sm:$0xf] }
 0x544   : > { %v1210_v33 = vsel %vm892_vm3, %v880_v29, 0 }
 0x546   : > { %v2190_v28 = vpop.eup %2189 }
 0x547   : > { %v1098_v30 = vsel %vm888_vm4, %v2190_v28, 0.0  ;;  %v1110_v31 = vpack.c.bf16 %v2190_v28, %v2190_v28  ;;  %v879_v25 = vld [vmem:[#allocation5 + $0x4] sm:$0xf] }
 0x548   : > { %1099 = vadd.xlane.f32.xlu0 %v1098_v30  ;;  %v1164_v32 = vsel %vm892_vm3, %v879_v25, 0 }
 0x549   : > { %1985 = vmatmul.mubr.msk.bf16.vlgmr.msra.gmra.mrb[12].mxu0 %vm888_vm4, %v1110_v31  ;;  %1989 = vmatpush3.bf16.msra.mxu1 %v1164_v32 }
 0x54a   : > { %v2192_v34 = vpop.eup %2191  ;;  %1995 = vmatpush3.bf16.msra.mxu0 %v1210_v33  ;;  %1996 = vmatprep.mubr.msk.bf16.mxu0 %vm2478_vm1, %v2477_v8 }
 0x54b   : > { %v1101_v35 = vsel %vm888_vm4, %v2192_v34, 0.0  ;;  %v1111_v36 = vpack.c.bf16 %v2192_v34, %v2192_v34  ;;  %2000 = vmatprep.subr.bf16.mxu1 %v2477_v8  ;;  %2006 = vmatprep.subr.bf16.mxu0 %v2477_v8 }
 0x54c   : > { %1102 = vadd.xlane.f32.xlu1 %v1101_v35 }
 0x54d   : > { %1991 = vmatmul.mubr.msk.bf16.vlgmr.msra.gmra.mrb[8].mxu1 %vm888_vm4, %v1111_v36 }
 0x54e   : > { %2002 = vmatprep.mubr.msk.bf16.mxu1 %vm2478_vm1, %v2477_v8 }
 0x56c   : > { %v1082_v37 = vpop.xlane.xlu1 %1081 }
 0x56d   : > { %v1088_v38 = vsub.f32 %v1023_v15, %v1082_v37 }
 0x56f   : > { %v1094_v39 = vmul.f32 1.442695, %v1088_v38 }
 0x570   : > { %v1085_v40 = vpop.xlane.xlu1 %1084 }
 0x571   : > { %2193 = vpow2.f32 %v1094_v39  ;;  %v1089_v41 = vsub.f32 %v1069_v16, %v1085_v40 }
 0x573   : > { %v1096_v42 = vmul.f32 1.442695, %v1089_v41 }
 0x574   : > { %v860_v43 = vpop.permute.xlu1 %859 }
 0x575   : > { %2195 = vpow2.f32 %v1096_v42  ;;  %863 = vst.msk [vmem:[#allocation5 + $0xc] sm:$0xf] %vm673_vm2, %v860_v43 }
 0x57b   : > { %v2194_v44 = vpop.eup %2193 }
 0x57c   : > { %v1104_v45 = vsel %vm888_vm4, %v2194_v44, 0.0  ;;  %v1112_v46 = vpack.c.bf16 %v2194_v44, %v2194_v44  ;;  %v881_v47 = vld [vmem:[#allocation5 + $0xc] sm:$0xf] }
 0x57d   : > { %1105 = vadd.xlane.f32.xlu0 %v1104_v45  ;;  %v1256_v48 = vsel %vm892_vm3, %v881_v47, 0 }
 0x57e   : > { %1997 = vmatmul.mubr.msk.bf16.vlgmr.msra.gmra.mrb[16].mxu0 %vm888_vm4, %v1112_v46  ;;  %2001 = vmatpush3.bf16.msra.mxu1 %v1256_v48  ;;  %v1897_v48 = vld [vmem:[#allocation12] ss:$0 sm:$0xff] }
 0x57f   : > { %v2196_v49 = vpop.eup %2195  ;;  %2008 = vmatprep.mubr.msk.bf16.mxu0 %vm2478_vm1, %v2477_v8  ;;  %2012 = vmatprep.subr.bf16.mxu1 %v2477_v8 }
 0x580   : > { %v1107_v50 = vsel %vm888_vm4, %v2196_v49, 0.0  ;;  %v1113_v51 = vpack.c.bf16 %v2196_v49, %v2196_v49  ;;  %2007 = vmatpush3.bf16.msra.mxu0 %v1318_v53 }
 0x581   : > { %1108 = vadd.xlane.f32.xlu0 %v1107_v50  ;;  %2018 = vmatprep.subr.bf16.mxu0 %v2477_v8 }
 0x582   : > { %2003 = vmatmul.mubr.msk.bf16.vlgmr.msra.gmra.mrb[12].mxu1 %vm888_vm4, %v1113_v51 }
 0x583   : > { %2014 = vmatprep.mubr.msk.bf16.mxu1 %vm2478_vm1, %v2477_v8  ;;  %2013 = vmatpush3.bf16.msra.mxu1 %v1364_v55 }
 0x584   : > { %2024 = vmatprep.subr.bf16.mxu1 %v2477_v8 }
 0x5d5   : > { %v1100_v56 = vpop.xlane.xlu0 %1099 }
 0x5d6   : > { %2197 = vrcp.f32 %v1100_v56 }
 0x5d9   : > { %v1103_v57 = vpop.xlane.xlu1 %1102 }
 0x5da   : > { %2199 = vrcp.f32 %v1103_v57 }
 0x5e0   : > { %v2198_v58 = vpop.eup %2197 }
 0x5e4   : > { %v2200_v3 = vpop.eup %2199 }
 0x60a   : > { %v1106_v13 = vpop.xlane.xlu0 %1105 }
 0x60b   : > { %2201 = vrcp.f32 %v1106_v13  ;;  %v2185_v13 = vld [vmem:[%s3011_s12 + $0x10] sm:$0xff]  }
 0x60e   : > { %v1109_v14 = vpop.xlane.xlu0 %1108 }
 0x60f   : > { %2203 = vrcp.f32 %v1109_v14  ;;  %v2186_v14 = vld [vmem:[%s3011_s12 + $0x18] sm:$0xff]  }
 0x615   : > { %v2202_v15 = vpop.eup %2201 }
 0x619   : > { %v2204_v22 = vpop.eup %2203 }
 0x61c   : > { %v1154_v59 = vpop.f32.mrb[12].mxu0 }
 0x61d   : > { %v1302_v61 = vmul.f32 %v2198_v58, %v1154_v59  ;;  %v1986_v62 = vpop.f32.mrb[13].mxu0 }
 0x61e   : > { %v1157_v63 = vpop.f32.mrb[14].mxu0  ;;  %v2181_v62 = vld [vmem:[%s3009_s10] sm:$0xff]  }
 0x61f   : > { %v1310_v0 = vpack.c.bf16 %v1302_v61, %v1302_v61  ;;  %v1987_v1 = vpop.f32.mrb[15].mxu0  ;;  %v2182_v63 = vld [vmem:[%s3009_s10 + $0x8] sm:$0xff]  }
 0x620   : > { %v1200_v4 = vpop.f32.mrb[8].mxu1  ;;  %v2184_v1 = vld [vmem:[%s3011_s12 + $0x8] sm:$0xff]  }
 0x621   : > { %v1303_v6 = vmul.f32 %v2200_v3, %v1200_v4  ;;  %v1992_v7 = vpop.f32.mrb[9].mxu1  ;;  %2009 = vmatmul.mubr.msk.bf16.vlgmr.msra.gmra.mrb[20].mxu0 %vm888_vm4, %v1310_v0  ;;  %v2183_v0 = vld [vmem:[%s3011_s12] sm:$0xff]  }
 0x622   : > { %v1203_v9 = vpop.f32.mrb[10].mxu1  ;;  %2019 = vmatpush3.bf16.msra.mxu0 %v1410_v2  ;;  %2020 = vmatprep.mubr.msk.bf16.mxu0 %vm2478_vm1, %v2477_v8 }
 0x623   : > { %v1311_v10 = vpack.c.bf16 %v1303_v6, %v1303_v6  ;;  %v1993_v11 = vpop.f32.mrb[11].mxu1  ;;  %2030 = vmatprep.subr.bf16.mxu0 %v2477_v8  ;;  %v1898_v6 = vld [vmem:[#allocation14] ss:$0 sm:$0xff]  ;;  %v1899_v9 = vld [vmem:[#allocation15] ss:$0 sm:$0xff] }
 0x625   : > { %2015 = vmatmul.mubr.msk.bf16.vlgmr.msra.gmra.mrb[16].mxu1 %vm888_vm4, %v1311_v10 }
 0x626   : > { %2025 = vmatpush3.bf16.msra.mxu1 %v1456_v12  ;;  %2026 = vmatprep.mubr.msk.bf16.mxu1 %vm2478_vm1, %v2477_v8 }
 0x627   : > { %2038 = vmatprep.subr.bf16.mxu1 %v2477_v8 }
 0x651   : > { %v1246_v16 = vpop.f32.mrb[16].mxu0 }
 0x652   : > { %v1304_v17 = vmul.f32 %v2202_v15, %v1246_v16  ;;  %v1998_v18 = vpop.f32.mrb[17].mxu0  ;;  %v1900_v15 = vld [vmem:[%s3010_s11] ss:$0 sm:$0xff] }
 0x653   : > { %v1249_v19 = vpop.f32.mrb[18].mxu0 }
 0x654   : > { %v1312_v20 = vpack.c.bf16 %v1304_v17, %v1304_v17  ;;  %v1999_v21 = vpop.f32.mrb[19].mxu0 }
 0x655   : > { %v1292_v23 = vpop.f32.mrb[12].mxu1 }
 0x656   : > { %v1305_v24 = vmul.f32 %v2204_v22, %v1292_v23  ;;  %v2004_v26 = vpop.f32.mrb[13].mxu1  ;;  %2021 = vmatmul.mubr.msk.bf16.vlgmr.msra.gmra.mrb[24].mxu0 %vm888_vm4, %v1312_v20 }
 0x657   : > { %v1295_v27 = vpop.f32.mrb[14].mxu1  ;;  %2034 = vmatprep.mubr.msk.bf16.mxu0 %vm2478_vm1, %v2477_v8  ;;  %2031 = vmatpush3.bf16.msra.mxu0 %v2181_v62 }
 0x658   : > { %v1313_v28 = vpack.c.bf16 %v1305_v24, %v1305_v24  ;;  %v2005_v29 = vpop.f32.mrb[15].mxu1  ;;  %2032 = vmatprep.subr.bf16.mxu0 %v2477_v8 }
 0x65a   : > { %2027 = vmatmul.mubr.msk.bf16.vlgmr.msra.gmra.mrb[20].mxu1 %vm888_vm4, %v1313_v28 }
 0x65b   : > { %2046 = vmatprep.mubr.msk.bf16.mxu1 %vm2478_vm1, %v2477_v8  ;;  %2033 = vmatpush3.bf16.msra.mxu0 %v2182_v63 }
 0x65c   : > { %2039 = vmatpush3.bf16.msra.mxu1 %v2183_v0 }
 0x65d   : > { %2040 = vmatprep.subr.bf16.mxu1 %v2477_v8 }
 0x660   : > { %2041 = vmatpush3.bf16.msra.mxu1 %v2184_v1 }
 0x661   : > { %2042 = vmatprep.subr.bf16.mxu1 %v2477_v8 }
 0x664   : > { %2043 = vmatpush3.bf16.msra.mxu1 %v2185_v13 }
 0x665   : > { %2044 = vmatprep.subr.bf16.mxu1 %v2477_v8  ;;  %v1904_v8 = vld [vmem:[%s3048_s3] ss:$0 sm:$0xff] }
 0x668   : > { %2045 = vmatpush3.bf16.msra.mxu1 %v2186_v14 }
 0x6f4   : > { %v1354_v30 = vpop.f32.mrb[20].mxu0 }
 0x6f5   : > { %v2010_v31 = vpop.f32.mrb[21].mxu0  ;;  %v1499_v34 = vsel %vm575_vm0, %v1354_v30, 0.0 }
 0x6f6   : > { %v1357_v25 = vpop.f32.mrb[22].mxu0 }
 0x6f7   : > { %v2011_v32 = vpop.f32.mrb[23].mxu0 }
 0x6f8   : > { %v1400_v33 = vpop.f32.mrb[16].mxu1 }
 0x6f9   : > { %v1500_v35 = vsel %vm575_vm0, %v1400_v33, 0.0  ;;  %v2016_v36 = vpop.f32.mrb[17].mxu1 }
 0x6fa   : > { %v1501_v37 = vadd.f32 %v1500_v35, %v1499_v34  ;;  %v1403_v38 = vpop.f32.mrb[18].mxu1 }
 0x6fb   : > { %v2017_v39 = vpop.f32.mrb[19].mxu1 }
 0x729   : > { %v1446_v40 = vpop.f32.mrb[24].mxu0 }
 0x72a   : > { %v1502_v41 = vsel %vm575_vm0, %v1446_v40, 0.0  ;;  %v2022_v42 = vpop.f32.mrb[25].mxu0 }
 0x72b   : > { %v1503_v43 = vadd.f32 %v1502_v41, %v1501_v37  ;;  %v1449_v44 = vpop.f32.mrb[26].mxu0 }
 0x72c   : > { %v2023_v45 = vpop.f32.mrb[27].mxu0 }
 0x72d   : > { %v1492_v46 = vpop.f32.mrb[20].mxu1 }
 0x72e   : > { %v1504_v47 = vsel %vm575_vm0, %v1492_v46, 0.0  ;;  %v2028_v49 = vpop.f32.mrb[21].mxu1 }
 0x72f   : > { %v1505_v50 = vadd.f32 %v1504_v47, %v1503_v43  ;;  %v1495_v51 = vpop.f32.mrb[22].mxu1 }
 0x730   : > { %v2029_v52 = vpop.f32.mrb[23].mxu1 }
 0x731   : > { %v1514_v53 = vadd.f32 %v1897_v48, %v1505_v50 }
 0x733   : > { %v1517_v55 = vadd.f32 %v1516_v54, %v1514_v53 }
 0x735   : > { %v1520_v56 = vsel %vm575_vm0, %v1517_v55, 0.0 }
 0x736   : > { %1521 = vadd.xlane.f32.xlu1 %v1520_v56 }
 0x7c3   : > { %v1522_v57 = vpop.xlane.xlu1 %1521 }
 0x7c4   : > { %v1524_v58 = vmul.f32 0.03125, %v1522_v57 }
 0x7c6   : > { %v1525_v59 = vsub.f32 %v1517_v55, %v1524_v58 }
 0x7c8   : > { %v1526_v60 = vmul.f32 %v1525_v59, %v1525_v59 }
 0x7ca   : > { %v1527_v61 = vsel %vm575_vm0, %v1526_v60, 0.0 }
 0x7cb   : > { %1528 = vadd.xlane.f32.xlu0 %v1527_v61 }
 0x858   : > { %v1529_v2 = vpop.xlane.xlu0 %1528 }
 0x859   : > { %v1530_v3 = vmul.f32 0.03125, %v1529_v2 }
 0x85b   : > { %v1531_v4 = vadd.f32 1e-05, %v1530_v3 }
 0x85d   : > { %2205 = vrsqrt.f32 %v1531_v4 }
 0x867   : > { %v2206_v5 = vpop.eup %2205 }
 0x868   : > { %v1533_v7 = vmul.f32 %v2206_v5, %v1525_v59 }
 0x86a   : > { %v1540_v10 = vmul.f32 %v1898_v6, %v1533_v7 }
 0x86c   : > { %v1547_v11 = vadd.f32 %v1899_v9, %v1540_v10 }
 0x86e   : > { %v1548_v12 = vpack.c.bf16 %v1547_v11, %v1547_v11 }
 0x870   : > { %2035 = vmatmul.mubr.msk.bf16.vlgmr.msra.gmra.mrb[28].mxu0 %vm575_vm0, %v1548_v12 }
 0x943   : > { %v1609_v16 = vpop.f32.mrb[28].mxu0 }
 0x944   : > { %v1610_v17 = vadd.f32 %v1900_v15, %v1609_v16  ;;  %v2036_v18 = vpop.f32.mrb[29].mxu0 }
 0x945   : > { %v1612_v19 = vpop.f32.mrb[30].mxu0 }
 0x946   : > { %v1615_v20 = vmax.f32 %v1610_v17, 0.0  ;;  %v2037_v21 = vpop.f32.mrb[31].mxu0 }
 0x948   : > { %v1616_v22 = vpack.c.bf16 %v1615_v20, %v1615_v20 }
 0x94a   : > { %2047 = vmatmul.mubr.msk.bf16.vlgmr.msra.gmra.mrb[24].mxu1 %vm1656_vm5, %v1616_v22 }
 0xa1d   : > { %v1694_v23 = vpop.f32.mrb[24].mxu1 }
 0xa1e   : > { %v1695_v24 = vadd.f32 %v1904_v8, %v1694_v23  ;;  %v2048_v26 = vpop.f32.mrb[25].mxu1 }
 0xa1f   : > { %v1697_v27 = vpop.f32.mrb[26].mxu1 }
 0xa20   : > { %v1700_v28 = vadd.f32 %v1695_v24, %v1547_v11  ;;  %v2049_v29 = vpop.f32.mrb[27].mxu1 }
 0xa22   : > { %1701 = vst.msk [vmem:[%s559_s20] sm:$0xff] %vm575_vm0, %v1700_v28 }
 0xa23   : > { %2388 = shalt.err (!%p2385_p6)
}
 0xa24   : > { %s2389_s15 = scalar_lea.hbm %s2951_s29, 128  ;;  %s2393_s13 = scalar_lea.hbm %s3050_s28, 256 }
 0xa25   : > { %p2390_p7 = scmp.ne.s32.totalorder %s2951_s29, %s2389_s15  ;;  %p2394_p0 = scmp.lt.u32.totalorder %s2951_s29, %s3050_s28 }
 0xa26   : > { %p2395_p2 = scmp.lt.u32.totalorder %s2393_s13, %s2389_s15  ;;  %p2397_p1 = scmp.lt.u32.totalorder %s2389_s15, %s2951_s29 }
 0xa27   : > { %p2391_p9 = pnand %p2390_p7, %p3051_p4 }
 0xa28   : > { %p2396_p13 = por %p2395_p2, %p2394_p0 }
 0xa29   : > { %p2392_p12 = pneg %p2391_p9 }
 0xa2a   : > { %p2398_p8 = por %p2397_p1, %p2396_p13 }
 0xa2c   : > { %p2399_p10 = pnand %p2398_p8, %p2392_p12 }
 0xa2e   : > { %2402 = shalt.err (!%p2399_p10)
}
 0xa2f   : > { %2074 = dma.vmem_to_hbm [thread:$0]  (%p3051_p4), %s2953_s26, 128, %s2951_s29, %s1703_s16  }
 0xa30 PF: > { %s3052_s20 = sld [smem:[#allocation26_spill]]  ;;  %s3053_s27 = sld [smem:[#allocation23_spill]] }
 0xa31   : > { %s3054_s18 = sld [smem:[#allocation29_spill]] }
 0xa36   : > { %p2111_p11 = scmp.ge.s32.totalorder %s3052_s20, 2  ;;  %s1729_s24 = sand.u32 1, %s3053_s27  }
 0xa37   : > { %p3055_p3 = scmp.ne.s32.totalorder %s3054_s18, 0  ;;  %s1730_s14 = scalar_lea.sflag [#allocation8], %s1729_s24 }
 0xa39   : > { %p2096_p5 = pnand %p2111_p11, %p3055_p3 }
 0xa3b   : > { %2444 = dma.done.wait (!%p2096_p5), %s1730_s14, 128  }
 0xa3c   : > { %2446 = vsyncadd (!%p2096_p5), %s1730_s14, 4294967168  ;;  %s31_s18 = sadd.s32 1, %s3052_s20   ;;  %s3056_s23 = sld [smem:[#allocation24_spill]] }
 0xa3d   : > { %p28_p6 = scmp.ge.s32.totalorder %s31_s18, 4   ;;  %s3057_s15 = sld [smem:[#allocation30_spill]] }
 0xa3e   : > { %s3058_s16 = sld [smem:[#allocation25_spill]]  ;;  %s3059_s17 = sld [smem:[#allocation27_spill]] }
 0xa3f   : > { %s3060_s29 = smov %s2453_s30  ;;  %30 = sbr.rel (!%p28_p6) target bundleno = 12 (0xc), region = 154 }
 0xa42   : > { %s3061_s30 = smov %s3056_s23 }
 0xa46   :  { %1735 = vsyncpa [#allocation7], 1 }
 0xa47   :  { %1737 = vsyncpa [#allocation7 + $0x1], 1 }
 0xa48   :  { %1738 = vsyncpa [#allocation10], 1 }
 0xa49   :  { %1739 = vsyncpa [#allocation13], 1 }
 0xa4a   :  { %1740 = vsyncpa [#allocation16], 1 }
 0xa4b   :  { %1741 = vsyncpa [#allocation8], 1 }
 0xa4c   :  { %1743 = vsyncpa [#allocation8 + $0x1], 1 }

// kernel: tpu_custom_call.1
= control target key start
LH: loop header
LB: loop body
LE: loop exit
PB: predicated region body
PF: predicated region fallthrough
CT: control target
= control target key end

     0   :  { %s2999_s0 = inlined_call_operand.vmem [shape: f32[2,8,32], index: 0, kind: input, shape index: {}]   ;;  %s3000_s1 = inlined_call_operand.vmem [shape: f32[2,1,8], index: 1, kind: input, shape index: {}]   ;;  %s3001_s2 = inlined_call_operand.hbm [shape: f32[1,32], index: 2, kind: input, shape index: {}]   ;;  %s3002_s3 = inlined_call_operand.hbm [shape: f32[1,32], index: 3, kind: input, shape index: {}]   ;;  %s3003_s4 = inlined_call_operand.vmem [shape: bf16[32,96], index: 4, kind: input, shape index: {}]   ;;  %s3004_s5 = inlined_call_operand.hbm [shape: f32[1,96], index: 5, kind: input, shape index: {}]   ;;  %s3005_s6 = inlined_call_operand.vmem [shape: bf16[4,8,32], index: 6, kind: input, shape index: {}]   ;;  %s3006_s7 = inlined_call_operand.hbm [shape: f32[1,32], index: 7, kind: input, shape index: {}]   ;;  %s3007_s8 = inlined_call_operand.hbm [shape: f32[1,32], index: 8, kind: input, shape index: {}]   ;;  %s3008_s9 = inlined_call_operand.hbm [shape: f32[1,32], index: 9, kind: input, shape index: {}]   ;;  %s3009_s10 = inlined_call_operand.vmem [shape: bf16[32,64], index: 10, kind: input, shape index: {}]   ;;  %s3010_s11 = inlined_call_operand.vmem [shape: f32[1,64], index: 11, kind: input, shape index: {}]   ;;  %s3011_s12 = inlined_call_operand.vmem [shape: bf16[64,32], index: 12, kind: input, shape index: {}]   ;;  %s3012_s13 = inlined_call_operand.vmem [shape: f32[1,32], index: 13, kind: input, shape index: {}]   ;;  %s3013_s14 = inlined_call_operand.hbm [shape: f32[2,8,32], index: 14, kind: output, shape index: {}]  }
   0x1   :  { %3028 = sst [smem:[#allocation31_spill]] %s3002_s3 }
   0x2   :  { %3029 = sst [smem:[#allocation32_spill]] %s3012_s13 }
   0x3   :  { %3030 = sst [smem:[#allocation33_spill]] %s3013_s14 }
   0x4   :  { %19 = vsyncpa [#allocation7], 0 }
   0x5   :  { %20 = vsyncpa [#allocation10], 0 }
   0x6   :  { %21 = vsyncpa [#allocation13], 0 }
   0x7   :  { %22 = vsyncpa [#allocation16], 0 }
   0x8   :  { %23 = vsyncpa [#allocation8], 0 }
   0x9   :  { %25 = vsyncpa [#allocation8 + $0x1], 0  ;;  %s2566_s29 = smov 0   ;;  %s2568_s30 = smov 0  }
   0xa   :  { %s2570_s15 = smov 0   ;;  %s2572_s16 = smov 0  }
   0xb   :  { %s2574_s17 = smov 0   ;;  %s2576_s18 = smov 0  }
   0xc LB: > { %3031 = sst [smem:[#allocation23_spill]] %s2449_s29  ;;  %s1858_s19 = sadd.s32 4294967295, %s2469_s18   ;;  %s2469_s18 = sphi %s2576_s18, %s31_s18   ;;  %s2465_s17 = sphi %s2574_s17, %s3059_s17   ;;  %s2461_s16 = sphi %s2572_s16, %s3058_s16   ;;  %s2457_s15 = sphi %s2570_s15, %s3057_s15   ;;  %s2453_s30 = sphi %s2568_s30, %s3061_s30   ;;  %s2449_s29 = sphi %s2566_s29, %s3060_s29  }
   0xd   : > { %3032 = sst [smem:[#allocation24_spill]] %s2457_s15  ;;  %s1859_s20 = sadd.s32 4294967294, %s2469_s18  }
   0xe   : > { %3033 = sst [smem:[#allocation25_spill]] %s2465_s17  ;;  %s43_s21 = sadd.s32 1, %s2465_s17 }
   0xf   : > { %3034 = sst [smem:[#allocation26_spill]] %s2469_s18  ;;  %s356_s22 = sadd.s32 1, %s2457_s15 }
  0x10   : > { %p45_p0 = scmp.ge.s32.totalorder %s43_s21, 2  ;;  %p366_p1 = scmp.ne.s32.totalorder %s2457_s15, %s2453_s30 }
  0x11   : > { %p367_p2 = scmp.eq.s32.totalorder %s1858_s19, 1  ;;  %p372_p3 = scmp.ne.s32.totalorder %s2453_s30, %s2449_s29 }
  0x12   : > { %s3063_s21 = smov (%p45_p0, %s43_s21), 0  ;;  %p373_p5 = scmp.eq.s32.totalorder %s1859_s20, 1 }
  0x13   : > { %3035 = sst [smem:[#allocation27_spill]] %s3063_s21  ;;  %p2606_p4 = por %p367_p2, %p366_p1 }
  0x14   : > { %s351_s24 = ssub.s32 %s2465_s17, %s3063_s21  ;;  %p1860_p6 = scmp.ge.s32.totalorder %s2469_s18, 1 }
  0x15   : > { %s3036_s23 = scalar_select %p2606_p4, 1, 0 }
  0x16   : > { %p354_p7 = scmp.eq.s32.totalorder %s351_s24, 0  ;;  %p2613_p8 = por %p373_p5, %p372_p3 }
  0x17   : > { %3037 = sst [smem:[#allocation28_spill]] %s3036_s23  ;;  %p380_p9 = scmp.lt.s32.totalorder %s2469_s18, 3 }
  0x18   : > { %s3038_s25 = scalar_select %p2613_p8, 1, 0 }
  0x19   : > { %s2619_s26 = scalar_select %p354_p7, %s2457_s15, %s356_s22  }
  0x1a   : > { %3039 = sst [smem:[#allocation29_spill]] %s3038_s25  ;;  %p2621_p10 = pnand %p1860_p6, %p380_p9 }
  0x1b   : > { %3040 = sst [smem:[#allocation30_spill]] %s2619_s26  ;;  %p2625_p11 = scmp.eq.s32.totalorder %s1858_s19, 0 }
  0x1c   : > { %s3041_s27 = scalar_select %p2621_p10, 1, 0 }
  0x1d   : > { %s3042_s28 = scalar_select %p2625_p11, 1, 0 }
  0x1e   : > { %p2076_p12 = pneg %p2621_p10  ;;  %s2471_s20 = smov [#allocation9]  }
  0x1f   : > { %s404_s24 = sshll.u32 %s2471_s20, 4  ;;  %s2472_s21 = smov [#allocation12]   ;;  %s405_s24 = int_to_ptr.vmem [resolvable:$true] %s404_s24 }
  0x20   : > { %s432_s17 = sshll.u32 %s2472_s21, 4  ;;  %p2633_p13 = pnand %p2625_p11, %p2076_p12  ;;  %s2637_s17 = int_to_ptr.vmem [resolvable:$true] %s432_s17 }
  0x21   : > { %s3044_s3 = sld [smem:[#allocation31_spill]] }
  0x22   : > { %p2647_p1 = pneg %p2633_p13 }
  0x27   : > { %s2207_s15 = scalar_lea.hbm %s3044_s3, 16 }
  0x28   : > { %p2208_p0 = scmp.ne.s32.totalorder %s3044_s3, %s2207_s15  ;;  %p2214_p5 = scmp.lt.u32.totalorder %s2207_s15, %s3044_s3 }
  0x2a   : > { %p2210_p2 = pnand %p2647_p1, %p2208_p0 }
  0x2c   : > { %p2211_p3 = pneg %p2210_p2 }
  0x2e   : > { %p2216_p6 = pnand %p2214_p5, %p2211_p3 }
  0x30   : > { %2219 = shalt.err (!%p2216_p6)
}
  0x31   : > { %s2220_s26 = scalar_lea.vmem %s405_s24, 16  ;;  %s2227_s29 = scalar_lea.vmem %s405_s24, 32 }
  0x32   : > { %p2221_p7 = scmp.ne.s32.totalorder %s405_s24, %s2220_s26  ;;  %p2228_p8 = scmp.lt.s32.totalorder %s405_s24, %s405_s24 }
  0x33   : > { %p2229_p4 = scmp.lt.s32.totalorder %s2227_s29, %s2220_s26 }
  0x34   : > { %p2223_p9 = pnand %p2221_p7, %p2647_p1 }
  0x35   : > { %p2230_p11 = por %p2229_p4, %p2228_p8 }
  0x36   : > { %p2224_p12 = pneg %p2223_p9 }
  0x38   : > { %p2231_p10 = pnand %p2230_p11, %p2224_p12 }
  0x3a   : > { %2234 = shalt.err (!%p2231_p10)
}
  0x3b   : > { %2082 = dma.hbm_to_vmem [thread:$0]  (!%p2633_p13), %s3044_s3, 16, %s405_s24, [#allocation10]  }
  0x3c   : > { %s2235_s21 = scalar_lea.hbm %s3006_s7, 16 }
  0x3d   : > { %p2236_p0 = scmp.ne.s32.totalorder %s3006_s7, %s2235_s21  ;;  %p2242_p8 = scmp.lt.u32.totalorder %s2235_s21, %s3006_s7 }
  0x3f   : > { %p2238_p2 = pnand %p2236_p0, %p2647_p1 }
  0x41   : > { %p2239_p4 = pneg %p2238_p2 }
  0x43   : > { %p2244_p10 = pnand %p2242_p8, %p2239_p4 }
  0x45   : > { %2247 = shalt.err (!%p2244_p10)
}
  0x46   : > { %s2248_s24 = scalar_lea.vmem %s2637_s17, 16  ;;  %s2255_s14 = scalar_lea.vmem %s2637_s17, 32 }
  0x47   : > { %p2249_p11 = scmp.ne.s32.totalorder %s2637_s17, %s2248_s24  ;;  %p2256_p6 = scmp.lt.s32.totalorder %s2637_s17, %s2637_s17 }
  0x48   : > { %p2257_p7 = scmp.lt.s32.totalorder %s2255_s14, %s2248_s24 }
  0x49   : > { %p2251_p3 = pnand %p2249_p11, %p2647_p1 }
  0x4a   : > { %p2258_p9 = por %p2257_p7, %p2256_p6 }
  0x4b   : > { %p2252_p5 = pneg %p2251_p3 }
  0x4d   : > { %p2259_p12 = pnand %p2258_p9, %p2252_p5 }
  0x4f   : > { %2262 = shalt.err (!%p2259_p12)
}
  0x50   : > { %2088 = dma.hbm_to_vmem [thread:$0]  (!%p2633_p13), %s3006_s7, 16, %s2637_s17, [#allocation13]  }
  0x51   : > { %s2473_s19 = smov [#allocation6]   ;;  %s2474_s18 = smov [#allocation11]  }
  0x52   : > { %s393_s15 = sshll.u32 %s2473_s19, 4  ;;  %s418_s21 = sshll.u32 %s2474_s18, 4  ;;  %s394_s15 = int_to_ptr.vmem [resolvable:$true] %s393_s15  ;;  %s419_s21 = int_to_ptr.vmem [resolvable:$true] %s418_s21 }
  0x53   : > { %s2263_s24 = scalar_lea.hbm %s3001_s2, 16 }
  0x54   : > { %p2264_p0 = scmp.ne.s32.totalorder %s3001_s2, %s2263_s24  ;;  %p2270_p8 = scmp.lt.u32.totalorder %s2263_s24, %s3001_s2 }
  0x56   : > { %p2266_p2 = pnand %p2264_p0, %p2647_p1 }
  0x58   : > { %p2267_p4 = pneg %p2266_p2 }
  0x5a   : > { %p2272_p10 = pnand %p2270_p8, %p2267_p4 }
  0x5c   : > { %2275 = shalt.err (!%p2272_p10)
}
  0x5d   : > { %s2276_s17 = scalar_lea.vmem %s394_s15, 16  ;;  %s2283_s25 = scalar_lea.vmem %s394_s15, 32 }
  0x5e   : > { %p2277_p11 = scmp.ne.s32.totalorder %s394_s15, %s2276_s17  ;;  %p2284_p6 = scmp.lt.s32.totalorder %s394_s15, %s394_s15 }
  0x5f   : > { %p2285_p7 = scmp.lt.s32.totalorder %s2283_s25, %s2276_s17 }
  0x60   : > { %p2279_p3 = pnand %p2277_p11, %p2647_p1 }
  0x61   : > { %p2286_p9 = por %p2285_p7, %p2284_p6 }
  0x62   : > { %p2280_p5 = pneg %p2279_p3 }
  0x64   : > { %p2287_p12 = pnand %p2286_p9, %p2280_p5 }
  0x66   : > { %2290 = shalt.err (!%p2287_p12)
}
  0x67   : > { %2079 = dma.hbm_to_vmem [thread:$0]  (!%p2633_p13), %s3001_s2, 16, %s394_s15, [#allocation7]  }
  0x68   : > { %s2291_s26 = scalar_lea.hbm %s3004_s5, 16 }
  0x69   : > { %p2292_p0 = scmp.ne.s32.totalorder %s3004_s5, %s2291_s26  ;;  %p2298_p8 = scmp.lt.u32.totalorder %s2291_s26, %s3004_s5 }
  0x6b   : > { %p2294_p2 = pnand %p2292_p0, %p2647_p1 }
  0x6d   : > { %p2295_p4 = pneg %p2294_p2 }
  0x6f   : > { %p2300_p10 = pnand %p2298_p8, %p2295_p4 }
  0x71   : > { %2303 = shalt.err (!%p2300_p10)
}
  0x72   : > { %s2304_s17 = scalar_lea.vmem %s419_s21, 16  ;;  %s2311_s15 = scalar_lea.vmem %s419_s21, 32 }
  0x73   : > { %p2305_p11 = scmp.ne.s32.totalorder %s419_s21, %s2304_s17  ;;  %p2312_p6 = scmp.lt.s32.totalorder %s419_s21, %s419_s21 }
  0x74   : > { %p2313_p7 = scmp.lt.s32.totalorder %s2311_s15, %s2304_s17 }
  0x75   : > { %p2307_p3 = pnand %p2305_p11, %p2647_p1 }
  0x76   : > { %p2314_p9 = por %p2313_p7, %p2312_p6 }
  0x77   : > { %p2308_p5 = pneg %p2307_p3 }
  0x79   : > { %p2315_p12 = pnand %p2314_p9, %p2308_p5 }
  0x7b   : > { %2318 = shalt.err (!%p2315_p12)
}
  0x7c   : > { %2085 = dma.hbm_to_vmem [thread:$0]  (!%p2633_p13), %s3004_s5, 16, %s419_s21, [#allocation10]  }
  0x7d   : > { %s2475_s19 = smov [#allocation14]   ;;  %s2476_s18 = smov [#allocation15]  }
  0x7e   : > { %s443_s13 = sshll.u32 %s2475_s19, 4  ;;  %s454_s26 = sshll.u32 %s2476_s18, 4  ;;  %s444_s13 = int_to_ptr.vmem [resolvable:$true] %s443_s13  ;;  %s455_s26 = int_to_ptr.vmem [resolvable:$true] %s454_s26 }
  0x7f   : > { %s2319_s14 = scalar_lea.hbm %s3007_s8, 16 }
  0x80   : > { %p2320_p0 = scmp.ne.s32.totalorder %s3007_s8, %s2319_s14  ;;  %p2326_p8 = scmp.lt.u32.totalorder %s2319_s14, %s3007_s8 }
  0x82   : > { %p2322_p2 = pnand %p2320_p0, %p2647_p1 }
  0x84   : > { %p2323_p4 = pneg %p2322_p2 }
  0x86   : > { %p2328_p10 = pnand %p2326_p8, %p2323_p4 }
  0x88   : > { %2331 = shalt.err (!%p2328_p10)
}
  0x89   : > { %s2332_s21 = scalar_lea.vmem %s444_s13, 16  ;;  %s2339_s3 = scalar_lea.vmem %s444_s13, 32 }
  0x8a   : > { %p2333_p11 = scmp.ne.s32.totalorder %s444_s13, %s2332_s21  ;;  %p2340_p6 = scmp.lt.s32.totalorder %s444_s13, %s444_s13 }
  0x8b   : > { %p2341_p7 = scmp.lt.s32.totalorder %s2339_s3, %s2332_s21 }
  0x8c   : > { %p2335_p3 = pnand %p2333_p11, %p2647_p1 }
  0x8d   : > { %p2342_p9 = por %p2341_p7, %p2340_p6 }
  0x8e   : > { %p2336_p5 = pneg %p2335_p3 }
  0x90   : > { %p2343_p12 = pnand %p2342_p9, %p2336_p5 }
  0x92   : > { %2346 = shalt.err (!%p2343_p12)
}
  0x93   : > { %2091 = dma.hbm_to_vmem [thread:$0]  (!%p2633_p13), %s3007_s8, 16, %s444_s13, [#allocation13]  }
  0x94   : > { %s2347_s14 = scalar_lea.hbm %s3008_s9, 16 }
  0x95   : > { %p2348_p0 = scmp.ne.s32.totalorder %s3008_s9, %s2347_s14  ;;  %p2354_p8 = scmp.lt.u32.totalorder %s2347_s14, %s3008_s9 }
  0x97   : > { %p2350_p2 = pnand %p2348_p0, %p2647_p1 }
  0x99   : > { %p2351_p4 = pneg %p2350_p2 }
  0x9b   : > { %p2356_p10 = pnand %p2354_p8, %p2351_p4 }
  0x9d   : > { %2359 = shalt.err (!%p2356_p10)
}
  0x9e   : > { %s2360_s21 = scalar_lea.vmem %s455_s26, 16  ;;  %s2367_s13 = scalar_lea.vmem %s455_s26, 32 }
  0x9f   : > { %p2361_p11 = scmp.ne.s32.totalorder %s455_s26, %s2360_s21  ;;  %p2368_p6 = scmp.lt.s32.totalorder %s455_s26, %s455_s26 }
  0xa0   : > { %p2369_p7 = scmp.lt.s32.totalorder %s2367_s13, %s2360_s21 }
  0xa1   : > { %p2363_p3 = pnand %p2361_p11, %p2647_p1 }
  0xa2   : > { %p2370_p9 = por %p2369_p7, %p2368_p6 }
  0xa3   : > { %p2364_p5 = pneg %p2363_p3 }
  0xa5   : > { %p2371_p12 = pnand %p2370_p9, %p2364_p5 }
  0xa7   : > { %2374 = shalt.err (!%p2371_p12)
}
  0xa8   : > { %2094 = dma.hbm_to_vmem [thread:$0]  (!%p2633_p13), %s3008_s9, 16, %s455_s26, [#allocation16]  }
  0xa9   : > { %p3046_p0 = scmp.ne.s32.totalorder %s3041_s27, 0 }
  0xaa   : > { %p3047_p2 = scmp.ne.s32.totalorder (!%p3046_p0), %s3042_s28, 0 }
  0xab   : > { %492 = sbr.rel (%p3046_p0) target bundleno = 2608 (0xa30), region = 76 }
  0xb2   : > { %2428 = dma.done.wait (%p3047_p2), [#allocation7], 16  }
  0xb3   : > { %2430 = vsyncadd (%p3047_p2), [#allocation7], 4294967280 }
  0xb4   : > { %2432 = dma.done.wait (%p3047_p2), [#allocation10], 32  }
  0xb5   : > { %2434 = vsyncadd (%p3047_p2), [#allocation10], 4294967264 }
  0xb6   : > { %2436 = dma.done.wait (%p3047_p2), [#allocation13], 32  }
  0xb7   : > { %2438 = vsyncadd (%p3047_p2), [#allocation13], 4294967264 }
  0xb8   : > { %2440 = dma.done.wait (%p3047_p2), [#allocation16], 16  }
  0xb9   : > { %2442 = vsyncadd (%p3047_p2), [#allocation16], 4294967280  ;;  %p560_p13 = scmp.lt.s32.totalorder %s2461_s16, 1  ;;  %vm575_vm0 = vcmask 261120   ;;  %v2179_v7 = vld [vmem:[%s3003_s4] sm:$0xff]   ;;  %v2477_v8 = vmov 0.0  }
  0xba   : > { %1950 = vmatprep.subr.bf16.mxu0 %v2477_v8  ;;  %1964 = vmatprep.subr.bf16.mxu1 %v2477_v8  ;;  %v2180_v9 = vld [vmem:[%s3003_s4 + $0x8] sm:$0xff]   ;;  %vm2478_vm1 = vmmov 0   ;;  %v1877_v14 = vld [vmem:[#allocation6] ss:$0 sm:$0xff]  ;;  %v1878_v16 = vld [vmem:[#allocation9] ss:$0 sm:$0xff] }
  0xbb   : > { %s2779_s27 = scalar_select %p560_p13, %s2461_s16, 1  ;;  %1951 = vmatpush3.bf16.msra.mxu0 %v2179_v7  ;;  %1954 = vmatprep.mubr.msk.bf16.mxu0 %vm2478_vm1, %v2477_v8  ;;  %v1879_v20 = vld [vmem:[#allocation11] ss:$0 sm:$0xff]  ;;  %vm673_vm2 = vcmask 60416   ;;  %vm892_vm3 = vcmask 1043456   ;;  %vm888_vm4 = vcmask 64512  }
  0xbc   : > { %1952 = vmatprep.subr.bf16.mxu0 %v2477_v8  ;;  %1966 = vmatprep.mubr.msk.bf16.mxu1 %vm2478_vm1, %v2477_v8  ;;  %s2479_s23 = smov 80   ;;  %s2480_s17 = smov 96   ;;  %vm1656_vm5 = vcmask 523264  }
  0xbd   : > { %s1876_s22 = sshll.u32 %s2779_s27, 3  ;;  %s2481_s15 = smov 88  }
  0xbe   : > { %s563_s18 = scalar_lea.vmem %s2999_s0, %s1876_s22  ;;  %s2482_s25 = smov 72  }
  0xbf   : > { %v572_v0 = vld [vmem:[%s563_s18] sm:$0xff]  ;;  %1953 = vmatpush3.bf16.msra.mxu0 %v2180_v9  ;;  %s2483_s21 = smov 120   ;;  %s2484_s13 = smov 112  }
  0xc0   : > { %v576_v1 = vsel %vm575_vm0, %v572_v0, 0.0  ;;  %1958 = vmatprep.subr.bf16.mxu0 %v2477_v8  ;;  %s2485_s3 = smov 104   ;;  %s2486_s19 = smov 64  }
  0xc1   : > { %577 = vadd.xlane.f32.xlu0 %v576_v1  ;;  %s566_s26 = scalar_lea.vmem %s3000_s1, %s2779_s27  ;;  %s2487_s27 = smov 48  }
  0xc2   : > { %v1884_v57 = vld [vmem:[%s566_s26] ss:$0 sm:$0xff]  ;;  %s2488_s18 = smov 56   ;;  %s2489_s28 = smov 40  }
  0xc3   : > { %s1911_s22 = sshll.u32 %s2461_s16, 7  ;;  %s2490_s14 = smov [#allocation17]  }
 0x14e   : > { %v578_v2 = vpop.xlane.xlu0 %577 }
 0x14f   : > { %v580_v3 = vmul.f32 0.03125, %v578_v2 }
 0x151   : > { %v581_v4 = vsub.f32 %v572_v0, %v580_v3 }
 0x153   : > { %v582_v5 = vmul.f32 %v581_v4, %v581_v4 }
 0x155   : > { %v583_v6 = vsel %vm575_vm0, %v582_v5, 0.0 }
 0x156   : > { %584 = vadd.xlane.f32.xlu0 %v583_v6 }
 0x1e3   : > { %v585_v10 = vpop.xlane.xlu0 %584 }
 0x1e4   : > { %v586_v11 = vmul.f32 0.03125, %v585_v10 }
 0x1e6   : > { %v587_v12 = vadd.f32 1e-05, %v586_v11 }
 0x1e8   : > { %2187 = vrsqrt.f32 %v587_v12 }
 0x1f2   : > { %v2188_v13 = vpop.eup %2187 }
 0x1f3   : > { %v589_v15 = vmul.f32 %v2188_v13, %v581_v4 }
 0x1f5   : > { %v596_v17 = vmul.f32 %v1877_v14, %v589_v15 }
 0x1f7   : > { %v603_v18 = vadd.f32 %v1878_v16, %v596_v17 }
 0x1f9   : > { %604 = vst.msk [vmem:[#allocation2] sm:$0xff] %vm575_vm0, %v603_v18  ;;  %v605_v19 = vpack.c.bf16 %v603_v18, %v603_v18 }
 0x1fb   : > { %1955 = vmatmul.mubr.msk.bf16.vlgmr.msra.gmra.mrb[0].mxu0 %vm575_vm0, %v605_v19 }
 0x1fc   : > { %1960 = vmatprep.mubr.msk.bf16.mxu0 %vm2478_vm1, %v2477_v8 }
 0x2ce   : > { %v666_v21 = vpop.f32.mrb[0].mxu0 }
 0x2cf   : > { %v667_v22 = vadd.f32 %v1879_v20, %v666_v21  ;;  %v1956_v23 = vpop.f32.mrb[1].mxu0 }
 0x2d0   : > { %v669_v24 = vpop.f32.mrb[2].mxu0 }
 0x2d1   : > { %v2805_v25 = vpack.c.bf16 %v667_v22, %v667_v22  ;;  %773 = vrot.lane.b32.xlu0 %v667_v22, %s2479_s23  ;;  %676 = vrot.lane.b32.xlu1 %v667_v22, %s2480_s17  ;;  %v1957_v26 = vpop.f32.mrb[3].mxu0  ;;  %s2379_s23 = sshll.u32 %s2490_s14, 4  ;;  %s2380_s23 = int_to_ptr.vmem [resolvable:$false] %s2379_s23 }
 0x2d2   : > { %s2381_s17 = scalar_lea.vmem %s2380_s23, 256 }
 0x2d3   : > { %674 = vst.msk [vmem:[#allocation3] sm:$0xf] %vm673_vm2, %v2805_v25 }
 0x2d5   : > { %725 = vrot.lane.b32.xlu1 %v667_v22, %s2481_s15  ;;  %s557_s15 = sand.u32 1, %s2453_s30  }
 0x2d6   : > { %s1703_s16 = scalar_lea.sflag [#allocation8], %s557_s15 }
 0x2d9   : > { %821 = vrot.lane.b32.xlu1 %v667_v22, %s2482_s25  ;;  %s1875_s25 = sshll.u32 %s557_s15, 3 }
 0x2da   : > { %v870_v44 = vld [vmem:[#allocation3] sm:$0xf]  ;;  %s559_s20 = scalar_lea.vmem [#allocation17], %s1875_s25 }
 0x2db   : > { %s1717_s26 = sshll.u32 %s559_s20, 4  ;;  %s2953_s26 = int_to_ptr.vmem [resolvable:$true] %s1717_s26 }
 0x2dc   : > { %s2375_s24 = scalar_lea.vmem %s2953_s26, 128  ;;  %p2382_p11 = scmp.lt.s32.totalorder %s2953_s26, %s2380_s23 }
 0x2dd   : > { %720 = vrot.lane.b32.xlu1 %v2805_v25, %s2483_s21  ;;  %p2376_p1 = scmp.ne.s32.totalorder %s2953_s26, %s2375_s24  ;;  %p2383_p3 = scmp.lt.s32.totalorder %s2381_s17, %s2375_s24 }
 0x2df   : > { %p2384_p5 = por %p2383_p3, %p2382_p11 }
 0x2e1   : > { %768 = vrot.lane.b32.xlu1 %v2805_v25, %s2484_s13 }
 0x2e5   : > { %816 = vrot.lane.b32.xlu1 %v2805_v25, %s2485_s3  ;;  %s3048_s3 = sld [smem:[#allocation32_spill]] }
 0x343   : > { %v677_v27 = vpop.permute.xlu1 %676  ;;  %v774_v29 = vpop.permute.xlu0 %773 }
 0x344   : > { %679 = vxpose.xlu1.b32.start.end [1/1] (short) (narrow) %v677_v27, 8 }
 0x347   : > { %v726_v28 = vpop.permute.xlu1 %725 }
 0x348   : > { %728 = vxpose.xlu0.b32.start.end [1/1] (short) (narrow) %v726_v28, 8 }
 0x34b   : > { %v822_v30 = vpop.permute.xlu1 %821 }
 0x34c   : > { %776 = vxpose.xlu0.b32.start.end [1/1] (short) (narrow) %v774_v29, 8 }
 0x34f   : > { %v721_v31 = vpop.permute.xlu1 %720 }
 0x350   : > { %724 = vst.msk [vmem:[#allocation3 + $0x4] sm:$0xf] %vm673_vm2, %v721_v31  ;;  %824 = vxpose.xlu0.b32.start.end [1/1] (short) (narrow) %v822_v30, 8 }
 0x353   : > { %v769_v32 = vpop.permute.xlu1 %768 }
 0x354   : > { %772 = vst.msk [vmem:[#allocation3 + $0x8] sm:$0xf] %vm673_vm2, %v769_v32 }
 0x357   : > { %v817_v33 = vpop.permute.xlu1 %816  ;;  %v871_v48 = vld [vmem:[#allocation3 + $0x4] sm:$0xf] }
 0x358   : > { %820 = vst.msk [vmem:[#allocation3 + $0xc] sm:$0xf] %vm673_vm2, %v817_v33 }
 0x35b   : > { %v872_v51 = vld [vmem:[#allocation3 + $0x8] sm:$0xf] }
 0x35f   : > { %v873_v56 = vld [vmem:[#allocation3 + $0xc] sm:$0xf] }
 0x362   : > { %716 = vrot.lane.b32.xlu1 %v2805_v25, %s2486_s19  ;;  %s3049_s19 = sld [smem:[#allocation28_spill]] }
 0x368   : > { %p3051_p4 = scmp.ne.s32.totalorder %s3049_s19, 0 }
 0x36a   : > { %p2377_p8 = pnand %p2376_p1, %p3051_p4 }
 0x36c   : > { %p2378_p10 = pneg %p2377_p8 }
 0x36e   : > { %p2385_p6 = pnand %p2384_p5, %p2378_p10 }
 0x3c4   : > { %v695_v34 = vpop.trf.xlu1 }
 0x3c5   : > { %v711_v35 = vpack.c.bf16 %v695_v34, %v695_v34 }
 0x3c7   : > { %712 = vst.msk [vmem:[#allocation4] sm:$0xf] %vm673_vm2, %v711_v35 }
 0x3c8   : > { %v744_v36 = vpop.trf.xlu0 }
 0x3c9   : > { %v760_v37 = vpack.c.bf16 %v744_v36, %v744_v36 }
 0x3cb   : > { %762 = vst.msk [vmem:[#allocation4 + $0x4] sm:$0xf] %vm673_vm2, %v760_v37 }
 0x3cc   : > { %v792_v38 = vpop.trf.xlu0 }
 0x3cd   : > { %v808_v39 = vpack.c.bf16 %v792_v38, %v792_v38 }
 0x3ce   : > { %v874_v40 = vld [vmem:[#allocation4] sm:$0xf] }
 0x3cf   : > { %810 = vst.msk [vmem:[#allocation4 + $0x8] sm:$0xf] %vm673_vm2, %v808_v39  ;;  %v894_v41 = vsel %vm892_vm3, %v874_v40, 0 }
 0x3d0   : > { %v840_v42 = vpop.trf.xlu0  ;;  %1959 = vmatpush3.bf16.msra.mxu0 %v894_v41 }
 0x3d1   : > { %v856_v43 = vpack.c.bf16 %v840_v42, %v840_v42  ;;  %1970 = vmatprep.subr.bf16.mxu0 %v2477_v8 }
 0x3d2   : > { %v875_v45 = vld [vmem:[#allocation4 + $0x4] sm:$0xf] }
 0x3d3   : > { %858 = vst.msk [vmem:[#allocation4 + $0xc] sm:$0xf] %vm673_vm2, %v856_v43  ;;  %1961 = vmatmul.mubr.msk.bf16.vlgmr.msra.gmra.mrb[4].mxu0 %vm888_vm4, %v870_v44  ;;  %v940_v46 = vsel %vm892_vm3, %v875_v45, 0 }
 0x3d4   : > { %1965 = vmatpush3.bf16.msra.mxu1 %v940_v46  ;;  %v717_v47 = vpop.permute.xlu1 %716  ;;  %1972 = vmatprep.mubr.msk.bf16.mxu0 %vm2478_vm1, %v2477_v8 }
 0x3d5   : > { %719 = vst.msk [vmem:[#allocation5] sm:$0xf] %vm673_vm2, %v717_v47  ;;  %1976 = vmatprep.subr.bf16.mxu1 %v2477_v8 }
 0x3d6   : > { %v876_v49 = vld [vmem:[#allocation4 + $0x8] sm:$0xf] }
 0x3d7   : > { %1967 = vmatmul.mubr.msk.bf16.vlgmr.msra.gmra.mrb[0].mxu1 %vm888_vm4, %v871_v48  ;;  %v986_v50 = vsel %vm892_vm3, %v876_v49, 0 }
 0x3d8   : > { %1971 = vmatpush3.bf16.msra.mxu0 %v986_v50  ;;  %1978 = vmatprep.mubr.msk.bf16.mxu1 %vm2478_vm1, %v2477_v8 }
 0x3d9   : > { %1982 = vmatprep.subr.bf16.mxu0 %v2477_v8 }
 0x3da   : > { %v877_v52 = vld [vmem:[#allocation4 + $0xc] sm:$0xf] }
 0x3db   : > { %1973 = vmatmul.mubr.msk.bf16.vlgmr.msra.gmra.mrb[8].mxu0 %vm888_vm4, %v872_v51  ;;  %v1032_v53 = vsel %vm892_vm3, %v877_v52, 0  ;;  %v1306_v52 = vld [vmem:[%s3005_s6] sm:$0xf] }
 0x3dc   : > { %1977 = vmatpush3.bf16.msra.mxu1 %v1032_v53  ;;  %v878_v54 = vld [vmem:[#allocation5] sm:$0xf]  ;;  %1984 = vmatprep.mubr.msk.bf16.mxu0 %vm2478_vm1, %v2477_v8  ;;  %v1318_v53 = vsel %vm892_vm3, %v1306_v52, 0 }
 0x3dd   : > { %v1118_v55 = vsel %vm892_vm3, %v878_v54, 0  ;;  %1988 = vmatprep.subr.bf16.mxu1 %v2477_v8  ;;  %v1307_v54 = vld [vmem:[%s3005_s6 + $0x4] sm:$0xf] }
 0x3de   : > { %1983 = vmatpush3.bf16.msra.mxu0 %v1118_v55  ;;  %v1364_v55 = vsel %vm892_vm3, %v1307_v54, 0  ;;  %v1516_v54 = vld [vmem:[#allocation2] sm:$0xff] }
 0x3df   : > { %1979 = vmatmul.mubr.msk.bf16.vlgmr.msra.gmra.mrb[4].mxu1 %vm888_vm4, %v873_v56  ;;  %1994 = vmatprep.subr.bf16.mxu0 %v2477_v8 }
 0x3e0   : > { %1990 = vmatprep.mubr.msk.bf16.mxu1 %vm2478_vm1, %v2477_v8 }
 0x4a6   : > { %v930_v58 = vpop.f32.mrb[4].mxu0 }
 0x4a7   : > { %v931_v59 = vadd.f32 %v1884_v57, %v930_v58  ;;  %v1962_v60 = vpop.f32.mrb[5].mxu0 }
 0x4a8   : > { %v933_v61 = vpop.f32.mrb[6].mxu0  ;;  %v1308_v60 = vld [vmem:[%s3005_s6 + $0x8] sm:$0xf] }
 0x4a9   : > { %v1963_v62 = vpop.f32.mrb[7].mxu0  ;;  %v1074_v63 = vsel %vm888_vm4, %v931_v59, -inf }
 0x4aa   : > { %v976_v0 = vpop.f32.mrb[0].mxu1  ;;  %1075 = vmax.xlane.f32.xlu1 %v1074_v63 }
 0x4ab   : > { %v977_v1 = vadd.f32 %v1884_v57, %v976_v0  ;;  %v1968_v2 = vpop.f32.mrb[1].mxu1 }
 0x4ac   : > { %v979_v3 = vpop.f32.mrb[2].mxu1  ;;  %v1410_v2 = vsel %vm892_vm3, %v1308_v60, 0 }
 0x4ad   : > { %v1969_v4 = vpop.f32.mrb[3].mxu1  ;;  %v1077_v5 = vsel %vm888_vm4, %v977_v1, -inf }
 0x4ae   : > { %1078 = vmax.xlane.f32.xlu0 %v1077_v5  ;;  %v1022_v6 = vpop.f32.mrb[8].mxu0  ;;  %v1309_v5 = vld [vmem:[%s3005_s6 + $0xc] sm:$0xf] }
 0x4af   : > { %v1974_v7 = vpop.f32.mrb[9].mxu0  ;;  %v1023_v15 = vadd.f32 %v1884_v57, %v1022_v6 }
 0x4b0   : > { %v1025_v9 = vpop.f32.mrb[10].mxu0 }
 0x4b1   : > { %v1975_v10 = vpop.f32.mrb[11].mxu0  ;;  %v1080_v17 = vsel %vm888_vm4, %v1023_v15, -inf }
 0x4b2   : > { %v1068_v11 = vpop.f32.mrb[4].mxu1 }
 0x4b3   : > { %v1980_v12 = vpop.f32.mrb[5].mxu1  ;;  %v1069_v16 = vadd.f32 %v1884_v57, %v1068_v11 }
 0x4b4   : > { %v1071_v13 = vpop.f32.mrb[6].mxu1  ;;  %v1456_v12 = vsel %vm892_vm3, %v1309_v5, 0 }
 0x4b5   : > { %v1981_v14 = vpop.f32.mrb[7].mxu1  ;;  %v1083_v18 = vsel %vm888_vm4, %v1069_v16, -inf }
 0x4bb   : > { %811 = vrot.lane.b32.xlu1 %v2805_v25, %s2487_s27 }
 0x4c4   : > { %763 = vrot.lane.b32.xlu0 %v2805_v25, %s2488_s18 }
 0x4df   : > { %1081 = vmax.xlane.f32.xlu1 %v1080_v17 }
 0x4e3   : > { %1084 = vmax.xlane.f32.xlu1 %v1083_v18 }
 0x4f4   : > { %859 = vrot.lane.b32.xlu1 %v2805_v25, %s2489_s28  ;;  %s3050_s28 = sld [smem:[#allocation33_spill]] }
 0x4fa   : > { %s2951_s29 = scalar_lea.hbm %s3050_s28, %s1911_s22 }
 0x537   : > { %v1076_v19 = vpop.xlane.xlu1 %1075 }
 0x538   : > { %v1086_v20 = vsub.f32 %v931_v59, %v1076_v19 }
 0x53a   : > { %v1090_v21 = vmul.f32 1.442695, %v1086_v20 }
 0x53b   : > { %v1079_v22 = vpop.xlane.xlu0 %1078  ;;  %v812_v23 = vpop.permute.xlu1 %811 }
 0x53c   : > { %2189 = vpow2.f32 %v1090_v21  ;;  %v1087_v24 = vsub.f32 %v977_v1, %v1079_v22  ;;  %815 = vst.msk [vmem:[#allocation5 + $0x8] sm:$0xf] %vm673_vm2, %v812_v23 }
 0x53e   : > { %v1092_v26 = vmul.f32 1.442695, %v1087_v24 }
 0x53f   : > { %v764_v27 = vpop.permute.xlu0 %763 }
 0x540   : > { %2191 = vpow2.f32 %v1092_v26  ;;  %767 = vst.msk [vmem:[#allocation5 + $0x4] sm:$0xf] %vm673_vm2, %v764_v27 }
 0x543   : > { %v880_v29 = vld [vmem:[#allocation5 + $0x8] sm:$0xf] }
 0x544   : > { %v1210_v33 = vsel %vm892_vm3, %v880_v29, 0 }
 0x546   : > { %v2190_v28 = vpop.eup %2189 }
 0x547   : > { %v1098_v30 = vsel %vm888_vm4, %v2190_v28, 0.0  ;;  %v1110_v31 = vpack.c.bf16 %v2190_v28, %v2190_v28  ;;  %v879_v25 = vld [vmem:[#allocation5 + $0x4] sm:$0xf] }
 0x548   : > { %1099 = vadd.xlane.f32.xlu0 %v1098_v30  ;;  %v1164_v32 = vsel %vm892_vm3, %v879_v25, 0 }
 0x549   : > { %1985 = vmatmul.mubr.msk.bf16.vlgmr.msra.gmra.mrb[12].mxu0 %vm888_vm4, %v1110_v31  ;;  %1989 = vmatpush3.bf16.msra.mxu1 %v1164_v32 }
 0x54a   : > { %v2192_v34 = vpop.eup %2191  ;;  %1995 = vmatpush3.bf16.msra.mxu0 %v1210_v33  ;;  %1996 = vmatprep.mubr.msk.bf16.mxu0 %vm2478_vm1, %v2477_v8 }
 0x54b   : > { %v1101_v35 = vsel %vm888_vm4, %v2192_v34, 0.0  ;;  %v1111_v36 = vpack.c.bf16 %v2192_v34, %v2192_v34  ;;  %2000 = vmatprep.subr.bf16.mxu1 %v2477_v8  ;;  %2006 = vmatprep.subr.bf16.mxu0 %v2477_v8 }
 0x54c   : > { %1102 = vadd.xlane.f32.xlu1 %v1101_v35 }
 0x54d   : > { %1991 = vmatmul.mubr.msk.bf16.vlgmr.msra.gmra.mrb[8].mxu1 %vm888_vm4, %v1111_v36 }
 0x54e   : > { %2002 = vmatprep.mubr.msk.bf16.mxu1 %vm2478_vm1, %v2477_v8 }
 0x56c   : > { %v1082_v37 = vpop.xlane.xlu1 %1081 }
 0x56d   : > { %v1088_v38 = vsub.f32 %v1023_v15, %v1082_v37 }
 0x56f   : > { %v1094_v39 = vmul.f32 1.442695, %v1088_v38 }
 0x570   : > { %v1085_v40 = vpop.xlane.xlu1 %1084 }
 0x571   : > { %2193 = vpow2.f32 %v1094_v39  ;;  %v1089_v41 = vsub.f32 %v1069_v16, %v1085_v40 }
 0x573   : > { %v1096_v42 = vmul.f32 1.442695, %v1089_v41 }
 0x574   : > { %v860_v43 = vpop.permute.xlu1 %859 }
 0x575   : > { %2195 = vpow2.f32 %v1096_v42  ;;  %863 = vst.msk [vmem:[#allocation5 + $0xc] sm:$0xf] %vm673_vm2, %v860_v43 }
 0x57b   : > { %v2194_v44 = vpop.eup %2193 }
 0x57c   : > { %v1104_v45 = vsel %vm888_vm4, %v2194_v44, 0.0  ;;  %v1112_v46 = vpack.c.bf16 %v2194_v44, %v2194_v44  ;;  %v881_v47 = vld [vmem:[#allocation5 + $0xc] sm:$0xf] }
 0x57d   : > { %1105 = vadd.xlane.f32.xlu0 %v1104_v45  ;;  %v1256_v48 = vsel %vm892_vm3, %v881_v47, 0 }
 0x57e   : > { %1997 = vmatmul.mubr.msk.bf16.vlgmr.msra.gmra.mrb[16].mxu0 %vm888_vm4, %v1112_v46  ;;  %2001 = vmatpush3.bf16.msra.mxu1 %v1256_v48  ;;  %v1897_v48 = vld [vmem:[#allocation12] ss:$0 sm:$0xff] }
 0x57f   : > { %v2196_v49 = vpop.eup %2195  ;;  %2008 = vmatprep.mubr.msk.bf16.mxu0 %vm2478_vm1, %v2477_v8  ;;  %2012 = vmatprep.subr.bf16.mxu1 %v2477_v8 }
 0x580   : > { %v1107_v50 = vsel %vm888_vm4, %v2196_v49, 0.0  ;;  %v1113_v51 = vpack.c.bf16 %v2196_v49, %v2196_v49  ;;  %2007 = vmatpush3.bf16.msra.mxu0 %v1318_v53 }
 0x581   : > { %1108 = vadd.xlane.f32.xlu0 %v1107_v50  ;;  %2018 = vmatprep.subr.bf16.mxu0 %v2477_v8 }
 0x582   : > { %2003 = vmatmul.mubr.msk.bf16.vlgmr.msra.gmra.mrb[12].mxu1 %vm888_vm4, %v1113_v51 }
 0x583   : > { %2014 = vmatprep.mubr.msk.bf16.mxu1 %vm2478_vm1, %v2477_v8  ;;  %2013 = vmatpush3.bf16.msra.mxu1 %v1364_v55 }
 0x584   : > { %2024 = vmatprep.subr.bf16.mxu1 %v2477_v8 }
 0x5d5   : > { %v1100_v56 = vpop.xlane.xlu0 %1099 }
 0x5d6   : > { %2197 = vrcp.f32 %v1100_v56 }
 0x5d9   : > { %v1103_v57 = vpop.xlane.xlu1 %1102 }
 0x5da   : > { %2199 = vrcp.f32 %v1103_v57 }
 0x5e0   : > { %v2198_v58 = vpop.eup %2197 }
 0x5e4   : > { %v2200_v3 = vpop.eup %2199 }
 0x60a   : > { %v1106_v13 = vpop.xlane.xlu0 %1105 }
 0x60b   : > { %2201 = vrcp.f32 %v1106_v13  ;;  %v2185_v13 = vld [vmem:[%s3011_s12 + $0x10] sm:$0xff]  }
 0x60e   : > { %v1109_v14 = vpop.xlane.xlu0 %1108 }
 0x60f   : > { %2203 = vrcp.f32 %v1109_v14  ;;  %v2186_v14 = vld [vmem:[%s3011_s12 + $0x18] sm:$0xff]  }
 0x615   : > { %v2202_v15 = vpop.eup %2201 }
 0x619   : > { %v2204_v22 = vpop.eup %2203 }
 0x61c   : > { %v1154_v59 = vpop.f32.mrb[12].mxu0 }
 0x61d   : > { %v1302_v61 = vmul.f32 %v2198_v58, %v1154_v59  ;;  %v1986_v62 = vpop.f32.mrb[13].mxu0 }
 0x61e   : > { %v1157_v63 = vpop.f32.mrb[14].mxu0  ;;  %v2181_v62 = vld [vmem:[%s3009_s10] sm:$0xff]  }
 0x61f   : > { %v1310_v0 = vpack.c.bf16 %v1302_v61, %v1302_v61  ;;  %v1987_v1 = vpop.f32.mrb[15].mxu0  ;;  %v2182_v63 = vld [vmem:[%s3009_s10 + $0x8] sm:$0xff]  }
 0x620   : > { %v1200_v4 = vpop.f32.mrb[8].mxu1  ;;  %v2184_v1 = vld [vmem:[%s3011_s12 + $0x8] sm:$0xff]  }
 0x621   : > { %v1303_v6 = vmul.f32 %v2200_v3, %v1200_v4  ;;  %v1992_v7 = vpop.f32.mrb[9].mxu1  ;;  %2009 = vmatmul.mubr.msk.bf16.vlgmr.msra.gmra.mrb[20].mxu0 %vm888_vm4, %v1310_v0  ;;  %v2183_v0 = vld [vmem:[%s3011_s12] sm:$0xff]  }
 0x622   : > { %v1203_v9 = vpop.f32.mrb[10].mxu1  ;;  %2019 = vmatpush3.bf16.msra.mxu0 %v1410_v2  ;;  %2020 = vmatprep.mubr.msk.bf16.mxu0 %vm2478_vm1, %v2477_v8 }
 0x623   : > { %v1311_v10 = vpack.c.bf16 %v1303_v6, %v1303_v6  ;;  %v1993_v11 = vpop.f32.mrb[11].mxu1  ;;  %2030 = vmatprep.subr.bf16.mxu0 %v2477_v8  ;;  %v1898_v6 = vld [vmem:[#allocation14] ss:$0 sm:$0xff]  ;;  %v1899_v9 = vld [vmem:[#allocation15] ss:$0 sm:$0xff] }
 0x625   : > { %2015 = vmatmul.mubr.msk.bf16.vlgmr.msra.gmra.mrb[16].mxu1 %vm888_vm4, %v1311_v10 }
 0x626   : > { %2025 = vmatpush3.bf16.msra.mxu1 %v1456_v12  ;;  %2026 = vmatprep.mubr.msk.bf16.mxu1 %vm2478_vm1, %v2477_v8 }
 0x627   : > { %2038 = vmatprep.subr.bf16.mxu1 %v2477_v8 }
 0x651   : > { %v1246_v16 = vpop.f32.mrb[16].mxu0 }
 0x652   : > { %v1304_v17 = vmul.f32 %v2202_v15, %v1246_v16  ;;  %v1998_v18 = vpop.f32.mrb[17].mxu0  ;;  %v1900_v15 = vld [vmem:[%s3010_s11] ss:$0 sm:$0xff] }
 0x653   : > { %v1249_v19 = vpop.f32.mrb[18].mxu0 }
 0x654   : > { %v1312_v20 = vpack.c.bf16 %v1304_v17, %v1304_v17  ;;  %v1999_v21 = vpop.f32.mrb[19].mxu0 }
 0x655   : > { %v1292_v23 = vpop.f32.mrb[12].mxu1 }
 0x656   : > { %v1305_v24 = vmul.f32 %v2204_v22, %v1292_v23  ;;  %v2004_v26 = vpop.f32.mrb[13].mxu1  ;;  %2021 = vmatmul.mubr.msk.bf16.vlgmr.msra.gmra.mrb[24].mxu0 %vm888_vm4, %v1312_v20 }
 0x657   : > { %v1295_v27 = vpop.f32.mrb[14].mxu1  ;;  %2034 = vmatprep.mubr.msk.bf16.mxu0 %vm2478_vm1, %v2477_v8  ;;  %2031 = vmatpush3.bf16.msra.mxu0 %v2181_v62 }
 0x658   : > { %v1313_v28 = vpack.c.bf16 %v1305_v24, %v1305_v24  ;;  %v2005_v29 = vpop.f32.mrb[15].mxu1  ;;  %2032 = vmatprep.subr.bf16.mxu0 %v2477_v8 }
 0x65a   : > { %2027 = vmatmul.mubr.msk.bf16.vlgmr.msra.gmra.mrb[20].mxu1 %vm888_vm4, %v1313_v28 }
 0x65b   : > { %2046 = vmatprep.mubr.msk.bf16.mxu1 %vm2478_vm1, %v2477_v8  ;;  %2033 = vmatpush3.bf16.msra.mxu0 %v2182_v63 }
 0x65c   : > { %2039 = vmatpush3.bf16.msra.mxu1 %v2183_v0 }
 0x65d   : > { %2040 = vmatprep.subr.bf16.mxu1 %v2477_v8 }
 0x660   : > { %2041 = vmatpush3.bf16.msra.mxu1 %v2184_v1 }
 0x661   : > { %2042 = vmatprep.subr.bf16.mxu1 %v2477_v8 }
 0x664   : > { %2043 = vmatpush3.bf16.msra.mxu1 %v2185_v13 }
 0x665   : > { %2044 = vmatprep.subr.bf16.mxu1 %v2477_v8  ;;  %v1904_v8 = vld [vmem:[%s3048_s3] ss:$0 sm:$0xff] }
 0x668   : > { %2045 = vmatpush3.bf16.msra.mxu1 %v2186_v14 }
 0x6f4   : > { %v1354_v30 = vpop.f32.mrb[20].mxu0 }
 0x6f5   : > { %v2010_v31 = vpop.f32.mrb[21].mxu0  ;;  %v1499_v34 = vsel %vm575_vm0, %v1354_v30, 0.0 }
 0x6f6   : > { %v1357_v25 = vpop.f32.mrb[22].mxu0 }
 0x6f7   : > { %v2011_v32 = vpop.f32.mrb[23].mxu0 }
 0x6f8   : > { %v1400_v33 = vpop.f32.mrb[16].mxu1 }
 0x6f9   : > { %v1500_v35 = vsel %vm575_vm0, %v1400_v33, 0.0  ;;  %v2016_v36 = vpop.f32.mrb[17].mxu1 }
 0x6fa   : > { %v1501_v37 = vadd.f32 %v1500_v35, %v1499_v34  ;;  %v1403_v38 = vpop.f32.mrb[18].mxu1 }
 0x6fb   : > { %v2017_v39 = vpop.f32.mrb[19].mxu1 }
 0x729   : > { %v1446_v40 = vpop.f32.mrb[24].mxu0 }
 0x72a   : > { %v1502_v41 = vsel %vm575_vm0, %v1446_v40, 0.0  ;;  %v2022_v42 = vpop.f32.mrb[25].mxu0 }
 0x72b   : > { %v1503_v43 = vadd.f32 %v1502_v41, %v1501_v37  ;;  %v1449_v44 = vpop.f32.mrb[26].mxu0 }
 0x72c   : > { %v2023_v45 = vpop.f32.mrb[27].mxu0 }
 0x72d   : > { %v1492_v46 = vpop.f32.mrb[20].mxu1 }
 0x72e   : > { %v1504_v47 = vsel %vm575_vm0, %v1492_v46, 0.0  ;;  %v2028_v49 = vpop.f32.mrb[21].mxu1 }
 0x72f   : > { %v1505_v50 = vadd.f32 %v1504_v47, %v1503_v43  ;;  %v1495_v51 = vpop.f32.mrb[22].mxu1 }
 0x730   : > { %v2029_v52 = vpop.f32.mrb[23].mxu1 }
 0x731   : > { %v1514_v53 = vadd.f32 %v1897_v48, %v1505_v50 }
 0x733   : > { %v1517_v55 = vadd.f32 %v1516_v54, %v1514_v53 }
 0x735   : > { %v1520_v56 = vsel %vm575_vm0, %v1517_v55, 0.0 }
 0x736   : > { %1521 = vadd.xlane.f32.xlu1 %v1520_v56 }
 0x7c3   : > { %v1522_v57 = vpop.xlane.xlu1 %1521 }
 0x7c4   : > { %v1524_v58 = vmul.f32 0.03125, %v1522_v57 }
 0x7c6   : > { %v1525_v59 = vsub.f32 %v1517_v55, %v1524_v58 }
 0x7c8   : > { %v1526_v60 = vmul.f32 %v1525_v59, %v1525_v59 }
 0x7ca   : > { %v1527_v61 = vsel %vm575_vm0, %v1526_v60, 0.0 }
 0x7cb   : > { %1528 = vadd.xlane.f32.xlu0 %v1527_v61 }
 0x858   : > { %v1529_v2 = vpop.xlane.xlu0 %1528 }
 0x859   : > { %v1530_v3 = vmul.f32 0.03125, %v1529_v2 }
 0x85b   : > { %v1531_v4 = vadd.f32 1e-05, %v1530_v3 }
 0x85d   : > { %2205 = vrsqrt.f32 %v1531_v4 }
 0x867   : > { %v2206_v5 = vpop.eup %2205 }
 0x868   : > { %v1533_v7 = vmul.f32 %v2206_v5, %v1525_v59 }
 0x86a   : > { %v1540_v10 = vmul.f32 %v1898_v6, %v1533_v7 }
 0x86c   : > { %v1547_v11 = vadd.f32 %v1899_v9, %v1540_v10 }
 0x86e   : > { %v1548_v12 = vpack.c.bf16 %v1547_v11, %v1547_v11 }
 0x870   : > { %2035 = vmatmul.mubr.msk.bf16.vlgmr.msra.gmra.mrb[28].mxu0 %vm575_vm0, %v1548_v12 }
 0x943   : > { %v1609_v16 = vpop.f32.mrb[28].mxu0 }
 0x944   : > { %v1610_v17 = vadd.f32 %v1900_v15, %v1609_v16  ;;  %v2036_v18 = vpop.f32.mrb[29].mxu0 }
 0x945   : > { %v1612_v19 = vpop.f32.mrb[30].mxu0 }
 0x946   : > { %v1615_v20 = vmax.f32 %v1610_v17, 0.0  ;;  %v2037_v21 = vpop.f32.mrb[31].mxu0 }
 0x948   : > { %v1616_v22 = vpack.c.bf16 %v1615_v20, %v1615_v20 }
 0x94a   : > { %2047 = vmatmul.mubr.msk.bf16.vlgmr.msra.gmra.mrb[24].mxu1 %vm1656_vm5, %v1616_v22 }
 0xa1d   : > { %v1694_v23 = vpop.f32.mrb[24].mxu1 }
 0xa1e   : > { %v1695_v24 = vadd.f32 %v1904_v8, %v1694_v23  ;;  %v2048_v26 = vpop.f32.mrb[25].mxu1 }
 0xa1f   : > { %v1697_v27 = vpop.f32.mrb[26].mxu1 }
 0xa20   : > { %v1700_v28 = vadd.f32 %v1695_v24, %v1547_v11  ;;  %v2049_v29 = vpop.f32.mrb[27].mxu1 }
 0xa22   : > { %1701 = vst.msk [vmem:[%s559_s20] sm:$0xff] %vm575_vm0, %v1700_v28 }
 0xa23   : > { %2388 = shalt.err (!%p2385_p6)
}
 0xa24   : > { %s2389_s15 = scalar_lea.hbm %s2951_s29, 128  ;;  %s2393_s13 = scalar_lea.hbm %s3050_s28, 256 }
 0xa25   : > { %p2390_p7 = scmp.ne.s32.totalorder %s2951_s29, %s2389_s15  ;;  %p2394_p0 = scmp.lt.u32.totalorder %s2951_s29, %s3050_s28 }
 0xa26   : > { %p2395_p2 = scmp.lt.u32.totalorder %s2393_s13, %s2389_s15  ;;  %p2397_p1 = scmp.lt.u32.totalorder %s2389_s15, %s2951_s29 }
 0xa27   : > { %p2391_p9 = pnand %p2390_p7, %p3051_p4 }
 0xa28   : > { %p2396_p13 = por %p2395_p2, %p2394_p0 }
 0xa29   : > { %p2392_p12 = pneg %p2391_p9 }
 0xa2a   : > { %p2398_p8 = por %p2397_p1, %p2396_p13 }
 0xa2c   : > { %p2399_p10 = pnand %p2398_p8, %p2392_p12 }
 0xa2e   : > { %2402 = shalt.err (!%p2399_p10)
}
 0xa2f   : > { %2074 = dma.vmem_to_hbm [thread:$0]  (%p3051_p4), %s2953_s26, 128, %s2951_s29, %s1703_s16  }
 0xa30 PF: > { %s3052_s20 = sld [smem:[#allocation26_spill]]  ;;  %s3053_s27 = sld [smem:[#allocation23_spill]] }
 0xa31   : > { %s3054_s18 = sld [smem:[#allocation29_spill]] }
 0xa36   : > { %p2111_p11 = scmp.ge.s32.totalorder %s3052_s20, 2  ;;  %s1729_s24 = sand.u32 1, %s3053_s27  }
 0xa37   : > { %p3055_p3 = scmp.ne.s32.totalorder %s3054_s18, 0  ;;  %s1730_s14 = scalar_lea.sflag [#allocation8], %s1729_s24 }
 0xa39   : > { %p2096_p5 = pnand %p2111_p11, %p3055_p3 }
 0xa3b   : > { %2444 = dma.done.wait (!%p2096_p5), %s1730_s14, 128  }
 0xa3c   : > { %2446 = vsyncadd (!%p2096_p5), %s1730_s14, 4294967168  ;;  %s31_s18 = sadd.s32 1, %s3052_s20   ;;  %s3056_s23 = sld [smem:[#allocation24_spill]] }
 0xa3d   : > { %p28_p6 = scmp.ge.s32.totalorder %s31_s18, 4   ;;  %s3057_s15 = sld [smem:[#allocation30_spill]] }
 0xa3e   : > { %s3058_s16 = sld [smem:[#allocation25_spill]]  ;;  %s3059_s17 = sld [smem:[#allocation27_spill]] }
 0xa3f   : > { %s3060_s29 = smov %s2453_s30  ;;  %30 = sbr.rel (!%p28_p6) target bundleno = 12 (0xc), region = 154 }
 0xa42   : > { %s3061_s30 = smov %s3056_s23 }
 0xa46   :  { %1735 = vsyncpa [#allocation7], 1 }
 0xa47   :  { %1737 = vsyncpa [#allocation7 + $0x1], 1 }
 0xa48   :  { %1738 = vsyncpa [#allocation10], 1 }
 0xa49   :  { %1739 = vsyncpa [#allocation13], 1 }
 0xa4a   :  { %1740 = vsyncpa [#allocation16], 1 }
 0xa4b   :  { %1741 = vsyncpa [#allocation8], 1 }
 0xa4c   :  { %1743 = vsyncpa [#allocation8 + $0x1], 1 }

</bundles_post_ra>
